<compile_context>
chip_gen: v7x
topology: tpu7x:2x2x1
jax: 0.10.0
libtpu: 0.0.40
codegen_flags: <defaults>
</compile_context>

<pallas_src>
import jax
import jax.numpy as jnp
from jax.experimental import pallas as pl
from jax.experimental.pallas import tpu as pltpu


def _round_up(x: int, m: int) -> int:
    return (x + m - 1) // m * m


# ---------------------------------------------------------------------------
# Fused Pallas kernel: x -> 8 chained (matmul + bias [+ ReLU]) layers.
# ---------------------------------------------------------------------------
def _pilotnet_fused_kernel(x_ref, *refs):
    # refs = (w1, b1, w2, b2, ..., w8, b8, o_ref); all weights already padded
    # to (8,128)-aligned shapes and stored in bf16, biases in f32.
    o_ref = refs[-1]
    wb = refs[:-1]
    n_layers = len(wb) // 2

    a = x_ref[...]  # (Bp, 768) f32
    for i in range(n_layers):
        w_ref = wb[2 * i]
        b_ref = wb[2 * i + 1]
        acc = jnp.dot(a.astype(jnp.bfloat16), w_ref[...],
                      preferred_element_type=jnp.float32)   # MXU, f32 accum
        acc = acc + b_ref[...]                               # (1, Np) broadcast
        if i < n_layers - 1:                                 # ReLU on all but fc3
            acc = jnp.maximum(acc, 0.0)
        a = acc
    o_ref[...] = a


# ---------------------------------------------------------------------------
# One-time weight preprocessing (NOT in the hot path)
# ---------------------------------------------------------------------------
def _conv_to_dense(weight, bias, H, W, stride, pad):
    """Expand a Conv2d(weight,bias) over an HxW NCHW map into a dense matrix.

    Returns M of shape (Cin*H*W, Cout*Ho*Wo) and b_full of shape (Cout*Ho*Wo,)
    such that  conv(x).reshape(B,-1) == x.reshape(B,-1) @ M + b_full
    (exact NCHW row-major flatten order, matching PyTorch .view(B,-1)).
    """
    Cout, Cin, kh, kw = weight.shape
    Ho = (H + 2 * pad - kh) // stride + 1
    Wo = (W + 2 * pad - kw) // stride + 1

    M = jnp.zeros((Cin * H * W, Cout * Ho * Wo), jnp.float32)
    ho = jnp.arange(Ho)
    wo = jnp.arange(Wo)
    ci = jnp.arange(Cin)
    co = jnp.arange(Cout)

    for dy in range(kh):
        for dx in range(kw):
            hi = ho * stride - pad + dy                      # (Ho,)
            wi = wo * stride - pad + dx                      # (Wo,)
            valid = (((hi >= 0) & (hi < H))[:, None]
                     & ((wi >= 0) & (wi < W))[None, :])      # (Ho, Wo)
            hi_c = jnp.clip(hi, 0, H - 1)
            wi_c = jnp.clip(wi, 0, W - 1)

            rows = (ci[:, None, None, None] * (H * W)
                    + hi_c[None, None, :, None] * W
                    + wi_c[None, None, None, :])             # (Cin,1,Ho,Wo)
            rows = jnp.broadcast_to(rows, (Cin, Cout, Ho, Wo))

            cols = (co[None, :, None, None] * (Ho * Wo)
                    + ho[None, None, :, None] * Wo
                    + wo[None, None, None, :])               # (1,Cout,Ho,Wo)
            cols = jnp.broadcast_to(cols, (Cin, Cout, Ho, Wo))

            vals = (weight[:, :, dy, dx].T[:, :, None, None]  # (Cin,Cout,1,1)
                    * valid[None, None, :, :].astype(jnp.float32))
            vals = jnp.broadcast_to(vals, (Cin, Cout, Ho, Wo))

            M = M.at[rows.ravel(), cols.ravel()].add(vals.ravel())

    b_full = jnp.repeat(bias.astype(jnp.float32), Ho * Wo)
    return M, b_full, Ho, Wo


def prepare_params(params):
    """Hoisted preprocessing: dense-expand convs, pad to (8,128), cast to bf16."""
    layers = []
    H = W = 16
    for name, stride, pad in (("conv1", 2, 2), ("conv2", 2, 2), ("conv3", 2, 2),
                              ("conv4", 1, 1), ("conv5", 1, 1)):
        w, b = params[name]
        M, bf, H, W = _conv_to_dense(w, b, H, W, stride, pad)
        layers.append((M, bf))
    for name in ("fc1", "fc2", "fc3"):
        w, b = params[name]
        layers.append((w.astype(jnp.float32), b.astype(jnp.float32)))

    prepped = []
    for M, b in layers:
        K, N = M.shape
        Kp, Np = _round_up(K, 128), _round_up(N, 128)
        Mp = jnp.zeros((Kp, Np), jnp.bfloat16).at[:K, :N].set(
            M.astype(jnp.bfloat16))
        bp = jnp.zeros((1, Np), jnp.float32).at[0, :N].set(
            b.astype(jnp.float32))
        prepped.append((Mp, bp))
    return tuple(prepped)


# ---------------------------------------------------------------------------
# Forward pass (single pallas_call)
# ---------------------------------------------------------------------------
def pilotnet_forward(prepped, x_nchw):
    B = x_nchw.shape[0]
    K0 = prepped[0][0].shape[0]          # padded input feature dim (768)
    Np_last = prepped[-1][0].shape[1]    # padded final output dim (128)
    Bp = max(_round_up(B, 8), 8)

    x_flat = x_nchw.reshape(B, -1).astype(jnp.float32)   # NCHW flatten
    xp = jnp.zeros((Bp, K0), jnp.float32).at[:B, :x_flat.shape[1]].set(x_flat)

    flat_args = [xp]
    for w, b in prepped:
        flat_args.append(w)
        flat_args.append(b)

    vmem_spec = pl.BlockSpec(memory_space=pltpu.MemorySpace.VMEM)
    out = pl.pallas_call(
        _pilotnet_fused_kernel,
        out_shape=jax.ShapeDtypeStruct((Bp, Np_last), jnp.float32),
        in_specs=[vmem_spec] * len(flat_args),
        out_specs=vmem_spec,
        compiler_params=pltpu.CompilerParams(
            vmem_limit_bytes=40 * 1024 * 1024),
    )(*flat_args)
    return out[:B, :1]


# ---------------------------------------------------------------------------
# Parameter initialization (deterministic, synthetic; PyTorch-style layout)
# ---------------------------------------------------------------------------
def init_params(key):
    def conv_p(key, cout, cin, k):
        k1, k2 = jax.random.split(key)
        scale = 1.0 / jnp.sqrt(cin * k * k)
        w = jax.random.uniform(k1, (cout, cin, k, k), jnp.float32, -scale, scale)
        b = jax.random.uniform(k2, (cout,), jnp.float32, -scale, scale)
        return w, b

    def fc_p(key, fin, fout):
        k1, k2 = jax.random.split(key)
        scale = 1.0 / jnp.sqrt(fin)
        w = jax.random.uniform(k1, (fin, fout), jnp.float32, -scale, scale)
        b = jax.random.uniform(k2, (fout,), jnp.float32, -scale, scale)
        return w, b

    keys = jax.random.split(key, 8)
    return {
        "conv1": conv_p(keys[0], 24, 3, 5),
        "conv2": conv_p(keys[1], 36, 24, 5),
        "conv3": conv_p(keys[2], 48, 36, 5),
        "conv4": conv_p(keys[3], 64, 48, 3),
        "conv5": conv_p(keys[4], 64, 64, 3),
        "fc1": fc_p(keys[5], 64 * 2 * 2, 100),
        "fc2": fc_p(keys[6], 100, 50),
        "fc3": fc_p(keys[7], 50, 1),
    }


# ---------------------------------------------------------------------------
# Plain-JAX f32 reference (for a sanity check only; not the hot path)
# ---------------------------------------------------------------------------
def _reference_forward(params, x):
    def conv(x, w, b, stride, pad):
        y = jax.lax.conv_general_dilated(
            x, w, window_strides=(stride, stride),
            padding=[(pad, pad), (pad, pad)],
            dimension_numbers=("NCHW", "OIHW", "NCHW"))
        return jax.nn.relu(y + b[None, :, None, None])

    x = conv(x, *params["conv1"], 2, 2)
    x = conv(x, *params["conv2"], 2, 2)
    x = conv(x, *params["conv3"], 2, 2)
    x = conv(x, *params["conv4"], 1, 1)
    x = conv(x, *params["conv5"], 1, 1)
    x = x.reshape(x.shape[0], -1)
    x = jax.nn.relu(x @ params["fc1"][0] + params["fc1"][1])
    x = jax.nn.relu(x @ params["fc2"][0] + params["fc2"][1])
    return x @ params["fc3"][0] + params["fc3"][1]


if __name__ == "__main__":
    key = jax.random.PRNGKey(0)
    pkey, xkey = jax.random.split(key)
    params = init_params(pkey)
    prepped = prepare_params(params)     # one-time, outside the hot path

    # Input: batch=2, 3 channels, 16x16 spatial (yields 64*2*2=256 flat feats).
    x = jax.random.normal(xkey, (2, 3, 16, 16), jnp.float32)

    fwd = jax.jit(pilotnet_forward)
    out = fwd(prepped, x)
    out = jax.block_until_ready(out)
    assert out.shape == (2, 1), out.shape

    # Sanity check vs f32 reference (bf16 matmul inputs -> loose tolerance).
    ref = _reference_forward(params, x)
    assert float(jnp.max(jnp.abs(out - ref))) < 3e-2, (out, ref)

    print("KERNEL_OK")
</pallas_src>

<mosaic_0001>
module attributes {stable_mosaic.version = 11 : i64} {
  func.func @_pilotnet_fused_kernel(%arg0: memref<8x768xf32, #tpu.memory_space<vmem>>, %arg1: memref<768x1536xbf16, #tpu.memory_space<vmem>>, %arg2: memref<1x1536xf32, #tpu.memory_space<vmem>>, %arg3: memref<1536x640xbf16, #tpu.memory_space<vmem>>, %arg4: memref<1x640xf32, #tpu.memory_space<vmem>>, %arg5: memref<640x256xbf16, #tpu.memory_space<vmem>>, %arg6: memref<1x256xf32, #tpu.memory_space<vmem>>, %arg7: memref<256x256xbf16, #tpu.memory_space<vmem>>, %arg8: memref<1x256xf32, #tpu.memory_space<vmem>>, %arg9: memref<256x256xbf16, #tpu.memory_space<vmem>>, %arg10: memref<1x256xf32, #tpu.memory_space<vmem>>, %arg11: memref<256x128xbf16, #tpu.memory_space<vmem>>, %arg12: memref<1x128xf32, #tpu.memory_space<vmem>>, %arg13: memref<128x128xbf16, #tpu.memory_space<vmem>>, %arg14: memref<1x128xf32, #tpu.memory_space<vmem>>, %arg15: memref<128x128xbf16, #tpu.memory_space<vmem>>, %arg16: memref<1x128xf32, #tpu.memory_space<vmem>>, %arg17: memref<8x128xf32, #tpu.memory_space<vmem>>) attributes {dimension_semantics = [], scalar_prefetch = 0 : i64, scratch_operands = 0 : i64, tpu.core_type = #tpu.core_type<tc>} {
    %c0 = arith.constant 0 : index
    %c0_0 = arith.constant 0 : index
    %0 = vector.load %arg0[%c0, %c0_0] : memref<8x768xf32, #tpu.memory_space<vmem>>, vector<8x768xf32>
    %1 = arith.truncf %0 : vector<8x768xf32> to vector<8x768xbf16>
    %c0_1 = arith.constant 0 : index
    %c0_2 = arith.constant 0 : index
    %2 = vector.load %arg1[%c0_1, %c0_2] : memref<768x1536xbf16, #tpu.memory_space<vmem>>, vector<768x1536xbf16>
    %cst = arith.constant dense<0.000000e+00> : vector<8x1536xf32>
    %3 = tpu.matmul %1, %2, %cst {dimension_numbers = #tpu.dot_dimension_numbers<[1], [0], [0], [1], [0, 0, 1, 1], [], []>} : vector<8x768xbf16>, vector<768x1536xbf16>, vector<8x1536xf32> -> vector<8x1536xf32>
    %c0_3 = arith.constant 0 : index
    %c0_4 = arith.constant 0 : index
    %4 = vector.load %arg2[%c0_3, %c0_4] : memref<1x1536xf32, #tpu.memory_space<vmem>>, vector<1x1536xf32>
    %5 = vector.broadcast %4 : vector<1x1536xf32> to vector<8x1536xf32>
    %6 = arith.addf %3, %5 : vector<8x1536xf32>
    %cst_5 = arith.constant 0.000000e+00 : f32
    %7 = vector.broadcast %cst_5 : f32 to vector<8x1536xf32>
    %8 = arith.maximumf %6, %7 : vector<8x1536xf32>
    %9 = arith.truncf %8 : vector<8x1536xf32> to vector<8x1536xbf16>
    %c0_6 = arith.constant 0 : index
    %c0_7 = arith.constant 0 : index
    %10 = vector.load %arg3[%c0_6, %c0_7] : memref<1536x640xbf16, #tpu.memory_space<vmem>>, vector<1536x640xbf16>
    %cst_8 = arith.constant dense<0.000000e+00> : vector<8x640xf32>
    %11 = tpu.matmul %9, %10, %cst_8 {dimension_numbers = #tpu.dot_dimension_numbers<[1], [0], [0], [1], [0, 0, 1, 1], [], []>} : vector<8x1536xbf16>, vector<1536x640xbf16>, vector<8x640xf32> -> vector<8x640xf32>
    %c0_9 = arith.constant 0 : index
    %c0_10 = arith.constant 0 : index
    %12 = vector.load %arg4[%c0_9, %c0_10] : memref<1x640xf32, #tpu.memory_space<vmem>>, vector<1x640xf32>
    %13 = vector.broadcast %12 : vector<1x640xf32> to vector<8x640xf32>
    %14 = arith.addf %11, %13 : vector<8x640xf32>
    %cst_11 = arith.constant 0.000000e+00 : f32
    %15 = vector.broadcast %cst_11 : f32 to vector<8x640xf32>
    %16 = arith.maximumf %14, %15 : vector<8x640xf32>
    %17 = arith.truncf %16 : vector<8x640xf32> to vector<8x640xbf16>
    %c0_12 = arith.constant 0 : index
    %c0_13 = arith.constant 0 : index
    %18 = vector.load %arg5[%c0_12, %c0_13] : memref<640x256xbf16, #tpu.memory_space<vmem>>, vector<640x256xbf16>
    %cst_14 = arith.constant dense<0.000000e+00> : vector<8x256xf32>
    %19 = tpu.matmul %17, %18, %cst_14 {dimension_numbers = #tpu.dot_dimension_numbers<[1], [0], [0], [1], [0, 0, 1, 1], [], []>} : vector<8x640xbf16>, vector<640x256xbf16>, vector<8x256xf32> -> vector<8x256xf32>
    %c0_15 = arith.constant 0 : index
    %c0_16 = arith.constant 0 : index
    %20 = vector.load %arg6[%c0_15, %c0_16] : memref<1x256xf32, #tpu.memory_space<vmem>>, vector<1x256xf32>
    %21 = vector.broadcast %20 : vector<1x256xf32> to vector<8x256xf32>
    %22 = arith.addf %19, %21 : vector<8x256xf32>
    %cst_17 = arith.constant 0.000000e+00 : f32
    %23 = vector.broadcast %cst_17 : f32 to vector<8x256xf32>
    %24 = arith.maximumf %22, %23 : vector<8x256xf32>
    %25 = arith.truncf %24 : vector<8x256xf32> to vector<8x256xbf16>
    %c0_18 = arith.constant 0 : index
    %c0_19 = arith.constant 0 : index
    %26 = vector.load %arg7[%c0_18, %c0_19] : memref<256x256xbf16, #tpu.memory_space<vmem>>, vector<256x256xbf16>
    %cst_20 = arith.constant dense<0.000000e+00> : vector<8x256xf32>
    %27 = tpu.matmul %25, %26, %cst_20 {dimension_numbers = #tpu.dot_dimension_numbers<[1], [0], [0], [1], [0, 0, 1, 1], [], []>} : vector<8x256xbf16>, vector<256x256xbf16>, vector<8x256xf32> -> vector<8x256xf32>
    %c0_21 = arith.constant 0 : index
    %c0_22 = arith.constant 0 : index
    %28 = vector.load %arg8[%c0_21, %c0_22] : memref<1x256xf32, #tpu.memory_space<vmem>>, vector<1x256xf32>
    %29 = vector.broadcast %28 : vector<1x256xf32> to vector<8x256xf32>
    %30 = arith.addf %27, %29 : vector<8x256xf32>
    %cst_23 = arith.constant 0.000000e+00 : f32
    %31 = vector.broadcast %cst_23 : f32 to vector<8x256xf32>
    %32 = arith.maximumf %30, %31 : vector<8x256xf32>
    %33 = arith.truncf %32 : vector<8x256xf32> to vector<8x256xbf16>
    %c0_24 = arith.constant 0 : index
    %c0_25 = arith.constant 0 : index
    %34 = vector.load %arg9[%c0_24, %c0_25] : memref<256x256xbf16, #tpu.memory_space<vmem>>, vector<256x256xbf16>
    %cst_26 = arith.constant dense<0.000000e+00> : vector<8x256xf32>
    %35 = tpu.matmul %33, %34, %cst_26 {dimension_numbers = #tpu.dot_dimension_numbers<[1], [0], [0], [1], [0, 0, 1, 1], [], []>} : vector<8x256xbf16>, vector<256x256xbf16>, vector<8x256xf32> -> vector<8x256xf32>
    %c0_27 = arith.constant 0 : index
    %c0_28 = arith.constant 0 : index
    %36 = vector.load %arg10[%c0_27, %c0_28] : memref<1x256xf32, #tpu.memory_space<vmem>>, vector<1x256xf32>
    %37 = vector.broadcast %36 : vector<1x256xf32> to vector<8x256xf32>
    %38 = arith.addf %35, %37 : vector<8x256xf32>
    %cst_29 = arith.constant 0.000000e+00 : f32
    %39 = vector.broadcast %cst_29 : f32 to vector<8x256xf32>
    %40 = arith.maximumf %38, %39 : vector<8x256xf32>
    %41 = arith.truncf %40 : vector<8x256xf32> to vector<8x256xbf16>
    %c0_30 = arith.constant 0 : index
    %c0_31 = arith.constant 0 : index
    %42 = vector.load %arg11[%c0_30, %c0_31] : memref<256x128xbf16, #tpu.memory_space<vmem>>, vector<256x128xbf16>
    %cst_32 = arith.constant dense<0.000000e+00> : vector<8x128xf32>
    %43 = tpu.matmul %41, %42, %cst_32 {dimension_numbers = #tpu.dot_dimension_numbers<[1], [0], [0], [1], [0, 0, 1, 1], [], []>} : vector<8x256xbf16>, vector<256x128xbf16>, vector<8x128xf32> -> vector<8x128xf32>
    %c0_33 = arith.constant 0 : index
    %c0_34 = arith.constant 0 : index
    %44 = vector.load %arg12[%c0_33, %c0_34] : memref<1x128xf32, #tpu.memory_space<vmem>>, vector<1x128xf32>
    %45 = vector.broadcast %44 : vector<1x128xf32> to vector<8x128xf32>
    %46 = arith.addf %43, %45 : vector<8x128xf32>
    %cst_35 = arith.constant 0.000000e+00 : f32
    %47 = vector.broadcast %cst_35 : f32 to vector<8x128xf32>
    %48 = arith.maximumf %46, %47 : vector<8x128xf32>
    %49 = arith.truncf %48 : vector<8x128xf32> to vector<8x128xbf16>
    %c0_36 = arith.constant 0 : index
    %c0_37 = arith.constant 0 : index
    %50 = vector.load %arg13[%c0_36, %c0_37] : memref<128x128xbf16, #tpu.memory_space<vmem>>, vector<128x128xbf16>
    %cst_38 = arith.constant dense<0.000000e+00> : vector<8x128xf32>
    %51 = tpu.matmul %49, %50, %cst_38 {dimension_numbers = #tpu.dot_dimension_numbers<[1], [0], [0], [1], [0, 0, 1, 1], [], []>} : vector<8x128xbf16>, vector<128x128xbf16>, vector<8x128xf32> -> vector<8x128xf32>
    %c0_39 = arith.constant 0 : index
    %c0_40 = arith.constant 0 : index
    %52 = vector.load %arg14[%c0_39, %c0_40] : memref<1x128xf32, #tpu.memory_space<vmem>>, vector<1x128xf32>
    %53 = vector.broadcast %52 : vector<1x128xf32> to vector<8x128xf32>
    %54 = arith.addf %51, %53 : vector<8x128xf32>
    %cst_41 = arith.constant 0.000000e+00 : f32
    %55 = vector.broadcast %cst_41 : f32 to vector<8x128xf32>
    %56 = arith.maximumf %54, %55 : vector<8x128xf32>
    %57 = arith.truncf %56 : vector<8x128xf32> to vector<8x128xbf16>
    %c0_42 = arith.constant 0 : index
    %c0_43 = arith.constant 0 : index
    %58 = vector.load %arg15[%c0_42, %c0_43] : memref<128x128xbf16, #tpu.memory_space<vmem>>, vector<128x128xbf16>
    %cst_44 = arith.constant dense<0.000000e+00> : vector<8x128xf32>
    %59 = tpu.matmul %57, %58, %cst_44 {dimension_numbers = #tpu.dot_dimension_numbers<[1], [0], [0], [1], [0, 0, 1, 1], [], []>} : vector<8x128xbf16>, vector<128x128xbf16>, vector<8x128xf32> -> vector<8x128xf32>
    %c0_45 = arith.constant 0 : index
    %c0_46 = arith.constant 0 : index
    %60 = vector.load %arg16[%c0_45, %c0_46] : memref<1x128xf32, #tpu.memory_space<vmem>>, vector<1x128xf32>
    %61 = vector.broadcast %60 : vector<1x128xf32> to vector<8x128xf32>
    %62 = arith.addf %59, %61 : vector<8x128xf32>
    %c0_47 = arith.constant 0 : index
    %c0_48 = arith.constant 0 : index
    %63 = vector.load %arg17[%c0_47, %c0_48] : memref<8x128xf32, #tpu.memory_space<vmem>>, vector<8x128xf32>
    tpu.vector_store %arg17[%c0_47, %c0_48], %62 {strides = array<i32>} : memref<8x128xf32, #tpu.memory_space<vmem>>, vector<8x128xf32>,
    return
  }
}

</mosaic_0001>

<bundles_post_ra>
// kernel: pilotnet_forward.1
= control target key start
LH: loop header
LB: loop body
LE: loop exit
PB: predicated region body
PF: predicated region fallthrough
CT: control target
= control target key end

     0   :  { %s14260_s0 = inlined_call_operand.vmem [shape: f32[8,768], index: 0, kind: input, shape index: {}]   ;;  %s14261_s1 = inlined_call_operand.hbm [shape: bf16[768,1536], index: 1, kind: input, shape index: {}]   ;;  %s14262_s2 = inlined_call_operand.hbm [shape: f32[1,1536], index: 2, kind: input, shape index: {}]   ;;  %s14263_s3 = inlined_call_operand.hbm [shape: bf16[1536,640], index: 3, kind: input, shape index: {}]   ;;  %s14264_s4 = inlined_call_operand.hbm [shape: f32[1,640], index: 4, kind: input, shape index: {}]   ;;  %s14265_s5 = inlined_call_operand.hbm [shape: bf16[640,256], index: 5, kind: input, shape index: {}]   ;;  %s14266_s6 = inlined_call_operand.hbm [shape: f32[1,256], index: 6, kind: input, shape index: {}]   ;;  %s14267_s7 = inlined_call_operand.hbm [shape: bf16[256,256], index: 7, kind: input, shape index: {}]   ;;  %s14268_s8 = inlined_call_operand.hbm [shape: f32[1,256], index: 8, kind: input, shape index: {}]   ;;  %s14269_s9 = inlined_call_operand.hbm [shape: bf16[256,256], index: 9, kind: input, shape index: {}]   ;;  %s14270_s10 = inlined_call_operand.hbm [shape: f32[1,256], index: 10, kind: input, shape index: {}]   ;;  %s14271_s11 = inlined_call_operand.hbm [shape: bf16[256,128], index: 11, kind: input, shape index: {}]   ;;  %s14272_s12 = inlined_call_operand.hbm [shape: f32[1,128], index: 12, kind: input, shape index: {}]   ;;  %s14273_s13 = inlined_call_operand.hbm [shape: bf16[128,128], index: 13, kind: input, shape index: {}]   ;;  %s14274_s14 = inlined_call_operand.hbm [shape: f32[1,128], index: 14, kind: input, shape index: {}]   ;;  %s14275_s15 = inlined_call_operand.hbm [shape: bf16[128,128], index: 15, kind: input, shape index: {}]   ;;  %s14276_s16 = inlined_call_operand.hbm [shape: f32[1,128], index: 16, kind: input, shape index: {}]   ;;  %s14277_s17 = inlined_call_operand.vmem [shape: f32[8,128], index: 17, kind: output, shape index: {}]  }
   0x1   :  { %14280 = sst [smem:[#allocation36_spill]] %s14260_s0 }
   0x2   :  { %14281 = sst [smem:[#allocation37_spill]] %s14261_s1 }
   0x3   :  { %22 = vsyncpa [#allocation3], 0 }
   0x4   :  { %23 = vsyncpa [#allocation5], 0 }
   0x5   :  { %24 = vsyncpa [#allocation8], 0 }
   0x6   :  { %25 = vsyncpa [#allocation11], 0 }
   0x7   :  { %26 = vsyncpa [#allocation14], 0 }
   0x8   :  { %27 = vsyncpa [#allocation17], 0 }
   0x9   :  { %28 = vsyncpa [#allocation20], 0 }
   0xa   :  { %29 = vsyncpa [#allocation23], 0 }
   0xb   :  { %30 = vsyncpa [#allocation26], 0  ;;  %s13668_s24 = smov [#allocation4]   ;;  %s13669_s26 = smov [#allocation7]  }
   0xc   :  { %s51_s25 = sshll.u32 %s13668_s24, 4  ;;  %s73_s27 = sshll.u32 %s13669_s26, 4  ;;  %s52_s25 = int_to_ptr.vmem [resolvable:$true] %s51_s25  ;;  %s74_s27 = int_to_ptr.vmem [resolvable:$true] %s73_s27 }
   0xd   :  { %s13298_s0 = scalar_lea.hbm %s14262_s2, 192 }
   0xe   :  { %p13299_p0 = scmp.ne.s32.totalorder %s14262_s2, %s13298_s0  ;;  %p13302_p1 = scmp.lt.u32.totalorder %s13298_s0, %s14262_s2 }
  0x10   :  { %p13304_p2 = pnand %p13302_p1, %p13299_p0 }
  0x12   :  { %13307 = shalt.err (!%p13304_p2)
}
  0x13   :  { %s13308_s20 = scalar_lea.vmem %s52_s25, 192  ;;  %p13313_p4 = scmp.lt.s32.totalorder %s52_s25, %s52_s25 }
  0x14   :  { %p13309_p3 = scmp.ne.s32.totalorder %s52_s25, %s13308_s20  ;;  %p13314_p5 = scmp.lt.s32.totalorder %s13308_s20, %s13308_s20 }
  0x16   :  { %p13315_p6 = por %p13314_p5, %p13313_p4 }
  0x18   :  { %p13316_p7 = pnand %p13315_p6, %p13309_p3 }
  0x1a   :  { %13319 = shalt.err (!%p13316_p7)
}
  0x1b   :  { %54 = dma.hbm_to_vmem [thread:$0]  %s14262_s2, 192, %s52_s25, [#allocation5]  }
  0x1c   :  { %s13320_s26 = scalar_lea.hbm %s14264_s4, 80 }
  0x1d   :  { %p13321_p8 = scmp.ne.s32.totalorder %s14264_s4, %s13320_s26  ;;  %p13324_p9 = scmp.lt.u32.totalorder %s13320_s26, %s14264_s4 }
  0x1f   :  { %p13326_p10 = pnand %p13324_p9, %p13321_p8 }
  0x21   :  { %13329 = shalt.err (!%p13326_p10)
}
  0x22   :  { %s13330_s18 = scalar_lea.vmem %s74_s27, 80  ;;  %s13334_s19 = scalar_lea.vmem %s74_s27, 96 }
  0x23   :  { %p13331_p11 = scmp.ne.s32.totalorder %s74_s27, %s13330_s18  ;;  %p13335_p12 = scmp.lt.s32.totalorder %s74_s27, %s74_s27 }
  0x24   :  { %p13336_p13 = scmp.lt.s32.totalorder %s13334_s19, %s13330_s18 }
  0x26   :  { %p13337_p0 = por %p13336_p13, %p13335_p12 }
  0x28   :  { %p13338_p1 = pnand %p13337_p0, %p13331_p11 }
  0x2a   :  { %13341 = shalt.err (!%p13338_p1)
}
  0x2b   :  { %76 = dma.hbm_to_vmem [thread:$0]  %s14264_s4, 80, %s74_s27, [#allocation8]  }
  0x2c   :  { %s13670_s1 = smov [#allocation10]   ;;  %s13671_s21 = smov [#allocation13]  }
  0x2d   :  { %s95_s20 = sshll.u32 %s13670_s1, 4  ;;  %s117_s22 = sshll.u32 %s13671_s21, 4  ;;  %s96_s20 = int_to_ptr.vmem [resolvable:$true] %s95_s20  ;;  %s118_s22 = int_to_ptr.vmem [resolvable:$true] %s117_s22 }
  0x2e   :  { %s13342_s26 = scalar_lea.hbm %s14266_s6, 32 }
  0x2f   :  { %p13343_p2 = scmp.ne.s32.totalorder %s14266_s6, %s13342_s26  ;;  %p13346_p3 = scmp.lt.u32.totalorder %s13342_s26, %s14266_s6 }
  0x31   :  { %p13348_p4 = pnand %p13346_p3, %p13343_p2 }
  0x33   :  { %13351 = shalt.err (!%p13348_p4)
}
  0x34   :  { %s13352_s4 = scalar_lea.vmem %s96_s20, 32  ;;  %p13357_p6 = scmp.lt.s32.totalorder %s96_s20, %s96_s20 }
  0x35   :  { %p13353_p5 = scmp.ne.s32.totalorder %s96_s20, %s13352_s4  ;;  %p13358_p7 = scmp.lt.s32.totalorder %s13352_s4, %s13352_s4 }
  0x37   :  { %p13359_p8 = por %p13358_p7, %p13357_p6 }
  0x39   :  { %p13360_p9 = pnand %p13359_p8, %p13353_p5 }
  0x3b   :  { %13363 = shalt.err (!%p13360_p9)
}
  0x3c   :  { %98 = dma.hbm_to_vmem [thread:$0]  %s14266_s6, 32, %s96_s20, [#allocation11]  }
  0x3d   :  { %s13364_s25 = scalar_lea.hbm %s14268_s8, 32 }
  0x3e   :  { %p13365_p10 = scmp.ne.s32.totalorder %s14268_s8, %s13364_s25  ;;  %p13368_p11 = scmp.lt.u32.totalorder %s13364_s25, %s14268_s8 }
  0x40   :  { %p13370_p12 = pnand %p13368_p11, %p13365_p10 }
  0x42   :  { %13373 = shalt.err (!%p13370_p12)
}
  0x43   :  { %s13374_s26 = scalar_lea.vmem %s118_s22, 32  ;;  %p13379_p0 = scmp.lt.s32.totalorder %s118_s22, %s118_s22 }
  0x44   :  { %p13375_p13 = scmp.ne.s32.totalorder %s118_s22, %s13374_s26  ;;  %p13380_p1 = scmp.lt.s32.totalorder %s13374_s26, %s13374_s26 }
  0x46   :  { %p13381_p2 = por %p13380_p1, %p13379_p0 }
  0x48   :  { %p13382_p3 = pnand %p13381_p2, %p13375_p13 }
  0x4a   :  { %13385 = shalt.err (!%p13382_p3)
}
  0x4b   :  { %120 = dma.hbm_to_vmem [thread:$0]  %s14268_s8, 32, %s118_s22, [#allocation14]  }
  0x4c   :  { %s13672_s28 = smov [#allocation16]   ;;  %s13673_s0 = smov [#allocation19]  }
  0x4d   :  { %s139_s29 = sshll.u32 %s13672_s28, 4  ;;  %s161_s30 = sshll.u32 %s13673_s0, 4  ;;  %s140_s29 = int_to_ptr.vmem [resolvable:$true] %s139_s29  ;;  %s162_s30 = int_to_ptr.vmem [resolvable:$true] %s161_s30 }
  0x4e   :  { %s13386_s18 = scalar_lea.hbm %s14270_s10, 32 }
  0x4f   :  { %p13387_p4 = scmp.ne.s32.totalorder %s14270_s10, %s13386_s18  ;;  %p13390_p5 = scmp.lt.u32.totalorder %s13386_s18, %s14270_s10 }
  0x51   :  { %p13392_p6 = pnand %p13390_p5, %p13387_p4 }
  0x53   :  { %13395 = shalt.err (!%p13392_p6)
}
  0x54   :  { %s13396_s8 = scalar_lea.vmem %s140_s29, 32  ;;  %p13401_p8 = scmp.lt.s32.totalorder %s140_s29, %s140_s29 }
  0x55   :  { %p13397_p7 = scmp.ne.s32.totalorder %s140_s29, %s13396_s8  ;;  %p13402_p9 = scmp.lt.s32.totalorder %s13396_s8, %s13396_s8 }
  0x57   :  { %p13403_p10 = por %p13402_p9, %p13401_p8 }
  0x59   :  { %p13404_p11 = pnand %p13403_p10, %p13397_p7 }
  0x5b   :  { %13407 = shalt.err (!%p13404_p11)
}
  0x5c   :  { %142 = dma.hbm_to_vmem [thread:$0]  %s14270_s10, 32, %s140_s29, [#allocation17]  }
  0x5d   :  { %s13408_s26 = scalar_lea.hbm %s14272_s12, 16 }
  0x5e   :  { %p13409_p12 = scmp.ne.s32.totalorder %s14272_s12, %s13408_s26  ;;  %p13412_p13 = scmp.lt.u32.totalorder %s13408_s26, %s14272_s12 }
  0x60   :  { %p13414_p0 = pnand %p13412_p13, %p13409_p12 }
  0x62   :  { %13417 = shalt.err (!%p13414_p0)
}
  0x63   :  { %s13418_s4 = scalar_lea.vmem %s162_s30, 16  ;;  %s13422_s27 = scalar_lea.vmem %s162_s30, 32 }
  0x64   :  { %p13419_p1 = scmp.ne.s32.totalorder %s162_s30, %s13418_s4  ;;  %p13423_p2 = scmp.lt.s32.totalorder %s162_s30, %s162_s30 }
  0x65   :  { %p13424_p3 = scmp.lt.s32.totalorder %s13422_s27, %s13418_s4 }
  0x67   :  { %p13425_p4 = por %p13424_p3, %p13423_p2 }
  0x69   :  { %p13426_p5 = pnand %p13425_p4, %p13419_p1 }
  0x6b   :  { %13429 = shalt.err (!%p13426_p5)
}
  0x6c   :  { %164 = dma.hbm_to_vmem [thread:$0]  %s14272_s12, 16, %s162_s30, [#allocation20]  }
  0x6d   :  { %s13674_s18 = smov [#allocation22]   ;;  %s13675_s2 = smov [#allocation2]  }
  0x6e   :  { %s183_s19 = sshll.u32 %s13674_s18, 4  ;;  %s38_s25 = sshll.u32 %s13675_s2, 4  ;;  %s184_s19 = int_to_ptr.vmem [resolvable:$true] %s183_s19  ;;  %s13857_s25 = int_to_ptr.vmem [resolvable:$true] %s38_s25 }
  0x6f   :  { %s13430_s22 = scalar_lea.hbm %s14274_s14, 16 }
  0x70   :  { %p13431_p6 = scmp.ne.s32.totalorder %s14274_s14, %s13430_s22  ;;  %p13434_p7 = scmp.lt.u32.totalorder %s13430_s22, %s14274_s14 }
  0x72   :  { %p13436_p8 = pnand %p13434_p7, %p13431_p6 }
  0x74   :  { %13439 = shalt.err (!%p13436_p8)
}
  0x75   :  { %s13440_s12 = scalar_lea.vmem %s184_s19, 16  ;;  %s13444_s30 = scalar_lea.vmem %s184_s19, 32 }
  0x76   :  { %p13441_p9 = scmp.ne.s32.totalorder %s184_s19, %s13440_s12  ;;  %p13445_p10 = scmp.lt.s32.totalorder %s184_s19, %s184_s19 }
  0x77   :  { %p13446_p11 = scmp.lt.s32.totalorder %s13444_s30, %s13440_s12 }
  0x79   :  { %p13447_p12 = por %p13446_p11, %p13445_p10 }
  0x7b   :  { %p13448_p13 = pnand %p13447_p12, %p13441_p9 }
  0x7d   :  { %13451 = shalt.err (!%p13448_p13)
}
  0x7e   :  { %186 = dma.hbm_to_vmem [thread:$0]  %s14274_s14, 16, %s184_s19, [#allocation23]  }
  0x7f   :  { %s14282_s4 = sld [smem:[#allocation37_spill]] }
  0x85   :  { %s13452_s27 = scalar_lea.hbm %s14282_s4, 73728 }
  0x86   :  { %p13453_p0 = scmp.ne.s32.totalorder %s14282_s4, %s13452_s27  ;;  %p13456_p1 = scmp.lt.u32.totalorder %s13452_s27, %s14282_s4 }
  0x88   :  { %p13458_p2 = pnand %p13456_p1, %p13453_p0 }
  0x8a   :  { %13461 = shalt.err (!%p13458_p2)
}
  0x8b   :  { %s13462_s1 = scalar_lea.vmem %s13857_s25, 73728  ;;  %p13467_p4 = scmp.lt.s32.totalorder %s13857_s25, %s13857_s25 }
  0x8c   :  { %p13463_p3 = scmp.ne.s32.totalorder %s13857_s25, %s13462_s1  ;;  %p13468_p5 = scmp.lt.s32.totalorder %s13462_s1, %s13462_s1 }
  0x8e   :  { %p13469_p6 = por %p13468_p5, %p13467_p4 }
  0x90   :  { %p13470_p7 = pnand %p13469_p6, %p13463_p3 }
  0x92   :  { %13473 = shalt.err (!%p13470_p7)
}
  0x93   :  { %s13676_s14 = smov 768   ;;  %s13677_s19 = smov 48  }
  0x94   :  { %44 = dma.hbm_to_vmem [thread:$0]  %s14282_s4, 73728, %s13857_s25, [#allocation3], %s13676_s14, %s13676_s14, %s13677_s19  }
  0x95   :  { %s13678_s21 = smov [#allocation6]   ;;  %s13474_s12 = scalar_lea.hbm %s14263_s3, 61440 }
  0x96   :  { %s60_s23 = sshll.u32 %s13678_s21, 4  ;;  %p13475_p8 = scmp.ne.s32.totalorder %s14263_s3, %s13474_s12  ;;  %s61_s23 = int_to_ptr.vmem [resolvable:$true] %s60_s23 }
  0x97   :  { %p13478_p9 = scmp.lt.u32.totalorder %s13474_s12, %s14263_s3 }
  0x99   :  { %p13480_p10 = pnand %p13478_p9, %p13475_p8 }
  0x9b   :  { %13483 = shalt.err (!%p13480_p10)
}
  0x9c   :  { %s13484_s0 = scalar_lea.vmem %s61_s23, 61440  ;;  %p13489_p12 = scmp.lt.s32.totalorder %s61_s23, %s61_s23 }
  0x9d   :  { %p13485_p11 = scmp.ne.s32.totalorder %s61_s23, %s13484_s0  ;;  %p13490_p13 = scmp.lt.s32.totalorder %s13484_s0, %s13484_s0 }
  0x9f   :  { %p13491_p0 = por %p13490_p13, %p13489_p12 }
  0xa1   :  { %p13492_p1 = pnand %p13491_p0, %p13485_p11 }
  0xa3   :  { %13495 = shalt.err (!%p13492_p1)
}
  0xa4   :  { %s13679_s25 = smov 320   ;;  %s13680_s4 = smov 20  }
  0xa5   :  { %66 = dma.hbm_to_vmem [thread:$0]  %s14263_s3, 61440, %s61_s23, [#allocation5], %s13679_s25, %s13679_s25, %s13680_s4  }
  0xa6   :  { %s13681_s29 = smov [#allocation9]   ;;  %s13496_s14 = scalar_lea.hbm %s14265_s5, 10240 }
  0xa7   :  { %s82_s18 = sshll.u32 %s13681_s29, 4  ;;  %p13497_p2 = scmp.ne.s32.totalorder %s14265_s5, %s13496_s14  ;;  %s83_s18 = int_to_ptr.vmem [resolvable:$true] %s82_s18 }
  0xa8   :  { %p13500_p3 = scmp.lt.u32.totalorder %s13496_s14, %s14265_s5 }
  0xaa   :  { %p13502_p4 = pnand %p13500_p3, %p13497_p2 }
  0xac   :  { %13505 = shalt.err (!%p13502_p4)
}
  0xad   :  { %s13506_s24 = scalar_lea.vmem %s83_s18, 10240  ;;  %p13511_p6 = scmp.lt.s32.totalorder %s83_s18, %s83_s18 }
  0xae   :  { %p13507_p5 = scmp.ne.s32.totalorder %s83_s18, %s13506_s24  ;;  %p13512_p7 = scmp.lt.s32.totalorder %s13506_s24, %s13506_s24 }
  0xb0   :  { %p13513_p8 = por %p13512_p7, %p13511_p6 }
  0xb2   :  { %p13514_p9 = pnand %p13513_p8, %p13507_p5 }
  0xb4   :  { %13517 = shalt.err (!%p13514_p9)
}
  0xb5   :  { %s13682_s3 = smov 128   ;;  %s13683_s23 = smov 8  }
  0xb6   :  { %88 = dma.hbm_to_vmem [thread:$0]  %s14265_s5, 10240, %s83_s18, [#allocation8], %s13682_s3, %s13682_s3, %s13683_s23  }
  0xb7   :  { %s13684_s30 = smov [#allocation12]   ;;  %s13685_s20 = smov [#allocation15]  }
  0xb8   :  { %s104_s6 = sshll.u32 %s13684_s30, 4  ;;  %s126_s28 = sshll.u32 %s13685_s20, 4  ;;  %s105_s6 = int_to_ptr.vmem [resolvable:$true] %s104_s6  ;;  %s13915_s28 = int_to_ptr.vmem [resolvable:$true] %s126_s28 }
  0xb9   :  { %s13518_s4 = scalar_lea.hbm %s14267_s7, 4096 }
  0xba   :  { %p13519_p10 = scmp.ne.s32.totalorder %s14267_s7, %s13518_s4  ;;  %p13522_p11 = scmp.lt.u32.totalorder %s13518_s4, %s14267_s7 }
  0xbc   :  { %p13524_p12 = pnand %p13522_p11, %p13519_p10 }
  0xbe   :  { %13527 = shalt.err (!%p13524_p12)
}
  0xbf   :  { %s13528_s5 = scalar_lea.vmem %s105_s6, 4096  ;;  %p13533_p0 = scmp.lt.s32.totalorder %s105_s6, %s105_s6 }
  0xc0   :  { %p13529_p13 = scmp.ne.s32.totalorder %s105_s6, %s13528_s5  ;;  %p13534_p1 = scmp.lt.s32.totalorder %s13528_s5, %s13528_s5 }
  0xc2   :  { %p13535_p2 = por %p13534_p1, %p13533_p0 }
  0xc4   :  { %p13536_p3 = pnand %p13535_p2, %p13529_p13 }
  0xc6   :  { %13539 = shalt.err (!%p13536_p3)
}
  0xc7   :  { %110 = dma.hbm_to_vmem [thread:$0]  %s14267_s7, 4096, %s105_s6, [#allocation11], %s13682_s3, %s13682_s3, %s13683_s23  }
  0xc8   :  { %s13540_s8 = scalar_lea.hbm %s14269_s9, 4096 }
  0xc9   :  { %p13541_p4 = scmp.ne.s32.totalorder %s14269_s9, %s13540_s8  ;;  %p13544_p5 = scmp.lt.u32.totalorder %s13540_s8, %s14269_s9 }
  0xcb   :  { %p13546_p6 = pnand %p13544_p5, %p13541_p4 }
  0xcd   :  { %13549 = shalt.err (!%p13546_p6)
}
  0xce   :  { %s13550_s12 = scalar_lea.vmem %s13915_s28, 4096  ;;  %p13555_p8 = scmp.lt.s32.totalorder %s13915_s28, %s13915_s28 }
  0xcf   :  { %p13551_p7 = scmp.ne.s32.totalorder %s13915_s28, %s13550_s12  ;;  %p13556_p9 = scmp.lt.s32.totalorder %s13550_s12, %s13550_s12 }
  0xd1   :  { %p13557_p10 = por %p13556_p9, %p13555_p8 }
  0xd3   :  { %p13558_p11 = pnand %p13557_p10, %p13551_p7 }
  0xd5   :  { %13561 = shalt.err (!%p13558_p11)
}
  0xd6   :  { %132 = dma.hbm_to_vmem [thread:$0]  %s14269_s9, 4096, %s13915_s28, [#allocation14], %s13682_s3, %s13682_s3, %s13683_s23  }
  0xd7   :  { %s13686_s6 = smov [#allocation18]   ;;  %s13562_s4 = scalar_lea.hbm %s14271_s11, 2048 }
  0xd8   :  { %s148_s20 = sshll.u32 %s13686_s6, 4  ;;  %p13563_p12 = scmp.ne.s32.totalorder %s14271_s11, %s13562_s4  ;;  %s149_s20 = int_to_ptr.vmem [resolvable:$true] %s148_s20 }
  0xd9   :  { %p13566_p13 = scmp.lt.u32.totalorder %s13562_s4, %s14271_s11 }
  0xdb   :  { %p13568_p0 = pnand %p13566_p13, %p13563_p12 }
  0xdd   :  { %13571 = shalt.err (!%p13568_p0)
}
  0xde   :  { %s13572_s5 = scalar_lea.vmem %s149_s20, 2048  ;;  %p13577_p2 = scmp.lt.s32.totalorder %s149_s20, %s149_s20 }
  0xdf   :  { %p13573_p1 = scmp.ne.s32.totalorder %s149_s20, %s13572_s5  ;;  %p13578_p3 = scmp.lt.s32.totalorder %s13572_s5, %s13572_s5 }
  0xe1   :  { %p13579_p4 = por %p13578_p3, %p13577_p2 }
  0xe3   :  { %p13580_p5 = pnand %p13579_p4, %p13573_p1 }
  0xe5   :  { %13583 = shalt.err (!%p13580_p5)
}
  0xe6   :  { %s13687_s9 = smov 64   ;;  %s13688_s3 = smov 4  }
  0xe7   :  { %154 = dma.hbm_to_vmem [thread:$0]  %s14271_s11, 2048, %s149_s20, [#allocation17], %s13687_s9, %s13687_s9, %s13688_s3  }
  0xe8   :  { %s13689_s18 = smov [#allocation21]   ;;  %s13690_s14 = smov [#allocation24]  }
  0xe9   :  { %s170_s1 = sshll.u32 %s13689_s18, 4  ;;  %s192_s19 = sshll.u32 %s13690_s14, 4  ;;  %s171_s1 = int_to_ptr.vmem [resolvable:$true] %s170_s1  ;;  %s193_s19 = int_to_ptr.vmem [resolvable:$true] %s192_s19 }
  0xea   :  { %s13584_s21 = scalar_lea.hbm %s14273_s13, 1024 }
  0xeb   :  { %p13585_p6 = scmp.ne.s32.totalorder %s14273_s13, %s13584_s21  ;;  %p13588_p7 = scmp.lt.u32.totalorder %s13584_s21, %s14273_s13 }
  0xed   :  { %p13590_p8 = pnand %p13588_p7, %p13585_p6 }
  0xef   :  { %13593 = shalt.err (!%p13590_p8)
}
  0xf0   :  { %s13594_s11 = scalar_lea.vmem %s171_s1, 1024  ;;  %p13599_p10 = scmp.lt.s32.totalorder %s171_s1, %s171_s1 }
  0xf1   :  { %p13595_p9 = scmp.ne.s32.totalorder %s171_s1, %s13594_s11  ;;  %p13600_p11 = scmp.lt.s32.totalorder %s13594_s11, %s13594_s11 }
  0xf3   :  { %p13601_p12 = por %p13600_p11, %p13599_p10 }
  0xf5   :  { %p13602_p13 = pnand %p13601_p12, %p13595_p9 }
  0xf7   :  { %13605 = shalt.err (!%p13602_p13)
}
  0xf8   :  { %176 = dma.hbm_to_vmem [thread:$0]  %s14273_s13, 1024, %s171_s1, [#allocation20], %s13687_s9, %s13687_s9, %s13688_s3  }
  0xf9   :  { %s13606_s25 = scalar_lea.hbm %s14275_s15, 1024 }
  0xfa   :  { %p13607_p0 = scmp.ne.s32.totalorder %s14275_s15, %s13606_s25  ;;  %p13610_p1 = scmp.lt.u32.totalorder %s13606_s25, %s14275_s15 }
  0xfc   :  { %p13612_p2 = pnand %p13610_p1, %p13607_p0 }
  0xfe   :  { %13615 = shalt.err (!%p13612_p2)
}
  0xff   :  { %s13616_s2 = scalar_lea.vmem %s193_s19, 1024  ;;  %p13621_p4 = scmp.lt.s32.totalorder %s193_s19, %s193_s19 }
 0x100   :  { %p13617_p3 = scmp.ne.s32.totalorder %s193_s19, %s13616_s2  ;;  %p13622_p5 = scmp.lt.s32.totalorder %s13616_s2, %s13616_s2 }
 0x102   :  { %p13623_p6 = por %p13622_p5, %p13621_p4 }
 0x104   :  { %p13624_p7 = pnand %p13623_p6, %p13617_p3 }
 0x106   :  { %13627 = shalt.err (!%p13624_p7)
}
 0x107   :  { %198 = dma.hbm_to_vmem [thread:$0]  %s14275_s15, 1024, %s193_s19, [#allocation23], %s13687_s9, %s13687_s9, %s13688_s3  }
 0x108   :  { %s13691_s23 = smov [#allocation25]   ;;  %s13628_s14 = scalar_lea.hbm %s14276_s16, 16 }
 0x109   :  { %s205_s28 = sshll.u32 %s13691_s23, 4  ;;  %p13629_p8 = scmp.ne.s32.totalorder %s14276_s16, %s13628_s14  ;;  %s206_s28 = int_to_ptr.vmem [resolvable:$true] %s205_s28 }
 0x10a   :  { %p13632_p9 = scmp.lt.u32.totalorder %s13628_s14, %s14276_s16 }
 0x10c   :  { %p13634_p10 = pnand %p13632_p9, %p13629_p8 }
 0x10e   :  { %13637 = shalt.err (!%p13634_p10)
}
 0x10f   :  { %s13638_s26 = scalar_lea.vmem %s206_s28, 16  ;;  %s13642_s15 = scalar_lea.vmem %s206_s28, 32 }
 0x110   :  { %p13639_p11 = scmp.ne.s32.totalorder %s206_s28, %s13638_s26  ;;  %p13643_p12 = scmp.lt.s32.totalorder %s206_s28, %s206_s28 }
 0x111   :  { %p13644_p13 = scmp.lt.s32.totalorder %s13642_s15, %s13638_s26 }
 0x113   :  { %p13645_p0 = por %p13644_p13, %p13643_p12 }
 0x115   :  { %p13646_p1 = pnand %p13645_p0, %p13639_p11 }
 0x117   :  { %13649 = shalt.err (!%p13646_p1)
}
 0x118   :  { %208 = dma.hbm_to_vmem [thread:$0]  %s14276_s16, 16, %s206_s28, [#allocation26]  }
 0x119   :  { %13650 = dma.done.wait [#allocation3], 73728  }
 0x11a   :  { %13651 = vsyncadd [#allocation3], 4294893568 }
 0x11b   :  { %13652 = dma.done.wait [#allocation5], 61632  }
 0x11c   :  { %13653 = vsyncadd [#allocation5], 4294905664 }
 0x11d   :  { %13654 = dma.done.wait [#allocation8], 10320  }
 0x11e   :  { %13655 = vsyncadd [#allocation8], 4294956976 }
 0x11f   :  { %13656 = dma.done.wait [#allocation11], 4128  }
 0x120   :  { %13657 = vsyncadd [#allocation11], 4294963168 }
 0x121   :  { %13658 = dma.done.wait [#allocation14], 4128  }
 0x122   :  { %13659 = vsyncadd [#allocation14], 4294963168 }
 0x123   :  { %13660 = dma.done.wait [#allocation17], 2080  }
 0x124   :  { %13661 = vsyncadd [#allocation17], 4294965216 }
 0x125   :  { %13662 = dma.done.wait [#allocation20], 1040  }
 0x126   :  { %13663 = vsyncadd [#allocation20], 4294966256 }
 0x127   :  { %13664 = dma.done.wait [#allocation23], 1040  }
 0x128   :  { %13665 = vsyncadd [#allocation23], 4294966256 }
 0x129   :  { %13666 = dma.done.wait [#allocation26], 16  }
 0x12a   :  { %13667 = vsyncadd [#allocation26], 4294967280  ;;  %v11513_v0 = vld [vmem:[#allocation2 + $0x4] ss:$48 sps:$4 sm:$0xff]   ;;  %v11515_v1 = vld [vmem:[#allocation2 + $0xc] ss:$48 sps:$4 sm:$0xff]  }
 0x12b   :  { %3790 = vmatprep.subr.bf16.mxu0 %v11513_v0  ;;  %v11517_v2 = vld [vmem:[#allocation2] ss:$48 sps:$4 sm:$0xff]   ;;  %v11518_v3 = vld [vmem:[#allocation2 + $0x8] ss:$48 sps:$4 sm:$0xff]   ;;  %3913 = vmatprep.subr.bf16.mxu1 %v11515_v1  ;;  %v11519_v4 = vld [vmem:[#allocation2 + $0x64] ss:$48 sps:$4 sm:$0xff]  }
 0x12c   :  { %3791 = vmatpush1.bf16.msra.mxu0 %v11517_v2  ;;  %3914 = vmatpush1.bf16.msra.mxu1 %v11518_v3  ;;  %v11521_v5 = vld [vmem:[#allocation2 + $0x6c] ss:$48 sps:$4 sm:$0xff]   ;;  %v11523_v6 = vld [vmem:[#allocation2 + $0x60] ss:$48 sps:$4 sm:$0xff]   ;;  %v11524_v7 = vld [vmem:[#allocation2 + $0x68] ss:$48 sps:$4 sm:$0xff]  }
 0x12d   :  { %3792 = vmatprep.subr.bf16.mxu0 %v11519_v4  ;;  %3915 = vmatprep.subr.bf16.mxu1 %v11521_v5  ;;  %v11525_v8 = vld [vmem:[#allocation2 + $0xc4] ss:$48 sps:$4 sm:$0xff]   ;;  %v11527_v9 = vld [vmem:[#allocation2 + $0xcc] ss:$48 sps:$4 sm:$0xff]   ;;  %v11529_v10 = vld [vmem:[#allocation2 + $0xc0] ss:$48 sps:$4 sm:$0xff]  }
 0x12e   :  { %v11530_v11 = vld [vmem:[#allocation2 + $0xc8] ss:$48 sps:$4 sm:$0xff]   ;;  %v11531_v12 = vld [vmem:[#allocation2 + $0x124] ss:$48 sps:$4 sm:$0xff]   ;;  %v11533_v13 = vld [vmem:[#allocation2 + $0x12c] ss:$48 sps:$4 sm:$0xff]  }
 0x12f   :  { %v11535_v14 = vld [vmem:[#allocation2 + $0x120] ss:$48 sps:$4 sm:$0xff]   ;;  %v11536_v15 = vld [vmem:[#allocation2 + $0x128] ss:$48 sps:$4 sm:$0xff]   ;;  %v11537_v16 = vld [vmem:[#allocation2 + $0x184] ss:$48 sps:$4 sm:$0xff]  }
 0x130   :  { %3793 = vmatpush1.bf16.msra.mxu0 %v11523_v6  ;;  %3916 = vmatpush1.bf16.msra.mxu1 %v11524_v7  ;;  %v11539_v17 = vld [vmem:[#allocation2 + $0x18c] ss:$48 sps:$4 sm:$0xff]   ;;  %v11541_v18 = vld [vmem:[#allocation2 + $0x180] ss:$48 sps:$4 sm:$0xff]   ;;  %v11542_v19 = vld [vmem:[#allocation2 + $0x188] ss:$48 sps:$4 sm:$0xff]  }
 0x131   :  { %3794 = vmatprep.subr.bf16.mxu0 %v11525_v8  ;;  %3917 = vmatprep.subr.bf16.mxu1 %v11527_v9  ;;  %v11543_v20 = vld [vmem:[#allocation2 + $0x1e4] ss:$48 sps:$4 sm:$0xff]   ;;  %v11545_v21 = vld [vmem:[#allocation2 + $0x1ec] ss:$48 sps:$4 sm:$0xff]   ;;  %v11547_v22 = vld [vmem:[#allocation2 + $0x1e0] ss:$48 sps:$4 sm:$0xff]  }
 0x132   :  { %v11548_v23 = vld [vmem:[#allocation2 + $0x1e8] ss:$48 sps:$4 sm:$0xff]   ;;  %v11549_v24 = vld [vmem:[#allocation2 + $0x244] ss:$48 sps:$4 sm:$0xff]   ;;  %v11551_v25 = vld [vmem:[#allocation2 + $0x24c] ss:$48 sps:$4 sm:$0xff]  }
 0x133   :  { %v11553_v26 = vld [vmem:[#allocation2 + $0x240] ss:$48 sps:$4 sm:$0xff]   ;;  %v11554_v27 = vld [vmem:[#allocation2 + $0x248] ss:$48 sps:$4 sm:$0xff]   ;;  %v11555_v28 = vld [vmem:[#allocation2 + $0x2a4] ss:$48 sps:$4 sm:$0xff]  }
 0x134   :  { %3795 = vmatpush1.bf16.msra.mxu0 %v11529_v10  ;;  %3918 = vmatpush1.bf16.msra.mxu1 %v11530_v11  ;;  %v11557_v29 = vld [vmem:[#allocation2 + $0x2ac] ss:$48 sps:$4 sm:$0xff]   ;;  %v11559_v30 = vld [vmem:[#allocation2 + $0x2a0] ss:$48 sps:$4 sm:$0xff]   ;;  %v11560_v31 = vld [vmem:[#allocation2 + $0x2a8] ss:$48 sps:$4 sm:$0xff]  }
 0x135   :  { %3796 = vmatprep.subr.bf16.mxu0 %v11531_v12  ;;  %3919 = vmatprep.subr.bf16.mxu1 %v11533_v13  ;;  %v11561_v32 = vld [vmem:[#allocation2 + $0x304] ss:$48 sps:$4 sm:$0xff]   ;;  %v11563_v33 = vld [vmem:[#allocation2 + $0x30c] ss:$48 sps:$4 sm:$0xff]   ;;  %v11565_v34 = vld [vmem:[#allocation2 + $0x300] ss:$48 sps:$4 sm:$0xff]  }
 0x136   :  { %v11566_v35 = vld [vmem:[#allocation2 + $0x308] ss:$48 sps:$4 sm:$0xff]   ;;  %v11567_v36 = vld [vmem:[#allocation2 + $0x364] ss:$48 sps:$4 sm:$0xff]   ;;  %v11569_v37 = vld [vmem:[#allocation2 + $0x36c] ss:$48 sps:$4 sm:$0xff]  }
 0x137   :  { %v11571_v38 = vld [vmem:[#allocation2 + $0x360] ss:$48 sps:$4 sm:$0xff]   ;;  %v11572_v39 = vld [vmem:[#allocation2 + $0x368] ss:$48 sps:$4 sm:$0xff]   ;;  %v11573_v40 = vld [vmem:[#allocation2 + $0x3c4] ss:$48 sps:$4 sm:$0xff]  }
 0x138   :  { %3797 = vmatpush1.bf16.msra.mxu0 %v11535_v14  ;;  %3920 = vmatpush1.bf16.msra.mxu1 %v11536_v15  ;;  %v11575_v41 = vld [vmem:[#allocation2 + $0x3cc] ss:$48 sps:$4 sm:$0xff]   ;;  %v11577_v42 = vld [vmem:[#allocation2 + $0x3c0] ss:$48 sps:$4 sm:$0xff]   ;;  %v11578_v43 = vld [vmem:[#allocation2 + $0x3c8] ss:$48 sps:$4 sm:$0xff]  }
 0x139   :  { %3798 = vmatprep.subr.bf16.mxu0 %v11537_v16  ;;  %3921 = vmatprep.subr.bf16.mxu1 %v11539_v17  ;;  %v11579_v44 = vld [vmem:[#allocation2 + $0x424] ss:$48 sps:$4 sm:$0xff]   ;;  %v11581_v45 = vld [vmem:[#allocation2 + $0x42c] ss:$48 sps:$4 sm:$0xff]   ;;  %s14283_s12 = sld [smem:[#allocation36_spill]]  ;;  %vm13694_vm0 = vmmov 0  }
 0x13a   :  { %v11583_v47 = vld [vmem:[#allocation2 + $0x420] ss:$48 sps:$4 sm:$0xff]   ;;  %v11584_v49 = vld [vmem:[#allocation2 + $0x428] ss:$48 sps:$4 sm:$0xff]   ;;  %v11585_v50 = vld [vmem:[#allocation2 + $0x484] ss:$48 sps:$4 sm:$0xff]  }
 0x13b   :  { %v11587_v51 = vld [vmem:[#allocation2 + $0x48c] ss:$48 sps:$4 sm:$0xff]   ;;  %v11589_v52 = vld [vmem:[#allocation2 + $0x480] ss:$48 sps:$4 sm:$0xff]   ;;  %v11590_v53 = vld [vmem:[#allocation2 + $0x488] ss:$48 sps:$4 sm:$0xff]  }
 0x13c   :  { %3799 = vmatpush1.bf16.msra.mxu0 %v11541_v18  ;;  %3922 = vmatpush1.bf16.msra.mxu1 %v11542_v19  ;;  %v11591_v54 = vld [vmem:[#allocation2 + $0x4e4] ss:$48 sps:$4 sm:$0xff]   ;;  %v11593_v55 = vld [vmem:[#allocation2 + $0x4ec] ss:$48 sps:$4 sm:$0xff]   ;;  %v11595_v56 = vld [vmem:[#allocation2 + $0x4e0] ss:$48 sps:$4 sm:$0xff]  }
 0x13d   :  { %3800 = vmatprep.subr.bf16.mxu0 %v11543_v20  ;;  %3923 = vmatprep.subr.bf16.mxu1 %v11545_v21  ;;  %v11596_v57 = vld [vmem:[#allocation2 + $0x4e8] ss:$48 sps:$4 sm:$0xff]   ;;  %v11597_v58 = vld [vmem:[#allocation2 + $0x544] ss:$48 sps:$4 sm:$0xff]   ;;  %v11599_v59 = vld [vmem:[#allocation2 + $0x54c] ss:$48 sps:$4 sm:$0xff]  }
 0x13e   :  { %v11601_v60 = vld [vmem:[#allocation2 + $0x540] ss:$48 sps:$4 sm:$0xff]   ;;  %v11602_v61 = vld [vmem:[#allocation2 + $0x548] ss:$48 sps:$4 sm:$0xff]   ;;  %v11603_v62 = vld [vmem:[#allocation2 + $0x5a4] ss:$48 sps:$4 sm:$0xff]  }
 0x13f   :  { %v259_v46 = vld [vmem:[%s14283_s12 + $0x8] sm:$0xff]  ;;  %v11607_v0 = vld [vmem:[#allocation2 + $0x5a0] ss:$48 sps:$4 sm:$0xff]   ;;  %v11611_v3 = vld [vmem:[#allocation2 + $0x604] ss:$48 sps:$4 sm:$0xff]  }
 0x140   :  { %3801 = vmatpush1.bf16.msra.mxu0 %v11547_v22  ;;  %3924 = vmatpush1.bf16.msra.mxu1 %v11548_v23  ;;  %v14012_v48 = vpack.c.bf16 %v259_v46, %v259_v46  ;;  %v11605_v63 = vld [vmem:[#allocation2 + $0x5ac] ss:$48 sps:$4 sm:$0xff]   ;;  %v11608_v1 = vld [vmem:[#allocation2 + $0x5a8] ss:$48 sps:$4 sm:$0xff]   ;;  %v258_v2 = vld [vmem:[%s14283_s12] sm:$0xff] }
 0x141   :  { %3802 = vmatprep.subr.bf16.mxu0 %v11549_v24  ;;  %3925 = vmatprep.subr.bf16.mxu1 %v11551_v25  ;;  %v11614_v4 = vld [vmem:[#allocation2 + $0x60c] ss:$48 sps:$4 sm:$0xff]   ;;  %v14019_v5 = vpack.c.bf16 %v258_v2, %v258_v2  ;;  %v11609_v6 = vld [vmem:[#allocation2 + $0x600] ss:$48 sps:$4 sm:$0xff]   ;;  %v11612_v7 = vld [vmem:[#allocation2 + $0x608] ss:$48 sps:$4 sm:$0xff]  }
 0x142   :  { %3822 = vmatprep.mubr.bf16.mxu0 %v14012_v48  ;;  %3945 = vmatprep.mubr.bf16.mxu1 %v14012_v48  ;;  %v11617_v8 = vld [vmem:[#allocation2 + $0x664] ss:$48 sps:$4 sm:$0xff]   ;;  %v11620_v9 = vld [vmem:[#allocation2 + $0x66c] ss:$48 sps:$4 sm:$0xff]   ;;  %v11615_v10 = vld [vmem:[#allocation2 + $0x660] ss:$48 sps:$4 sm:$0xff]  }
 0x143   :  { %v11618_v11 = vld [vmem:[#allocation2 + $0x668] ss:$48 sps:$4 sm:$0xff]   ;;  %v11623_v12 = vld [vmem:[#allocation2 + $0x6c4] ss:$48 sps:$4 sm:$0xff]   ;;  %v11626_v13 = vld [vmem:[#allocation2 + $0x6cc] ss:$48 sps:$4 sm:$0xff]  }
 0x144   :  { %3803 = vmatpush1.bf16.msra.mxu0 %v11553_v26  ;;  %3926 = vmatpush1.bf16.msra.mxu1 %v11554_v27  ;;  %v11621_v14 = vld [vmem:[#allocation2 + $0x6c0] ss:$48 sps:$4 sm:$0xff]   ;;  %v11624_v15 = vld [vmem:[#allocation2 + $0x6c8] ss:$48 sps:$4 sm:$0xff]   ;;  %v11629_v16 = vld [vmem:[#allocation2 + $0x724] ss:$48 sps:$4 sm:$0xff]  }
 0x145   :  { %3804 = vmatprep.subr.bf16.mxu0 %v11555_v28  ;;  %3927 = vmatprep.subr.bf16.mxu1 %v11557_v29  ;;  %v11632_v17 = vld [vmem:[#allocation2 + $0x72c] ss:$48 sps:$4 sm:$0xff]   ;;  %v11627_v18 = vld [vmem:[#allocation2 + $0x720] ss:$48 sps:$4 sm:$0xff]   ;;  %v11630_v19 = vld [vmem:[#allocation2 + $0x728] ss:$48 sps:$4 sm:$0xff]  }
 0x146   :  { %v11635_v20 = vld [vmem:[#allocation2 + $0x784] ss:$48 sps:$4 sm:$0xff]   ;;  %v11638_v21 = vld [vmem:[#allocation2 + $0x78c] ss:$48 sps:$4 sm:$0xff]   ;;  %v11633_v22 = vld [vmem:[#allocation2 + $0x780] ss:$48 sps:$4 sm:$0xff]  }
 0x147   :  { %v11636_v23 = vld [vmem:[#allocation2 + $0x788] ss:$48 sps:$4 sm:$0xff]   ;;  %v11641_v24 = vld [vmem:[#allocation2 + $0x7e4] ss:$48 sps:$4 sm:$0xff]   ;;  %v11644_v25 = vld [vmem:[#allocation2 + $0x7ec] ss:$48 sps:$4 sm:$0xff]  }
 0x148   :  { %3805 = vmatpush1.bf16.msra.mxu0 %v11559_v30  ;;  %3928 = vmatpush1.bf16.msra.mxu1 %v11560_v31  ;;  %v11639_v26 = vld [vmem:[#allocation2 + $0x7e0] ss:$48 sps:$4 sm:$0xff]   ;;  %v11642_v27 = vld [vmem:[#allocation2 + $0x7e8] ss:$48 sps:$4 sm:$0xff]   ;;  %v11647_v28 = vld [vmem:[#allocation2 + $0x844] ss:$48 sps:$4 sm:$0xff]  }
 0x149   :  { %3806 = vmatprep.subr.bf16.mxu0 %v11561_v32  ;;  %3929 = vmatprep.subr.bf16.mxu1 %v11563_v33  ;;  %v11650_v29 = vld [vmem:[#allocation2 + $0x84c] ss:$48 sps:$4 sm:$0xff]   ;;  %v11645_v31 = vld [vmem:[#allocation2 + $0x840] ss:$48 sps:$4 sm:$0xff]   ;;  %v11648_v33 = vld [vmem:[#allocation2 + $0x848] ss:$48 sps:$4 sm:$0xff]  }
 0x14a   :  { %v261_v30 = vld [vmem:[%s14283_s12 + $0x18] sm:$0xff]  ;;  %v11671_v46 = vld [vmem:[#allocation2 + $0x9c4] ss:$48 sps:$4 sm:$0xff]  }
 0x14b   :  { %v14026_v32 = vpack.c.bf16 %v261_v30, %v261_v30  ;;  %v11696_v2 = vld [vmem:[#allocation2 + $0xb48] ss:$48 sps:$4 sm:$0xff]   ;;  %v11729_v30 = vld [vmem:[#allocation2 + $0xd80] ss:$48 sps:$4 sm:$0xff]  }
 0x14c   :  { %3807 = vmatpush1.bf16.msra.mxu0 %v11565_v34  ;;  %3930 = vmatpush1.bf16.msra.mxu1 %v11566_v35  ;;  %v11653_v34 = vld [vmem:[#allocation2 + $0x8a4] ss:$48 sps:$4 sm:$0xff]   ;;  %v11656_v35 = vld [vmem:[#allocation2 + $0x8ac] ss:$48 sps:$4 sm:$0xff]  }
 0x14d   :  { %3808 = vmatprep.subr.bf16.mxu0 %v11567_v36  ;;  %3931 = vmatprep.subr.bf16.mxu1 %v11569_v37  ;;  %v11651_v36 = vld [vmem:[#allocation2 + $0x8a0] ss:$48 sps:$4 sm:$0xff]   ;;  %v11654_v37 = vld [vmem:[#allocation2 + $0x8a8] ss:$48 sps:$4 sm:$0xff]  }
 0x150   :  { %3809 = vmatpush1.bf16.msra.mxu0 %v11571_v38  ;;  %3932 = vmatpush1.bf16.msra.mxu1 %v11572_v39  ;;  %v11659_v38 = vld [vmem:[#allocation2 + $0x904] ss:$48 sps:$4 sm:$0xff]   ;;  %v11662_v39 = vld [vmem:[#allocation2 + $0x90c] ss:$48 sps:$4 sm:$0xff]  }
 0x151   :  { %3810 = vmatprep.subr.bf16.mxu0 %v11573_v40  ;;  %3933 = vmatprep.subr.bf16.mxu1 %v11575_v41  ;;  %v11657_v40 = vld [vmem:[#allocation2 + $0x900] ss:$48 sps:$4 sm:$0xff]   ;;  %v11660_v41 = vld [vmem:[#allocation2 + $0x908] ss:$48 sps:$4 sm:$0xff]  }
 0x154   :  { %3811 = vmatpush1.bf16.msra.mxu0 %v11577_v42  ;;  %3934 = vmatpush1.bf16.msra.mxu1 %v11578_v43  ;;  %v11665_v42 = vld [vmem:[#allocation2 + $0x964] ss:$48 sps:$4 sm:$0xff]   ;;  %v11668_v43 = vld [vmem:[#allocation2 + $0x96c] ss:$48 sps:$4 sm:$0xff]  }
 0x155   :  { %3812 = vmatprep.subr.bf16.mxu0 %v11579_v44  ;;  %3935 = vmatprep.subr.bf16.mxu1 %v11581_v45  ;;  %v11663_v44 = vld [vmem:[#allocation2 + $0x960] ss:$48 sps:$4 sm:$0xff]   ;;  %v11666_v45 = vld [vmem:[#allocation2 + $0x968] ss:$48 sps:$4 sm:$0xff]  }
 0x158   :  { %3813 = vmatpush1.bf16.msra.mxu0 %v11583_v47  ;;  %3936 = vmatpush1.bf16.msra.mxu1 %v11584_v49  ;;  %v11674_v47 = vld [vmem:[#allocation2 + $0x9cc] ss:$48 sps:$4 sm:$0xff]   ;;  %v11669_v49 = vld [vmem:[#allocation2 + $0x9c0] ss:$48 sps:$4 sm:$0xff]  }
 0x159   :  { %3814 = vmatprep.subr.bf16.mxu0 %v11585_v50  ;;  %3937 = vmatprep.subr.bf16.mxu1 %v11587_v51  ;;  %v11672_v50 = vld [vmem:[#allocation2 + $0x9c8] ss:$48 sps:$4 sm:$0xff]   ;;  %v11677_v51 = vld [vmem:[#allocation2 + $0xa24] ss:$48 sps:$4 sm:$0xff]  }
 0x15c   :  { %3815 = vmatpush1.bf16.msra.mxu0 %v11589_v52  ;;  %3938 = vmatpush1.bf16.msra.mxu1 %v11590_v53  ;;  %v11680_v52 = vld [vmem:[#allocation2 + $0xa2c] ss:$48 sps:$4 sm:$0xff]   ;;  %v11675_v53 = vld [vmem:[#allocation2 + $0xa20] ss:$48 sps:$4 sm:$0xff]  }
 0x15d   :  { %3816 = vmatprep.subr.bf16.mxu0 %v11591_v54  ;;  %3939 = vmatprep.subr.bf16.mxu1 %v11593_v55  ;;  %v11678_v54 = vld [vmem:[#allocation2 + $0xa28] ss:$48 sps:$4 sm:$0xff]   ;;  %v11683_v55 = vld [vmem:[#allocation2 + $0xa84] ss:$48 sps:$4 sm:$0xff]  }
 0x160   :  { %3817 = vmatpush1.bf16.msra.mxu0 %v11595_v56  ;;  %3940 = vmatpush1.bf16.msra.mxu1 %v11596_v57  ;;  %v11686_v56 = vld [vmem:[#allocation2 + $0xa8c] ss:$48 sps:$4 sm:$0xff]   ;;  %v11681_v57 = vld [vmem:[#allocation2 + $0xa80] ss:$48 sps:$4 sm:$0xff]  }
 0x161   :  { %3818 = vmatprep.subr.bf16.mxu0 %v11597_v58  ;;  %3941 = vmatprep.subr.bf16.mxu1 %v11599_v59  ;;  %v11684_v58 = vld [vmem:[#allocation2 + $0xa88] ss:$48 sps:$4 sm:$0xff]   ;;  %v11689_v59 = vld [vmem:[#allocation2 + $0xae4] ss:$48 sps:$4 sm:$0xff]  }
 0x164   :  { %3819 = vmatpush1.bf16.msra.mxu0 %v11601_v60  ;;  %3942 = vmatpush1.bf16.msra.mxu1 %v11602_v61  ;;  %v11692_v60 = vld [vmem:[#allocation2 + $0xaec] ss:$48 sps:$4 sm:$0xff]   ;;  %v11687_v61 = vld [vmem:[#allocation2 + $0xae0] ss:$48 sps:$4 sm:$0xff]  }
 0x165   :  { %3820 = vmatprep.subr.bf16.mxu0 %v11603_v62  ;;  %3943 = vmatprep.subr.bf16.mxu1 %v11605_v63  ;;  %v11690_v62 = vld [vmem:[#allocation2 + $0xae8] ss:$48 sps:$4 sm:$0xff]   ;;  %v11695_v63 = vld [vmem:[#allocation2 + $0xb44] ss:$48 sps:$4 sm:$0xff]  }
 0x168   :  { %3821 = vmatpush1.bf16.msra.mxu0 %v11607_v0  ;;  %3944 = vmatpush1.bf16.msra.mxu1 %v11608_v1  ;;  %v11698_v0 = vld [vmem:[#allocation2 + $0xb4c] ss:$48 sps:$4 sm:$0xff]   ;;  %v11693_v1 = vld [vmem:[#allocation2 + $0xb40] ss:$48 sps:$4 sm:$0xff]  }
 0x169   :  { %3831 = vmatprep.subr.bf16.mxu0 %v11611_v3  ;;  %3954 = vmatprep.subr.bf16.mxu1 %v11614_v4  ;;  %v11701_v3 = vld [vmem:[#allocation2 + $0xba4] ss:$48 sps:$4 sm:$0xff]   ;;  %v11704_v4 = vld [vmem:[#allocation2 + $0xbac] ss:$48 sps:$4 sm:$0xff]  }
 0x16b   :  { %3823 = vmatmul.mubr.bf16.vlgmr.msra.gmra.mrb[0].mxu0 %v14019_v5  ;;  %3946 = vmatmul.mubr.bf16.vlgmr.msra.gmra.mrb[0].mxu1 %v14019_v5 }
 0x16c   :  { %3832 = vmatpush1.bf16.msra.mxu0 %v11609_v6  ;;  %3955 = vmatpush1.bf16.msra.mxu1 %v11612_v7  ;;  %v11699_v6 = vld [vmem:[#allocation2 + $0xba0] ss:$48 sps:$4 sm:$0xff]   ;;  %v11702_v7 = vld [vmem:[#allocation2 + $0xba8] ss:$48 sps:$4 sm:$0xff]  }
 0x16d   :  { %3833 = vmatprep.subr.bf16.mxu0 %v11617_v8  ;;  %3956 = vmatprep.subr.bf16.mxu1 %v11620_v9  ;;  %v11707_v8 = vld [vmem:[#allocation2 + $0xc04] ss:$48 sps:$4 sm:$0xff]  }
 0x16e   :  { %3863 = vmatprep.mubr.bf16.mxu0 %v14026_v32  ;;  %3986 = vmatprep.mubr.bf16.mxu1 %v14026_v32  ;;  %v260_v9 = vld [vmem:[%s14283_s12 + $0x10] sm:$0xff] }
 0x170   :  { %3834 = vmatpush1.bf16.msra.mxu0 %v11615_v10  ;;  %3957 = vmatpush1.bf16.msra.mxu1 %v11618_v11  ;;  %v11710_v10 = vld [vmem:[#allocation2 + $0xc0c] ss:$48 sps:$4 sm:$0xff]   ;;  %v11705_v11 = vld [vmem:[#allocation2 + $0xc00] ss:$48 sps:$4 sm:$0xff]  }
 0x171   :  { %3835 = vmatprep.subr.bf16.mxu0 %v11623_v12  ;;  %3958 = vmatprep.subr.bf16.mxu1 %v11626_v13  ;;  %v14033_v12 = vpack.c.bf16 %v260_v9, %v260_v9  ;;  %v11708_v13 = vld [vmem:[#allocation2 + $0xc08] ss:$48 sps:$4 sm:$0xff]   ;;  %v11789_v9 = vld [vmem:[#allocation2 + $0x1140] ss:$48 sps:$4 sm:$0xff]  }
 0x174   :  { %3836 = vmatpush1.bf16.msra.mxu0 %v11621_v14  ;;  %3959 = vmatpush1.bf16.msra.mxu1 %v11624_v15  ;;  %v11713_v14 = vld [vmem:[#allocation2 + $0xc64] ss:$48 sps:$4 sm:$0xff]   ;;  %v11716_v15 = vld [vmem:[#allocation2 + $0xc6c] ss:$48 sps:$4 sm:$0xff]  }
 0x175   :  { %3837 = vmatprep.subr.bf16.mxu0 %v11629_v16  ;;  %3960 = vmatprep.subr.bf16.mxu1 %v11632_v17  ;;  %v263_v16 = vld [vmem:[%s14283_s12 + $0x28] sm:$0xff] }
 0x176   :  { %v14038_v17 = vpack.c.bf16 %v263_v16, %v263_v16  ;;  %v262_v16 = vld [vmem:[%s14283_s12 + $0x20] sm:$0xff] }
 0x178   :  { %3838 = vmatpush1.bf16.msra.mxu0 %v11627_v18  ;;  %3961 = vmatpush1.bf16.msra.mxu1 %v11630_v19  ;;  %v11711_v18 = vld [vmem:[#allocation2 + $0xc60] ss:$48 sps:$4 sm:$0xff]   ;;  %v11714_v19 = vld [vmem:[#allocation2 + $0xc68] ss:$48 sps:$4 sm:$0xff]  }
 0x179   :  { %3839 = vmatprep.subr.bf16.mxu0 %v11635_v20  ;;  %3962 = vmatprep.subr.bf16.mxu1 %v11638_v21  ;;  %v11719_v20 = vld [vmem:[#allocation2 + $0xcc4] ss:$48 sps:$4 sm:$0xff]   ;;  %v11722_v21 = vld [vmem:[#allocation2 + $0xccc] ss:$48 sps:$4 sm:$0xff]  }
 0x17c   :  { %3840 = vmatpush1.bf16.msra.mxu0 %v11633_v22  ;;  %3963 = vmatpush1.bf16.msra.mxu1 %v11636_v23  ;;  %v11717_v22 = vld [vmem:[#allocation2 + $0xcc0] ss:$48 sps:$4 sm:$0xff]   ;;  %v11720_v23 = vld [vmem:[#allocation2 + $0xcc8] ss:$48 sps:$4 sm:$0xff]  }
 0x17d   :  { %3841 = vmatprep.subr.bf16.mxu0 %v11641_v24  ;;  %3964 = vmatprep.subr.bf16.mxu1 %v11644_v25  ;;  %v11725_v24 = vld [vmem:[#allocation2 + $0xd24] ss:$48 sps:$4 sm:$0xff]   ;;  %v11728_v25 = vld [vmem:[#allocation2 + $0xd2c] ss:$48 sps:$4 sm:$0xff]  }
 0x180   :  { %3842 = vmatpush1.bf16.msra.mxu0 %v11639_v26  ;;  %3965 = vmatpush1.bf16.msra.mxu1 %v11642_v27  ;;  %v11723_v26 = vld [vmem:[#allocation2 + $0xd20] ss:$48 sps:$4 sm:$0xff]   ;;  %v11726_v27 = vld [vmem:[#allocation2 + $0xd28] ss:$48 sps:$4 sm:$0xff]  }
 0x181   :  { %3843 = vmatprep.subr.bf16.mxu0 %v11647_v28  ;;  %3966 = vmatprep.subr.bf16.mxu1 %v11650_v29  ;;  %v11731_v28 = vld [vmem:[#allocation2 + $0xd84] ss:$48 sps:$4 sm:$0xff]   ;;  %v11734_v29 = vld [vmem:[#allocation2 + $0xd8c] ss:$48 sps:$4 sm:$0xff]  }
 0x184   :  { %3844 = vmatpush1.bf16.msra.mxu0 %v11645_v31  ;;  %3967 = vmatpush1.bf16.msra.mxu1 %v11648_v33  ;;  %v11732_v31 = vld [vmem:[#allocation2 + $0xd88] ss:$48 sps:$4 sm:$0xff]   ;;  %v11737_v33 = vld [vmem:[#allocation2 + $0xde4] ss:$48 sps:$4 sm:$0xff]  }
 0x185   :  { %3845 = vmatprep.subr.bf16.mxu0 %v11653_v34  ;;  %3968 = vmatprep.subr.bf16.mxu1 %v11656_v35  ;;  %v11740_v34 = vld [vmem:[#allocation2 + $0xdec] ss:$48 sps:$4 sm:$0xff]   ;;  %v11735_v35 = vld [vmem:[#allocation2 + $0xde0] ss:$48 sps:$4 sm:$0xff]  }
 0x188   :  { %3846 = vmatpush1.bf16.msra.mxu0 %v11651_v36  ;;  %3969 = vmatpush1.bf16.msra.mxu1 %v11654_v37  ;;  %v11738_v36 = vld [vmem:[#allocation2 + $0xde8] ss:$48 sps:$4 sm:$0xff]   ;;  %v11743_v37 = vld [vmem:[#allocation2 + $0xe44] ss:$48 sps:$4 sm:$0xff]  }
 0x189   :  { %3847 = vmatprep.subr.bf16.mxu0 %v11659_v38  ;;  %3970 = vmatprep.subr.bf16.mxu1 %v11662_v39  ;;  %v11746_v38 = vld [vmem:[#allocation2 + $0xe4c] ss:$48 sps:$4 sm:$0xff]   ;;  %v11741_v39 = vld [vmem:[#allocation2 + $0xe40] ss:$48 sps:$4 sm:$0xff]  }
 0x18c   :  { %3848 = vmatpush1.bf16.msra.mxu0 %v11657_v40  ;;  %3971 = vmatpush1.bf16.msra.mxu1 %v11660_v41  ;;  %v11744_v40 = vld [vmem:[#allocation2 + $0xe48] ss:$48 sps:$4 sm:$0xff]   ;;  %v11749_v41 = vld [vmem:[#allocation2 + $0xea4] ss:$48 sps:$4 sm:$0xff]  }
 0x18d   :  { %3849 = vmatprep.subr.bf16.mxu0 %v11665_v42  ;;  %3972 = vmatprep.subr.bf16.mxu1 %v11668_v43  ;;  %v11752_v42 = vld [vmem:[#allocation2 + $0xeac] ss:$48 sps:$4 sm:$0xff]   ;;  %v11747_v43 = vld [vmem:[#allocation2 + $0xea0] ss:$48 sps:$4 sm:$0xff]  }
 0x190   :  { %3850 = vmatpush1.bf16.msra.mxu0 %v11663_v44  ;;  %3973 = vmatpush1.bf16.msra.mxu1 %v11666_v45  ;;  %v11750_v44 = vld [vmem:[#allocation2 + $0xea8] ss:$48 sps:$4 sm:$0xff]   ;;  %v11755_v45 = vld [vmem:[#allocation2 + $0xf04] ss:$48 sps:$4 sm:$0xff]  }
 0x191   :  { %3851 = vmatprep.subr.bf16.mxu0 %v11671_v46  ;;  %3974 = vmatprep.subr.bf16.mxu1 %v11674_v47  ;;  %v11758_v46 = vld [vmem:[#allocation2 + $0xf0c] ss:$48 sps:$4 sm:$0xff]   ;;  %v11753_v47 = vld [vmem:[#allocation2 + $0xf00] ss:$48 sps:$4 sm:$0xff]  }
 0x194   :  { %3852 = vmatpush1.bf16.msra.mxu0 %v11669_v49  ;;  %3975 = vmatpush1.bf16.msra.mxu1 %v11672_v50  ;;  %v11756_v49 = vld [vmem:[#allocation2 + $0xf08] ss:$48 sps:$4 sm:$0xff]   ;;  %v11761_v50 = vld [vmem:[#allocation2 + $0xf64] ss:$48 sps:$4 sm:$0xff]  }
 0x195   :  { %3853 = vmatprep.subr.bf16.mxu0 %v11677_v51  ;;  %3976 = vmatprep.subr.bf16.mxu1 %v11680_v52  ;;  %v11764_v51 = vld [vmem:[#allocation2 + $0xf6c] ss:$48 sps:$4 sm:$0xff]   ;;  %v11759_v52 = vld [vmem:[#allocation2 + $0xf60] ss:$48 sps:$4 sm:$0xff]  }
 0x198   :  { %3854 = vmatpush1.bf16.msra.mxu0 %v11675_v53  ;;  %3977 = vmatpush1.bf16.msra.mxu1 %v11678_v54  ;;  %v11762_v53 = vld [vmem:[#allocation2 + $0xf68] ss:$48 sps:$4 sm:$0xff]   ;;  %v11767_v54 = vld [vmem:[#allocation2 + $0xfc4] ss:$48 sps:$4 sm:$0xff]  }
 0x199   :  { %3855 = vmatprep.subr.bf16.mxu0 %v11683_v55  ;;  %3978 = vmatprep.subr.bf16.mxu1 %v11686_v56  ;;  %v11770_v55 = vld [vmem:[#allocation2 + $0xfcc] ss:$48 sps:$4 sm:$0xff]   ;;  %v11765_v56 = vld [vmem:[#allocation2 + $0xfc0] ss:$48 sps:$4 sm:$0xff]  }
 0x19c   :  { %3856 = vmatpush1.bf16.msra.mxu0 %v11681_v57  ;;  %3979 = vmatpush1.bf16.msra.mxu1 %v11684_v58  ;;  %v11768_v57 = vld [vmem:[#allocation2 + $0xfc8] ss:$48 sps:$4 sm:$0xff]   ;;  %v11773_v58 = vld [vmem:[#allocation2 + $0x1024] ss:$48 sps:$4 sm:$0xff]  }
 0x19d   :  { %3857 = vmatprep.subr.bf16.mxu0 %v11689_v59  ;;  %3980 = vmatprep.subr.bf16.mxu1 %v11692_v60  ;;  %v11776_v59 = vld [vmem:[#allocation2 + $0x102c] ss:$48 sps:$4 sm:$0xff]   ;;  %v11771_v60 = vld [vmem:[#allocation2 + $0x1020] ss:$48 sps:$4 sm:$0xff]  }
 0x1a0   :  { %3858 = vmatpush1.bf16.msra.mxu0 %v11687_v61  ;;  %3981 = vmatpush1.bf16.msra.mxu1 %v11690_v62  ;;  %v11774_v61 = vld [vmem:[#allocation2 + $0x1028] ss:$48 sps:$4 sm:$0xff]   ;;  %v11779_v62 = vld [vmem:[#allocation2 + $0x1084] ss:$48 sps:$4 sm:$0xff]  }
 0x1a1   :  { %3859 = vmatprep.subr.bf16.mxu0 %v11695_v63  ;;  %3982 = vmatprep.subr.bf16.mxu1 %v11698_v0  ;;  %v11782_v63 = vld [vmem:[#allocation2 + $0x108c] ss:$48 sps:$4 sm:$0xff]   ;;  %v11777_v0 = vld [vmem:[#allocation2 + $0x1080] ss:$48 sps:$4 sm:$0xff]  }
 0x1a4   :  { %3860 = vmatpush1.bf16.msra.mxu0 %v11693_v1  ;;  %3983 = vmatpush1.bf16.msra.mxu1 %v11696_v2  ;;  %v11780_v1 = vld [vmem:[#allocation2 + $0x1088] ss:$48 sps:$4 sm:$0xff]   ;;  %v11785_v2 = vld [vmem:[#allocation2 + $0x10e4] ss:$48 sps:$4 sm:$0xff]  }
 0x1a5   :  { %3861 = vmatprep.subr.bf16.mxu0 %v11701_v3  ;;  %3984 = vmatprep.subr.bf16.mxu1 %v11704_v4  ;;  %v11788_v3 = vld [vmem:[#allocation2 + $0x10ec] ss:$48 sps:$4 sm:$0xff]   ;;  %v11783_v4 = vld [vmem:[#allocation2 + $0x10e0] ss:$48 sps:$4 sm:$0xff]  }
 0x1a8   :  { %3862 = vmatpush1.bf16.msra.mxu0 %v11699_v6  ;;  %3985 = vmatpush1.bf16.msra.mxu1 %v11702_v7  ;;  %v11786_v6 = vld [vmem:[#allocation2 + $0x10e8] ss:$48 sps:$4 sm:$0xff]   ;;  %v11791_v7 = vld [vmem:[#allocation2 + $0x1144] ss:$48 sps:$4 sm:$0xff]  }
 0x1a9   :  { %3872 = vmatprep.subr.bf16.mxu0 %v11707_v8  ;;  %3995 = vmatprep.subr.bf16.mxu1 %v11710_v10  ;;  %v11794_v8 = vld [vmem:[#allocation2 + $0x114c] ss:$48 sps:$4 sm:$0xff]   ;;  %v11792_v10 = vld [vmem:[#allocation2 + $0x1148] ss:$48 sps:$4 sm:$0xff]  }
 0x1ab   :  { %3864 = vmatmul.mubr.bf16.vlgmr.msra.gmra.mrb[0].mxu0 %v14033_v12  ;;  %3987 = vmatmul.mubr.bf16.vlgmr.msra.gmra.mrb[0].mxu1 %v14033_v12 }
 0x1ac   :  { %3873 = vmatpush1.bf16.msra.mxu0 %v11705_v11  ;;  %3996 = vmatpush1.bf16.msra.mxu1 %v11708_v13  ;;  %v11797_v11 = vld [vmem:[#allocation2 + $0x11a4] ss:$48 sps:$4 sm:$0xff]   ;;  %v11800_v13 = vld [vmem:[#allocation2 + $0x11ac] ss:$48 sps:$4 sm:$0xff]  }
 0x1ad   :  { %3874 = vmatprep.subr.bf16.mxu0 %v11713_v14  ;;  %3997 = vmatprep.subr.bf16.mxu1 %v11716_v15  ;;  %v11795_v14 = vld [vmem:[#allocation2 + $0x11a0] ss:$48 sps:$4 sm:$0xff]   ;;  %v11798_v15 = vld [vmem:[#allocation2 + $0x11a8] ss:$48 sps:$4 sm:$0xff]  }
 0x1ae   :  { %3904 = vmatprep.mubr.bf16.mxu0 %v14038_v17  ;;  %4027 = vmatprep.mubr.bf16.mxu1 %v14038_v17 }
 0x1b0   :  { %3875 = vmatpush1.bf16.msra.mxu0 %v11711_v18  ;;  %3998 = vmatpush1.bf16.msra.mxu1 %v11714_v19  ;;  %v11803_v18 = vld [vmem:[#allocation2 + $0x14] ss:$48 sps:$4 sm:$0xff]   ;;  %v11806_v19 = vld [vmem:[#allocation2 + $0x1c] ss:$48 sps:$4 sm:$0xff]  }
 0x1b1   :  { %3876 = vmatprep.subr.bf16.mxu0 %v11719_v20  ;;  %3999 = vmatprep.subr.bf16.mxu1 %v11722_v21  ;;  %v14047_v20 = vpack.c.bf16 %v262_v16, %v262_v16  ;;  %v11801_v21 = vld [vmem:[#allocation2 + $0x10] ss:$48 sps:$4 sm:$0xff]   ;;  %v11890_v16 = vld [vmem:[#allocation2 + $0x55c] ss:$48 sps:$4 sm:$0xff]  }
 0x1b4   :  { %3877 = vmatpush1.bf16.msra.mxu0 %v11717_v22  ;;  %4000 = vmatpush1.bf16.msra.mxu1 %v11720_v23  ;;  %v11804_v22 = vld [vmem:[#allocation2 + $0x18] ss:$48 sps:$4 sm:$0xff]   ;;  %v11809_v23 = vld [vmem:[#allocation2 + $0x74] ss:$48 sps:$4 sm:$0xff]  }
 0x1b5   :  { %3878 = vmatprep.subr.bf16.mxu0 %v11725_v24  ;;  %4001 = vmatprep.subr.bf16.mxu1 %v11728_v25  ;;  %v11812_v24 = vld [vmem:[#allocation2 + $0x7c] ss:$48 sps:$4 sm:$0xff]   ;;  %v11807_v25 = vld [vmem:[#allocation2 + $0x70] ss:$48 sps:$4 sm:$0xff]  }
 0x1b8   :  { %3879 = vmatpush1.bf16.msra.mxu0 %v11723_v26  ;;  %4002 = vmatpush1.bf16.msra.mxu1 %v11726_v27  ;;  %v11810_v26 = vld [vmem:[#allocation2 + $0x78] ss:$48 sps:$4 sm:$0xff]   ;;  %v11815_v27 = vld [vmem:[#allocation2 + $0xd4] ss:$48 sps:$4 sm:$0xff]  }
 0x1b9   :  { %3880 = vmatprep.subr.bf16.mxu0 %v11731_v28  ;;  %4003 = vmatprep.subr.bf16.mxu1 %v11734_v29  ;;  %v11818_v28 = vld [vmem:[#allocation2 + $0xdc] ss:$48 sps:$4 sm:$0xff]   ;;  %v11813_v29 = vld [vmem:[#allocation2 + $0xd0] ss:$48 sps:$4 sm:$0xff]  }
 0x1bc   :  { %3881 = vmatpush1.bf16.msra.mxu0 %v11729_v30  ;;  %4004 = vmatpush1.bf16.msra.mxu1 %v11732_v31  ;;  %v11816_v30 = vld [vmem:[#allocation2 + $0xd8] ss:$48 sps:$4 sm:$0xff]   ;;  %v11821_v31 = vld [vmem:[#allocation2 + $0x134] ss:$48 sps:$4 sm:$0xff]  }
 0x1bd   :  { %3882 = vmatprep.subr.bf16.mxu0 %v11737_v33  ;;  %4005 = vmatprep.subr.bf16.mxu1 %v11740_v34  ;;  %v11824_v33 = vld [vmem:[#allocation2 + $0x13c] ss:$48 sps:$4 sm:$0xff]   ;;  %v11819_v34 = vld [vmem:[#allocation2 + $0x130] ss:$48 sps:$4 sm:$0xff]  }
 0x1c0   :  { %3883 = vmatpush1.bf16.msra.mxu0 %v11735_v35  ;;  %4006 = vmatpush1.bf16.msra.mxu1 %v11738_v36  ;;  %v11822_v35 = vld [vmem:[#allocation2 + $0x138] ss:$48 sps:$4 sm:$0xff]   ;;  %v11827_v36 = vld [vmem:[#allocation2 + $0x194] ss:$48 sps:$4 sm:$0xff]  }
 0x1c1   :  { %3884 = vmatprep.subr.bf16.mxu0 %v11743_v37  ;;  %4007 = vmatprep.subr.bf16.mxu1 %v11746_v38  ;;  %v11830_v37 = vld [vmem:[#allocation2 + $0x19c] ss:$48 sps:$4 sm:$0xff]   ;;  %v11825_v38 = vld [vmem:[#allocation2 + $0x190] ss:$48 sps:$4 sm:$0xff]  }
 0x1c4   :  { %3885 = vmatpush1.bf16.msra.mxu0 %v11741_v39  ;;  %4008 = vmatpush1.bf16.msra.mxu1 %v11744_v40  ;;  %v11828_v39 = vld [vmem:[#allocation2 + $0x198] ss:$48 sps:$4 sm:$0xff]   ;;  %v11833_v40 = vld [vmem:[#allocation2 + $0x1f4] ss:$48 sps:$4 sm:$0xff]  }
 0x1c5   :  { %3886 = vmatprep.subr.bf16.mxu0 %v11749_v41  ;;  %4009 = vmatprep.subr.bf16.mxu1 %v11752_v42  ;;  %v11836_v41 = vld [vmem:[#allocation2 + $0x1fc] ss:$48 sps:$4 sm:$0xff]   ;;  %v11831_v42 = vld [vmem:[#allocation2 + $0x1f0] ss:$48 sps:$4 sm:$0xff]  }
 0x1c8   :  { %3887 = vmatpush1.bf16.msra.mxu0 %v11747_v43  ;;  %4010 = vmatpush1.bf16.msra.mxu1 %v11750_v44  ;;  %v11834_v43 = vld [vmem:[#allocation2 + $0x1f8] ss:$48 sps:$4 sm:$0xff]   ;;  %v11839_v44 = vld [vmem:[#allocation2 + $0x254] ss:$48 sps:$4 sm:$0xff]  }
 0x1c9   :  { %3888 = vmatprep.subr.bf16.mxu0 %v11755_v45  ;;  %4011 = vmatprep.subr.bf16.mxu1 %v11758_v46  ;;  %v11842_v45 = vld [vmem:[#allocation2 + $0x25c] ss:$48 sps:$4 sm:$0xff]   ;;  %v11837_v46 = vld [vmem:[#allocation2 + $0x250] ss:$48 sps:$4 sm:$0xff]  }
 0x1cc   :  { %3889 = vmatpush1.bf16.msra.mxu0 %v11753_v47  ;;  %4012 = vmatpush1.bf16.msra.mxu1 %v11756_v49  ;;  %v11840_v47 = vld [vmem:[#allocation2 + $0x258] ss:$48 sps:$4 sm:$0xff]   ;;  %v11845_v49 = vld [vmem:[#allocation2 + $0x2b4] ss:$48 sps:$4 sm:$0xff]  }
 0x1cd   :  { %3890 = vmatprep.subr.bf16.mxu0 %v11761_v50  ;;  %4013 = vmatprep.subr.bf16.mxu1 %v11764_v51  ;;  %v11848_v50 = vld [vmem:[#allocation2 + $0x2bc] ss:$48 sps:$4 sm:$0xff]   ;;  %v11843_v51 = vld [vmem:[#allocation2 + $0x2b0] ss:$48 sps:$4 sm:$0xff]  }
 0x1d0   :  { %3891 = vmatpush1.bf16.msra.mxu0 %v11759_v52  ;;  %4014 = vmatpush1.bf16.msra.mxu1 %v11762_v53  ;;  %v11846_v52 = vld [vmem:[#allocation2 + $0x2b8] ss:$48 sps:$4 sm:$0xff]   ;;  %v11851_v53 = vld [vmem:[#allocation2 + $0x314] ss:$48 sps:$4 sm:$0xff]  }
 0x1d1   :  { %3892 = vmatprep.subr.bf16.mxu0 %v11767_v54  ;;  %4015 = vmatprep.subr.bf16.mxu1 %v11770_v55  ;;  %v11854_v54 = vld [vmem:[#allocation2 + $0x31c] ss:$48 sps:$4 sm:$0xff]   ;;  %v11849_v55 = vld [vmem:[#allocation2 + $0x310] ss:$48 sps:$4 sm:$0xff]  }
 0x1d4   :  { %3893 = vmatpush1.bf16.msra.mxu0 %v11765_v56  ;;  %4016 = vmatpush1.bf16.msra.mxu1 %v11768_v57  ;;  %v11852_v56 = vld [vmem:[#allocation2 + $0x318] ss:$48 sps:$4 sm:$0xff]   ;;  %v11857_v57 = vld [vmem:[#allocation2 + $0x374] ss:$48 sps:$4 sm:$0xff]  }
 0x1d5   :  { %3894 = vmatprep.subr.bf16.mxu0 %v11773_v58  ;;  %4017 = vmatprep.subr.bf16.mxu1 %v11776_v59  ;;  %v11860_v58 = vld [vmem:[#allocation2 + $0x37c] ss:$48 sps:$4 sm:$0xff]   ;;  %v11855_v59 = vld [vmem:[#allocation2 + $0x370] ss:$48 sps:$4 sm:$0xff]  }
 0x1d8   :  { %3895 = vmatpush1.bf16.msra.mxu0 %v11771_v60  ;;  %4018 = vmatpush1.bf16.msra.mxu1 %v11774_v61  ;;  %v11858_v60 = vld [vmem:[#allocation2 + $0x378] ss:$48 sps:$4 sm:$0xff]   ;;  %v11863_v61 = vld [vmem:[#allocation2 + $0x3d4] ss:$48 sps:$4 sm:$0xff]  }
 0x1d9   :  { %3896 = vmatprep.subr.bf16.mxu0 %v11779_v62  ;;  %4019 = vmatprep.subr.bf16.mxu1 %v11782_v63  ;;  %v11866_v62 = vld [vmem:[#allocation2 + $0x3dc] ss:$48 sps:$4 sm:$0xff]   ;;  %v11861_v63 = vld [vmem:[#allocation2 + $0x3d0] ss:$48 sps:$4 sm:$0xff]  }
 0x1dc   :  { %3897 = vmatpush1.bf16.msra.mxu0 %v11777_v0  ;;  %4020 = vmatpush1.bf16.msra.mxu1 %v11780_v1  ;;  %v11864_v0 = vld [vmem:[#allocation2 + $0x3d8] ss:$48 sps:$4 sm:$0xff]   ;;  %v11869_v1 = vld [vmem:[#allocation2 + $0x434] ss:$48 sps:$4 sm:$0xff]  }
 0x1dd   :  { %3898 = vmatprep.subr.bf16.mxu0 %v11785_v2  ;;  %4021 = vmatprep.subr.bf16.mxu1 %v11788_v3  ;;  %v11872_v2 = vld [vmem:[#allocation2 + $0x43c] ss:$48 sps:$4 sm:$0xff]   ;;  %v11867_v3 = vld [vmem:[#allocation2 + $0x430] ss:$48 sps:$4 sm:$0xff]  }
 0x1e0   :  { %3899 = vmatpush1.bf16.msra.mxu0 %v11783_v4  ;;  %4022 = vmatpush1.bf16.msra.mxu1 %v11786_v6  ;;  %v11870_v4 = vld [vmem:[#allocation2 + $0x438] ss:$48 sps:$4 sm:$0xff]   ;;  %v11875_v6 = vld [vmem:[#allocation2 + $0x494] ss:$48 sps:$4 sm:$0xff]  }
 0x1e1   :  { %3900 = vmatprep.subr.bf16.mxu0 %v11791_v7  ;;  %4023 = vmatprep.subr.bf16.mxu1 %v11794_v8  ;;  %v11878_v7 = vld [vmem:[#allocation2 + $0x49c] ss:$48 sps:$4 sm:$0xff]   ;;  %v11873_v8 = vld [vmem:[#allocation2 + $0x490] ss:$48 sps:$4 sm:$0xff]  }
 0x1e4   :  { %3901 = vmatpush1.bf16.msra.mxu0 %v11789_v9  ;;  %4024 = vmatpush1.bf16.msra.mxu1 %v11792_v10  ;;  %v11876_v9 = vld [vmem:[#allocation2 + $0x498] ss:$48 sps:$4 sm:$0xff]   ;;  %v11881_v10 = vld [vmem:[#allocation2 + $0x4f4] ss:$48 sps:$4 sm:$0xff]  }
 0x1e5   :  { %3902 = vmatprep.subr.bf16.mxu0 %v11797_v11  ;;  %4025 = vmatprep.subr.bf16.mxu1 %v11800_v13  ;;  %v11884_v11 = vld [vmem:[#allocation2 + $0x4fc] ss:$48 sps:$4 sm:$0xff]   ;;  %v11879_v13 = vld [vmem:[#allocation2 + $0x4f0] ss:$48 sps:$4 sm:$0xff]  }
 0x1e8   :  { %3903 = vmatpush1.bf16.msra.mxu0 %v11795_v14  ;;  %4026 = vmatpush1.bf16.msra.mxu1 %v11798_v15  ;;  %v11882_v14 = vld [vmem:[#allocation2 + $0x4f8] ss:$48 sps:$4 sm:$0xff]   ;;  %v11887_v15 = vld [vmem:[#allocation2 + $0x554] ss:$48 sps:$4 sm:$0xff]  }
 0x1e9   :  { %4036 = vmatprep.subr.bf16.mxu0 %v11803_v18  ;;  %4159 = vmatprep.subr.bf16.mxu1 %v11806_v19  ;;  %v11885_v18 = vld [vmem:[#allocation2 + $0x550] ss:$48 sps:$4 sm:$0xff]   ;;  %v11888_v19 = vld [vmem:[#allocation2 + $0x558] ss:$48 sps:$4 sm:$0xff]  }
 0x1eb   :  { %3905 = vmatmul.mubr.bf16.vlgmr.msra.gmra.mrb[0].mxu0 %v14047_v20  ;;  %4028 = vmatmul.mubr.bf16.vlgmr.msra.gmra.mrb[0].mxu1 %v14047_v20 }
 0x1ec   :  { %4037 = vmatpush1.bf16.msra.mxu0 %v11801_v21  ;;  %4160 = vmatpush1.bf16.msra.mxu1 %v11804_v22  ;;  %v11893_v21 = vld [vmem:[#allocation2 + $0x5b4] ss:$48 sps:$4 sm:$0xff]   ;;  %v11896_v22 = vld [vmem:[#allocation2 + $0x5bc] ss:$48 sps:$4 sm:$0xff]  }
 0x1ed   :  { %4038 = vmatprep.subr.bf16.mxu0 %v11809_v23  ;;  %4161 = vmatprep.subr.bf16.mxu1 %v11812_v24  ;;  %v11891_v23 = vld [vmem:[#allocation2 + $0x5b0] ss:$48 sps:$4 sm:$0xff]   ;;  %v11894_v24 = vld [vmem:[#allocation2 + $0x5b8] ss:$48 sps:$4 sm:$0xff]  }
 0x1ee   :  { %4068 = vmatprep.mubr.bf16.mxu0 %v14012_v48  ;;  %4191 = vmatprep.mubr.bf16.mxu1 %v14012_v48 }
 0x1f0   :  { %4039 = vmatpush1.bf16.msra.mxu0 %v11807_v25  ;;  %4162 = vmatpush1.bf16.msra.mxu1 %v11810_v26  ;;  %v11899_v25 = vld [vmem:[#allocation2 + $0x614] ss:$48 sps:$4 sm:$0xff]   ;;  %v11902_v26 = vld [vmem:[#allocation2 + $0x61c] ss:$48 sps:$4 sm:$0xff]  }
 0x1f1   :  { %4040 = vmatprep.subr.bf16.mxu0 %v11815_v27  ;;  %4163 = vmatprep.subr.bf16.mxu1 %v11818_v28  ;;  %v11897_v27 = vld [vmem:[#allocation2 + $0x610] ss:$48 sps:$4 sm:$0xff]   ;;  %v11900_v28 = vld [vmem:[#allocation2 + $0x618] ss:$48 sps:$4 sm:$0xff]  }
 0x1f4   :  { %4041 = vmatpush1.bf16.msra.mxu0 %v11813_v29  ;;  %4164 = vmatpush1.bf16.msra.mxu1 %v11816_v30  ;;  %v11905_v29 = vld [vmem:[#allocation2 + $0x674] ss:$48 sps:$4 sm:$0xff]   ;;  %v11908_v30 = vld [vmem:[#allocation2 + $0x67c] ss:$48 sps:$4 sm:$0xff]  }
 0x1f5   :  { %4042 = vmatprep.subr.bf16.mxu0 %v11821_v31  ;;  %4165 = vmatprep.subr.bf16.mxu1 %v11824_v33  ;;  %v11903_v31 = vld [vmem:[#allocation2 + $0x670] ss:$48 sps:$4 sm:$0xff]   ;;  %v11906_v33 = vld [vmem:[#allocation2 + $0x678] ss:$48 sps:$4 sm:$0xff]  }
 0x1f8   :  { %4043 = vmatpush1.bf16.msra.mxu0 %v11819_v34  ;;  %4166 = vmatpush1.bf16.msra.mxu1 %v11822_v35  ;;  %v11911_v34 = vld [vmem:[#allocation2 + $0x6d4] ss:$48 sps:$4 sm:$0xff]   ;;  %v11914_v35 = vld [vmem:[#allocation2 + $0x6dc] ss:$48 sps:$4 sm:$0xff]  }
 0x1f9   :  { %4044 = vmatprep.subr.bf16.mxu0 %v11827_v36  ;;  %4167 = vmatprep.subr.bf16.mxu1 %v11830_v37  ;;  %v11909_v36 = vld [vmem:[#allocation2 + $0x6d0] ss:$48 sps:$4 sm:$0xff]   ;;  %v11912_v37 = vld [vmem:[#allocation2 + $0x6d8] ss:$48 sps:$4 sm:$0xff]  }
 0x1fc   :  { %4045 = vmatpush1.bf16.msra.mxu0 %v11825_v38  ;;  %4168 = vmatpush1.bf16.msra.mxu1 %v11828_v39  ;;  %v11917_v38 = vld [vmem:[#allocation2 + $0x734] ss:$48 sps:$4 sm:$0xff]   ;;  %v11920_v39 = vld [vmem:[#allocation2 + $0x73c] ss:$48 sps:$4 sm:$0xff]  }
 0x1fd   :  { %4046 = vmatprep.subr.bf16.mxu0 %v11833_v40  ;;  %4169 = vmatprep.subr.bf16.mxu1 %v11836_v41  ;;  %v11915_v40 = vld [vmem:[#allocation2 + $0x730] ss:$48 sps:$4 sm:$0xff]   ;;  %v11918_v41 = vld [vmem:[#allocation2 + $0x738] ss:$48 sps:$4 sm:$0xff]  }
 0x200   :  { %4047 = vmatpush1.bf16.msra.mxu0 %v11831_v42  ;;  %4170 = vmatpush1.bf16.msra.mxu1 %v11834_v43  ;;  %v11923_v42 = vld [vmem:[#allocation2 + $0x794] ss:$48 sps:$4 sm:$0xff]   ;;  %v11926_v43 = vld [vmem:[#allocation2 + $0x79c] ss:$48 sps:$4 sm:$0xff]  }
 0x201   :  { %4048 = vmatprep.subr.bf16.mxu0 %v11839_v44  ;;  %4171 = vmatprep.subr.bf16.mxu1 %v11842_v45  ;;  %v11921_v44 = vld [vmem:[#allocation2 + $0x790] ss:$48 sps:$4 sm:$0xff]   ;;  %v11924_v45 = vld [vmem:[#allocation2 + $0x798] ss:$48 sps:$4 sm:$0xff]  }
 0x204   :  { %4049 = vmatpush1.bf16.msra.mxu0 %v11837_v46  ;;  %4172 = vmatpush1.bf16.msra.mxu1 %v11840_v47  ;;  %v11929_v46 = vld [vmem:[#allocation2 + $0x7f4] ss:$48 sps:$4 sm:$0xff]   ;;  %v11932_v47 = vld [vmem:[#allocation2 + $0x7fc] ss:$48 sps:$4 sm:$0xff]  }
 0x205   :  { %4050 = vmatprep.subr.bf16.mxu0 %v11845_v49  ;;  %4173 = vmatprep.subr.bf16.mxu1 %v11848_v50  ;;  %v11927_v49 = vld [vmem:[#allocation2 + $0x7f0] ss:$48 sps:$4 sm:$0xff]   ;;  %v11930_v50 = vld [vmem:[#allocation2 + $0x7f8] ss:$48 sps:$4 sm:$0xff]  }
 0x208   :  { %4051 = vmatpush1.bf16.msra.mxu0 %v11843_v51  ;;  %4174 = vmatpush1.bf16.msra.mxu1 %v11846_v52  ;;  %v11935_v51 = vld [vmem:[#allocation2 + $0x854] ss:$48 sps:$4 sm:$0xff]   ;;  %v11938_v52 = vld [vmem:[#allocation2 + $0x85c] ss:$48 sps:$4 sm:$0xff]  }
 0x209   :  { %4052 = vmatprep.subr.bf16.mxu0 %v11851_v53  ;;  %4175 = vmatprep.subr.bf16.mxu1 %v11854_v54  ;;  %v11933_v53 = vld [vmem:[#allocation2 + $0x850] ss:$48 sps:$4 sm:$0xff]   ;;  %v11936_v54 = vld [vmem:[#allocation2 + $0x858] ss:$48 sps:$4 sm:$0xff]  }
 0x20c   :  { %4053 = vmatpush1.bf16.msra.mxu0 %v11849_v55  ;;  %4176 = vmatpush1.bf16.msra.mxu1 %v11852_v56  ;;  %v11941_v55 = vld [vmem:[#allocation2 + $0x8b4] ss:$48 sps:$4 sm:$0xff]   ;;  %v11944_v56 = vld [vmem:[#allocation2 + $0x8bc] ss:$48 sps:$4 sm:$0xff]  }
 0x20d   :  { %4054 = vmatprep.subr.bf16.mxu0 %v11857_v57  ;;  %4177 = vmatprep.subr.bf16.mxu1 %v11860_v58  ;;  %v11939_v57 = vld [vmem:[#allocation2 + $0x8b0] ss:$48 sps:$4 sm:$0xff]   ;;  %v11942_v58 = vld [vmem:[#allocation2 + $0x8b8] ss:$48 sps:$4 sm:$0xff]  }
 0x210   :  { %4055 = vmatpush1.bf16.msra.mxu0 %v11855_v59  ;;  %4178 = vmatpush1.bf16.msra.mxu1 %v11858_v60  ;;  %v11947_v59 = vld [vmem:[#allocation2 + $0x914] ss:$48 sps:$4 sm:$0xff]   ;;  %v11950_v60 = vld [vmem:[#allocation2 + $0x91c] ss:$48 sps:$4 sm:$0xff]  }
 0x211   :  { %4056 = vmatprep.subr.bf16.mxu0 %v11863_v61  ;;  %4179 = vmatprep.subr.bf16.mxu1 %v11866_v62  ;;  %v11945_v61 = vld [vmem:[#allocation2 + $0x910] ss:$48 sps:$4 sm:$0xff]   ;;  %v11948_v62 = vld [vmem:[#allocation2 + $0x918] ss:$48 sps:$4 sm:$0xff]  }
 0x214   :  { %4057 = vmatpush1.bf16.msra.mxu0 %v11861_v63  ;;  %4180 = vmatpush1.bf16.msra.mxu1 %v11864_v0  ;;  %v11953_v63 = vld [vmem:[#allocation2 + $0x974] ss:$48 sps:$4 sm:$0xff]   ;;  %v11956_v0 = vld [vmem:[#allocation2 + $0x97c] ss:$48 sps:$4 sm:$0xff]  }
 0x215   :  { %4058 = vmatprep.subr.bf16.mxu0 %v11869_v1  ;;  %4181 = vmatprep.subr.bf16.mxu1 %v11872_v2  ;;  %v11951_v1 = vld [vmem:[#allocation2 + $0x970] ss:$48 sps:$4 sm:$0xff]   ;;  %v11954_v2 = vld [vmem:[#allocation2 + $0x978] ss:$48 sps:$4 sm:$0xff]  }
 0x218   :  { %4059 = vmatpush1.bf16.msra.mxu0 %v11867_v3  ;;  %4182 = vmatpush1.bf16.msra.mxu1 %v11870_v4  ;;  %v11959_v3 = vld [vmem:[#allocation2 + $0x9d4] ss:$48 sps:$4 sm:$0xff]   ;;  %v11962_v4 = vld [vmem:[#allocation2 + $0x9dc] ss:$48 sps:$4 sm:$0xff]  }
 0x219   :  { %4060 = vmatprep.subr.bf16.mxu0 %v11875_v6  ;;  %4183 = vmatprep.subr.bf16.mxu1 %v11878_v7  ;;  %v11957_v6 = vld [vmem:[#allocation2 + $0x9d0] ss:$48 sps:$4 sm:$0xff]   ;;  %v11960_v7 = vld [vmem:[#allocation2 + $0x9d8] ss:$48 sps:$4 sm:$0xff]  }
 0x21c   :  { %4061 = vmatpush1.bf16.msra.mxu0 %v11873_v8  ;;  %4184 = vmatpush1.bf16.msra.mxu1 %v11876_v9  ;;  %v11965_v8 = vld [vmem:[#allocation2 + $0xa34] ss:$48 sps:$4 sm:$0xff]   ;;  %v11968_v9 = vld [vmem:[#allocation2 + $0xa3c] ss:$48 sps:$4 sm:$0xff]  }
 0x21d   :  { %4062 = vmatprep.subr.bf16.mxu0 %v11881_v10  ;;  %4185 = vmatprep.subr.bf16.mxu1 %v11884_v11  ;;  %v11963_v10 = vld [vmem:[#allocation2 + $0xa30] ss:$48 sps:$4 sm:$0xff]   ;;  %v11966_v11 = vld [vmem:[#allocation2 + $0xa38] ss:$48 sps:$4 sm:$0xff]  }
 0x220   :  { %4063 = vmatpush1.bf16.msra.mxu0 %v11879_v13  ;;  %4186 = vmatpush1.bf16.msra.mxu1 %v11882_v14  ;;  %v11971_v13 = vld [vmem:[#allocation2 + $0xa94] ss:$48 sps:$4 sm:$0xff]   ;;  %v11974_v14 = vld [vmem:[#allocation2 + $0xa9c] ss:$48 sps:$4 sm:$0xff]  }
 0x221   :  { %4064 = vmatprep.subr.bf16.mxu0 %v11887_v15  ;;  %4187 = vmatprep.subr.bf16.mxu1 %v11890_v16  ;;  %v11969_v15 = vld [vmem:[#allocation2 + $0xa90] ss:$48 sps:$4 sm:$0xff]   ;;  %v11972_v16 = vld [vmem:[#allocation2 + $0xa98] ss:$48 sps:$4 sm:$0xff]  }
 0x224   :  { %4065 = vmatpush1.bf16.msra.mxu0 %v11885_v18  ;;  %4188 = vmatpush1.bf16.msra.mxu1 %v11888_v19  ;;  %v11977_v18 = vld [vmem:[#allocation2 + $0xaf4] ss:$48 sps:$4 sm:$0xff]   ;;  %v11980_v19 = vld [vmem:[#allocation2 + $0xafc] ss:$48 sps:$4 sm:$0xff]  }
 0x225   :  { %4066 = vmatprep.subr.bf16.mxu0 %v11893_v21  ;;  %4189 = vmatprep.subr.bf16.mxu1 %v11896_v22  ;;  %v11975_v21 = vld [vmem:[#allocation2 + $0xaf0] ss:$48 sps:$4 sm:$0xff]   ;;  %v11978_v22 = vld [vmem:[#allocation2 + $0xaf8] ss:$48 sps:$4 sm:$0xff]  }
 0x228   :  { %4067 = vmatpush1.bf16.msra.mxu0 %v11891_v23  ;;  %4190 = vmatpush1.bf16.msra.mxu1 %v11894_v24  ;;  %v11983_v23 = vld [vmem:[#allocation2 + $0xb54] ss:$48 sps:$4 sm:$0xff]   ;;  %v11986_v24 = vld [vmem:[#allocation2 + $0xb5c] ss:$48 sps:$4 sm:$0xff]  }
 0x229   :  { %4077 = vmatprep.subr.bf16.mxu0 %v11899_v25  ;;  %4200 = vmatprep.subr.bf16.mxu1 %v11902_v26  ;;  %v11981_v25 = vld [vmem:[#allocation2 + $0xb50] ss:$48 sps:$4 sm:$0xff]   ;;  %v11984_v26 = vld [vmem:[#allocation2 + $0xb58] ss:$48 sps:$4 sm:$0xff]  }
 0x22b   :  { %4069 = vmatmul.mubr.bf16.vlgmr.msra.gmra.mrb[4].mxu0 %v14019_v5  ;;  %4192 = vmatmul.mubr.bf16.vlgmr.msra.gmra.mrb[4].mxu1 %v14019_v5 }
 0x22c   :  { %4078 = vmatpush1.bf16.msra.mxu0 %v11897_v27  ;;  %4201 = vmatpush1.bf16.msra.mxu1 %v11900_v28  ;;  %v11989_v27 = vld [vmem:[#allocation2 + $0xbb4] ss:$48 sps:$4 sm:$0xff]   ;;  %v11992_v28 = vld [vmem:[#allocation2 + $0xbbc] ss:$48 sps:$4 sm:$0xff]  }
 0x22d   :  { %4079 = vmatprep.subr.bf16.mxu0 %v11905_v29  ;;  %4202 = vmatprep.subr.bf16.mxu1 %v11908_v30  ;;  %v11987_v29 = vld [vmem:[#allocation2 + $0xbb0] ss:$48 sps:$4 sm:$0xff]   ;;  %v11990_v30 = vld [vmem:[#allocation2 + $0xbb8] ss:$48 sps:$4 sm:$0xff]  }
 0x22e   :  { %4109 = vmatprep.mubr.bf16.mxu0 %v14026_v32  ;;  %4232 = vmatprep.mubr.bf16.mxu1 %v14026_v32 }
 0x230   :  { %4080 = vmatpush1.bf16.msra.mxu0 %v11903_v31  ;;  %4203 = vmatpush1.bf16.msra.mxu1 %v11906_v33  ;;  %v11995_v31 = vld [vmem:[#allocation2 + $0xc14] ss:$48 sps:$4 sm:$0xff]   ;;  %v11998_v33 = vld [vmem:[#allocation2 + $0xc1c] ss:$48 sps:$4 sm:$0xff]  }
 0x231   :  { %4081 = vmatprep.subr.bf16.mxu0 %v11911_v34  ;;  %4204 = vmatprep.subr.bf16.mxu1 %v11914_v35  ;;  %v11993_v34 = vld [vmem:[#allocation2 + $0xc10] ss:$48 sps:$4 sm:$0xff]   ;;  %v11996_v35 = vld [vmem:[#allocation2 + $0xc18] ss:$48 sps:$4 sm:$0xff]  }
 0x234   :  { %4082 = vmatpush1.bf16.msra.mxu0 %v11909_v36  ;;  %4205 = vmatpush1.bf16.msra.mxu1 %v11912_v37  ;;  %v12001_v36 = vld [vmem:[#allocation2 + $0xc74] ss:$48 sps:$4 sm:$0xff]   ;;  %v12004_v37 = vld [vmem:[#allocation2 + $0xc7c] ss:$48 sps:$4 sm:$0xff]  }
 0x235   :  { %4083 = vmatprep.subr.bf16.mxu0 %v11917_v38  ;;  %4206 = vmatprep.subr.bf16.mxu1 %v11920_v39  ;;  %v11999_v38 = vld [vmem:[#allocation2 + $0xc70] ss:$48 sps:$4 sm:$0xff]   ;;  %v12002_v39 = vld [vmem:[#allocation2 + $0xc78] ss:$48 sps:$4 sm:$0xff]  }
 0x238   :  { %4084 = vmatpush1.bf16.msra.mxu0 %v11915_v40  ;;  %4207 = vmatpush1.bf16.msra.mxu1 %v11918_v41  ;;  %v12007_v40 = vld [vmem:[#allocation2 + $0xcd4] ss:$48 sps:$4 sm:$0xff]   ;;  %v12010_v41 = vld [vmem:[#allocation2 + $0xcdc] ss:$48 sps:$4 sm:$0xff]  }
 0x239   :  { %4085 = vmatprep.subr.bf16.mxu0 %v11923_v42  ;;  %4208 = vmatprep.subr.bf16.mxu1 %v11926_v43  ;;  %v12005_v42 = vld [vmem:[#allocation2 + $0xcd0] ss:$48 sps:$4 sm:$0xff]   ;;  %v12008_v43 = vld [vmem:[#allocation2 + $0xcd8] ss:$48 sps:$4 sm:$0xff]  }
 0x23c   :  { %4086 = vmatpush1.bf16.msra.mxu0 %v11921_v44  ;;  %4209 = vmatpush1.bf16.msra.mxu1 %v11924_v45  ;;  %v12013_v44 = vld [vmem:[#allocation2 + $0xd34] ss:$48 sps:$4 sm:$0xff]   ;;  %v12016_v45 = vld [vmem:[#allocation2 + $0xd3c] ss:$48 sps:$4 sm:$0xff]  }
 0x23d   :  { %4087 = vmatprep.subr.bf16.mxu0 %v11929_v46  ;;  %4210 = vmatprep.subr.bf16.mxu1 %v11932_v47  ;;  %v12011_v46 = vld [vmem:[#allocation2 + $0xd30] ss:$48 sps:$4 sm:$0xff]   ;;  %v12014_v47 = vld [vmem:[#allocation2 + $0xd38] ss:$48 sps:$4 sm:$0xff]  }
 0x240   :  { %4088 = vmatpush1.bf16.msra.mxu0 %v11927_v49  ;;  %4211 = vmatpush1.bf16.msra.mxu1 %v11930_v50  ;;  %v12019_v49 = vld [vmem:[#allocation2 + $0xd94] ss:$48 sps:$4 sm:$0xff]   ;;  %v12022_v50 = vld [vmem:[#allocation2 + $0xd9c] ss:$48 sps:$4 sm:$0xff]  }
 0x241   :  { %4089 = vmatprep.subr.bf16.mxu0 %v11935_v51  ;;  %4212 = vmatprep.subr.bf16.mxu1 %v11938_v52  ;;  %v12017_v51 = vld [vmem:[#allocation2 + $0xd90] ss:$48 sps:$4 sm:$0xff]   ;;  %v12020_v52 = vld [vmem:[#allocation2 + $0xd98] ss:$48 sps:$4 sm:$0xff]  }
 0x244   :  { %4090 = vmatpush1.bf16.msra.mxu0 %v11933_v53  ;;  %4213 = vmatpush1.bf16.msra.mxu1 %v11936_v54  ;;  %v12025_v53 = vld [vmem:[#allocation2 + $0xdf4] ss:$48 sps:$4 sm:$0xff]   ;;  %v12028_v54 = vld [vmem:[#allocation2 + $0xdfc] ss:$48 sps:$4 sm:$0xff]  }
 0x245   :  { %4091 = vmatprep.subr.bf16.mxu0 %v11941_v55  ;;  %4214 = vmatprep.subr.bf16.mxu1 %v11944_v56  ;;  %v12023_v55 = vld [vmem:[#allocation2 + $0xdf0] ss:$48 sps:$4 sm:$0xff]   ;;  %v12026_v56 = vld [vmem:[#allocation2 + $0xdf8] ss:$48 sps:$4 sm:$0xff]  }
 0x248   :  { %4092 = vmatpush1.bf16.msra.mxu0 %v11939_v57  ;;  %4215 = vmatpush1.bf16.msra.mxu1 %v11942_v58  ;;  %v12031_v57 = vld [vmem:[#allocation2 + $0xe54] ss:$48 sps:$4 sm:$0xff]   ;;  %v12034_v58 = vld [vmem:[#allocation2 + $0xe5c] ss:$48 sps:$4 sm:$0xff]  }
 0x249   :  { %4093 = vmatprep.subr.bf16.mxu0 %v11947_v59  ;;  %4216 = vmatprep.subr.bf16.mxu1 %v11950_v60  ;;  %v12029_v59 = vld [vmem:[#allocation2 + $0xe50] ss:$48 sps:$4 sm:$0xff]   ;;  %v12032_v60 = vld [vmem:[#allocation2 + $0xe58] ss:$48 sps:$4 sm:$0xff]  }
 0x24c   :  { %4094 = vmatpush1.bf16.msra.mxu0 %v11945_v61  ;;  %4217 = vmatpush1.bf16.msra.mxu1 %v11948_v62  ;;  %v12037_v61 = vld [vmem:[#allocation2 + $0xeb4] ss:$48 sps:$4 sm:$0xff]   ;;  %v12040_v62 = vld [vmem:[#allocation2 + $0xebc] ss:$48 sps:$4 sm:$0xff]  }
 0x24d   :  { %4095 = vmatprep.subr.bf16.mxu0 %v11953_v63  ;;  %4218 = vmatprep.subr.bf16.mxu1 %v11956_v0  ;;  %v12035_v63 = vld [vmem:[#allocation2 + $0xeb0] ss:$48 sps:$4 sm:$0xff]   ;;  %v12038_v0 = vld [vmem:[#allocation2 + $0xeb8] ss:$48 sps:$4 sm:$0xff]  }
 0x250   :  { %4096 = vmatpush1.bf16.msra.mxu0 %v11951_v1  ;;  %4219 = vmatpush1.bf16.msra.mxu1 %v11954_v2  ;;  %v12043_v1 = vld [vmem:[#allocation2 + $0xf14] ss:$48 sps:$4 sm:$0xff]   ;;  %v12046_v2 = vld [vmem:[#allocation2 + $0xf1c] ss:$48 sps:$4 sm:$0xff]  }
 0x251   :  { %4097 = vmatprep.subr.bf16.mxu0 %v11959_v3  ;;  %4220 = vmatprep.subr.bf16.mxu1 %v11962_v4  ;;  %v12041_v3 = vld [vmem:[#allocation2 + $0xf10] ss:$48 sps:$4 sm:$0xff]   ;;  %v12044_v4 = vld [vmem:[#allocation2 + $0xf18] ss:$48 sps:$4 sm:$0xff]  }
 0x254   :  { %4098 = vmatpush1.bf16.msra.mxu0 %v11957_v6  ;;  %4221 = vmatpush1.bf16.msra.mxu1 %v11960_v7  ;;  %v12049_v6 = vld [vmem:[#allocation2 + $0xf74] ss:$48 sps:$4 sm:$0xff]   ;;  %v12052_v7 = vld [vmem:[#allocation2 + $0xf7c] ss:$48 sps:$4 sm:$0xff]  }
 0x255   :  { %4099 = vmatprep.subr.bf16.mxu0 %v11965_v8  ;;  %4222 = vmatprep.subr.bf16.mxu1 %v11968_v9  ;;  %v12047_v8 = vld [vmem:[#allocation2 + $0xf70] ss:$48 sps:$4 sm:$0xff]   ;;  %v12050_v9 = vld [vmem:[#allocation2 + $0xf78] ss:$48 sps:$4 sm:$0xff]  }
 0x258   :  { %4100 = vmatpush1.bf16.msra.mxu0 %v11963_v10  ;;  %4223 = vmatpush1.bf16.msra.mxu1 %v11966_v11  ;;  %v12055_v10 = vld [vmem:[#allocation2 + $0xfd4] ss:$48 sps:$4 sm:$0xff]   ;;  %v12058_v11 = vld [vmem:[#allocation2 + $0xfdc] ss:$48 sps:$4 sm:$0xff]  }
 0x259   :  { %4101 = vmatprep.subr.bf16.mxu0 %v11971_v13  ;;  %4224 = vmatprep.subr.bf16.mxu1 %v11974_v14  ;;  %v12053_v13 = vld [vmem:[#allocation2 + $0xfd0] ss:$48 sps:$4 sm:$0xff]   ;;  %v12056_v14 = vld [vmem:[#allocation2 + $0xfd8] ss:$48 sps:$4 sm:$0xff]  }
 0x25c   :  { %4102 = vmatpush1.bf16.msra.mxu0 %v11969_v15  ;;  %4225 = vmatpush1.bf16.msra.mxu1 %v11972_v16  ;;  %v12061_v15 = vld [vmem:[#allocation2 + $0x1034] ss:$48 sps:$4 sm:$0xff]   ;;  %v12064_v16 = vld [vmem:[#allocation2 + $0x103c] ss:$48 sps:$4 sm:$0xff]  }
 0x25d   :  { %4103 = vmatprep.subr.bf16.mxu0 %v11977_v18  ;;  %4226 = vmatprep.subr.bf16.mxu1 %v11980_v19  ;;  %v12059_v18 = vld [vmem:[#allocation2 + $0x1030] ss:$48 sps:$4 sm:$0xff]   ;;  %v12062_v19 = vld [vmem:[#allocation2 + $0x1038] ss:$48 sps:$4 sm:$0xff]  }
 0x260   :  { %4104 = vmatpush1.bf16.msra.mxu0 %v11975_v21  ;;  %4227 = vmatpush1.bf16.msra.mxu1 %v11978_v22  ;;  %v12067_v21 = vld [vmem:[#allocation2 + $0x1094] ss:$48 sps:$4 sm:$0xff]   ;;  %v12070_v22 = vld [vmem:[#allocation2 + $0x109c] ss:$48 sps:$4 sm:$0xff]  }
 0x261   :  { %4105 = vmatprep.subr.bf16.mxu0 %v11983_v23  ;;  %4228 = vmatprep.subr.bf16.mxu1 %v11986_v24  ;;  %v12065_v23 = vld [vmem:[#allocation2 + $0x1090] ss:$48 sps:$4 sm:$0xff]   ;;  %v12068_v24 = vld [vmem:[#allocation2 + $0x1098] ss:$48 sps:$4 sm:$0xff]  }
 0x264   :  { %4106 = vmatpush1.bf16.msra.mxu0 %v11981_v25  ;;  %4229 = vmatpush1.bf16.msra.mxu1 %v11984_v26  ;;  %v12073_v25 = vld [vmem:[#allocation2 + $0x10f4] ss:$48 sps:$4 sm:$0xff]   ;;  %v12076_v26 = vld [vmem:[#allocation2 + $0x10fc] ss:$48 sps:$4 sm:$0xff]  }
 0x265   :  { %4107 = vmatprep.subr.bf16.mxu0 %v11989_v27  ;;  %4230 = vmatprep.subr.bf16.mxu1 %v11992_v28  ;;  %v12071_v27 = vld [vmem:[#allocation2 + $0x10f0] ss:$48 sps:$4 sm:$0xff]   ;;  %v12074_v28 = vld [vmem:[#allocation2 + $0x10f8] ss:$48 sps:$4 sm:$0xff]  }
 0x268   :  { %4108 = vmatpush1.bf16.msra.mxu0 %v11987_v29  ;;  %4231 = vmatpush1.bf16.msra.mxu1 %v11990_v30  ;;  %v12079_v29 = vld [vmem:[#allocation2 + $0x1154] ss:$48 sps:$4 sm:$0xff]   ;;  %v12082_v30 = vld [vmem:[#allocation2 + $0x115c] ss:$48 sps:$4 sm:$0xff]  }
 0x269   :  { %4118 = vmatprep.subr.bf16.mxu0 %v11995_v31  ;;  %4241 = vmatprep.subr.bf16.mxu1 %v11998_v33  ;;  %v12077_v31 = vld [vmem:[#allocation2 + $0x1150] ss:$48 sps:$4 sm:$0xff]   ;;  %v12080_v33 = vld [vmem:[#allocation2 + $0x1158] ss:$48 sps:$4 sm:$0xff]  }
 0x26b   :  { %4110 = vmatmul.mubr.bf16.vlgmr.msra.gmra.mrb[4].mxu0 %v14033_v12  ;;  %4233 = vmatmul.mubr.bf16.vlgmr.msra.gmra.mrb[4].mxu1 %v14033_v12 }
 0x26c   :  { %4119 = vmatpush1.bf16.msra.mxu0 %v11993_v34  ;;  %4242 = vmatpush1.bf16.msra.mxu1 %v11996_v35  ;;  %v12085_v34 = vld [vmem:[#allocation2 + $0x11b4] ss:$48 sps:$4 sm:$0xff]   ;;  %v12088_v35 = vld [vmem:[#allocation2 + $0x11bc] ss:$48 sps:$4 sm:$0xff]  }
 0x26d   :  { %4120 = vmatprep.subr.bf16.mxu0 %v12001_v36  ;;  %4243 = vmatprep.subr.bf16.mxu1 %v12004_v37  ;;  %v12083_v36 = vld [vmem:[#allocation2 + $0x11b0] ss:$48 sps:$4 sm:$0xff]   ;;  %v12086_v37 = vld [vmem:[#allocation2 + $0x11b8] ss:$48 sps:$4 sm:$0xff]  }
 0x26e   :  { %4150 = vmatprep.mubr.bf16.mxu0 %v14038_v17  ;;  %4273 = vmatprep.mubr.bf16.mxu1 %v14038_v17 }
 0x270   :  { %4121 = vmatpush1.bf16.msra.mxu0 %v11999_v38  ;;  %4244 = vmatpush1.bf16.msra.mxu1 %v12002_v39  ;;  %v12091_v38 = vld [vmem:[#allocation2 + $0x24] ss:$48 sps:$4 sm:$0xff]   ;;  %v12094_v39 = vld [vmem:[#allocation2 + $0x2c] ss:$48 sps:$4 sm:$0xff]  }
 0x271   :  { %4122 = vmatprep.subr.bf16.mxu0 %v12007_v40  ;;  %4245 = vmatprep.subr.bf16.mxu1 %v12010_v41  ;;  %v12089_v40 = vld [vmem:[#allocation2 + $0x20] ss:$48 sps:$4 sm:$0xff]   ;;  %v12092_v41 = vld [vmem:[#allocation2 + $0x28] ss:$48 sps:$4 sm:$0xff]  }
 0x274   :  { %4123 = vmatpush1.bf16.msra.mxu0 %v12005_v42  ;;  %4246 = vmatpush1.bf16.msra.mxu1 %v12008_v43  ;;  %v12097_v42 = vld [vmem:[#allocation2 + $0x84] ss:$48 sps:$4 sm:$0xff]   ;;  %v12100_v43 = vld [vmem:[#allocation2 + $0x8c] ss:$48 sps:$4 sm:$0xff]  }
 0x275   :  { %4124 = vmatprep.subr.bf16.mxu0 %v12013_v44  ;;  %4247 = vmatprep.subr.bf16.mxu1 %v12016_v45  ;;  %v12095_v44 = vld [vmem:[#allocation2 + $0x80] ss:$48 sps:$4 sm:$0xff]   ;;  %v12098_v45 = vld [vmem:[#allocation2 + $0x88] ss:$48 sps:$4 sm:$0xff]  }
 0x278   :  { %4125 = vmatpush1.bf16.msra.mxu0 %v12011_v46  ;;  %4248 = vmatpush1.bf16.msra.mxu1 %v12014_v47  ;;  %v12103_v46 = vld [vmem:[#allocation2 + $0xe4] ss:$48 sps:$4 sm:$0xff]   ;;  %v12106_v47 = vld [vmem:[#allocation2 + $0xec] ss:$48 sps:$4 sm:$0xff]  }
 0x279   :  { %4126 = vmatprep.subr.bf16.mxu0 %v12019_v49  ;;  %4249 = vmatprep.subr.bf16.mxu1 %v12022_v50  ;;  %v12101_v49 = vld [vmem:[#allocation2 + $0xe0] ss:$48 sps:$4 sm:$0xff]   ;;  %v12104_v50 = vld [vmem:[#allocation2 + $0xe8] ss:$48 sps:$4 sm:$0xff]  }
 0x27c   :  { %4127 = vmatpush1.bf16.msra.mxu0 %v12017_v51  ;;  %4250 = vmatpush1.bf16.msra.mxu1 %v12020_v52  ;;  %v12109_v51 = vld [vmem:[#allocation2 + $0x144] ss:$48 sps:$4 sm:$0xff]   ;;  %v12112_v52 = vld [vmem:[#allocation2 + $0x14c] ss:$48 sps:$4 sm:$0xff]  }
 0x27d   :  { %4128 = vmatprep.subr.bf16.mxu0 %v12025_v53  ;;  %4251 = vmatprep.subr.bf16.mxu1 %v12028_v54  ;;  %v12107_v53 = vld [vmem:[#allocation2 + $0x140] ss:$48 sps:$4 sm:$0xff]   ;;  %v12110_v54 = vld [vmem:[#allocation2 + $0x148] ss:$48 sps:$4 sm:$0xff]  }
 0x280   :  { %4129 = vmatpush1.bf16.msra.mxu0 %v12023_v55  ;;  %4252 = vmatpush1.bf16.msra.mxu1 %v12026_v56  ;;  %v12115_v55 = vld [vmem:[#allocation2 + $0x1a4] ss:$48 sps:$4 sm:$0xff]   ;;  %v12118_v56 = vld [vmem:[#allocation2 + $0x1ac] ss:$48 sps:$4 sm:$0xff]  }
 0x281   :  { %4130 = vmatprep.subr.bf16.mxu0 %v12031_v57  ;;  %4253 = vmatprep.subr.bf16.mxu1 %v12034_v58  ;;  %v12113_v57 = vld [vmem:[#allocation2 + $0x1a0] ss:$48 sps:$4 sm:$0xff]   ;;  %v12121_v58 = vld [vmem:[#allocation2 + $0x204] ss:$48 sps:$4 sm:$0xff]  }
 0x284   :  { %4131 = vmatpush1.bf16.msra.mxu0 %v12029_v59  ;;  %4254 = vmatpush1.bf16.msra.mxu1 %v12032_v60  ;;  %v12124_v59 = vld [vmem:[#allocation2 + $0x20c] ss:$48 sps:$4 sm:$0xff]   ;;  %v12119_v60 = vld [vmem:[#allocation2 + $0x200] ss:$48 sps:$4 sm:$0xff]  }
 0x285   :  { %4132 = vmatprep.subr.bf16.mxu0 %v12037_v61  ;;  %4255 = vmatprep.subr.bf16.mxu1 %v12040_v62  ;;  %v12122_v61 = vld [vmem:[#allocation2 + $0x208] ss:$48 sps:$4 sm:$0xff]   ;;  %v12127_v62 = vld [vmem:[#allocation2 + $0x264] ss:$48 sps:$4 sm:$0xff]  }
 0x288   :  { %4133 = vmatpush1.bf16.msra.mxu0 %v12035_v63  ;;  %4256 = vmatpush1.bf16.msra.mxu1 %v12038_v0  ;;  %v12130_v63 = vld [vmem:[#allocation2 + $0x26c] ss:$48 sps:$4 sm:$0xff]  }
 0x289   :  { %4134 = vmatprep.subr.bf16.mxu0 %v12043_v1  ;;  %4257 = vmatprep.subr.bf16.mxu1 %v12046_v2 }
 0x28c   :  { %4135 = vmatpush1.bf16.msra.mxu0 %v12041_v3  ;;  %4258 = vmatpush1.bf16.msra.mxu1 %v12044_v4 }
 0x28d   :  { %4136 = vmatprep.subr.bf16.mxu0 %v12049_v6  ;;  %4259 = vmatprep.subr.bf16.mxu1 %v12052_v7  ;;  %v12125_v7 = vld [vmem:[#allocation2 + $0x260] ss:$48 sps:$4 sm:$0xff]  }
 0x290   :  { %4137 = vmatpush1.bf16.msra.mxu0 %v12047_v8  ;;  %4260 = vmatpush1.bf16.msra.mxu1 %v12050_v9  ;;  %v12128_v8 = vld [vmem:[#allocation2 + $0x268] ss:$48 sps:$4 sm:$0xff]  }
 0x291   :  { %4138 = vmatprep.subr.bf16.mxu0 %v12055_v10  ;;  %4261 = vmatprep.subr.bf16.mxu1 %v12058_v11  ;;  %v12133_v11 = vld [vmem:[#allocation2 + $0x2c4] ss:$48 sps:$4 sm:$0xff]  }
 0x294   :  { %4139 = vmatpush1.bf16.msra.mxu0 %v12053_v13  ;;  %4262 = vmatpush1.bf16.msra.mxu1 %v12056_v14  ;;  %v12136_v13 = vld [vmem:[#allocation2 + $0x2cc] ss:$48 sps:$4 sm:$0xff]   ;;  %v12131_v14 = vld [vmem:[#allocation2 + $0x2c0] ss:$48 sps:$4 sm:$0xff]  }
 0x295   :  { %4140 = vmatprep.subr.bf16.mxu0 %v12061_v15  ;;  %4263 = vmatprep.subr.bf16.mxu1 %v12064_v16  ;;  %v12134_v15 = vld [vmem:[#allocation2 + $0x2c8] ss:$48 sps:$4 sm:$0xff]   ;;  %v12139_v16 = vld [vmem:[#allocation2 + $0x324] ss:$48 sps:$4 sm:$0xff]  }
 0x298   :  { %4141 = vmatpush1.bf16.msra.mxu0 %v12059_v18  ;;  %4264 = vmatpush1.bf16.msra.mxu1 %v12062_v19  ;;  %v12142_v18 = vld [vmem:[#allocation2 + $0x32c] ss:$48 sps:$4 sm:$0xff]   ;;  %v12137_v19 = vld [vmem:[#allocation2 + $0x320] ss:$48 sps:$4 sm:$0xff]  }
 0x299   :  { %4142 = vmatprep.subr.bf16.mxu0 %v12067_v21  ;;  %4265 = vmatprep.subr.bf16.mxu1 %v12070_v22  ;;  %v12140_v21 = vld [vmem:[#allocation2 + $0x328] ss:$48 sps:$4 sm:$0xff]   ;;  %v12145_v22 = vld [vmem:[#allocation2 + $0x384] ss:$48 sps:$4 sm:$0xff]  }
 0x29c   :  { %4143 = vmatpush1.bf16.msra.mxu0 %v12065_v23  ;;  %4266 = vmatpush1.bf16.msra.mxu1 %v12068_v24  ;;  %v12148_v23 = vld [vmem:[#allocation2 + $0x38c] ss:$48 sps:$4 sm:$0xff]   ;;  %v12143_v24 = vld [vmem:[#allocation2 + $0x380] ss:$48 sps:$4 sm:$0xff]  }
 0x29d   :  { %4144 = vmatprep.subr.bf16.mxu0 %v12073_v25  ;;  %4267 = vmatprep.subr.bf16.mxu1 %v12076_v26  ;;  %v12146_v25 = vld [vmem:[#allocation2 + $0x388] ss:$48 sps:$4 sm:$0xff]   ;;  %v12151_v26 = vld [vmem:[#allocation2 + $0x3e4] ss:$48 sps:$4 sm:$0xff]  }
 0x2a0   :  { %4145 = vmatpush1.bf16.msra.mxu0 %v12071_v27  ;;  %4268 = vmatpush1.bf16.msra.mxu1 %v12074_v28  ;;  %v12154_v27 = vld [vmem:[#allocation2 + $0x3ec] ss:$48 sps:$4 sm:$0xff]   ;;  %v12149_v28 = vld [vmem:[#allocation2 + $0x3e0] ss:$48 sps:$4 sm:$0xff]  }
 0x2a1   :  { %4146 = vmatprep.subr.bf16.mxu0 %v12079_v29  ;;  %4269 = vmatprep.subr.bf16.mxu1 %v12082_v30  ;;  %v12152_v29 = vld [vmem:[#allocation2 + $0x3e8] ss:$48 sps:$4 sm:$0xff]   ;;  %v12157_v30 = vld [vmem:[#allocation2 + $0x444] ss:$48 sps:$4 sm:$0xff]  }
 0x2a4   :  { %4147 = vmatpush1.bf16.msra.mxu0 %v12077_v31  ;;  %4270 = vmatpush1.bf16.msra.mxu1 %v12080_v33  ;;  %v12160_v31 = vld [vmem:[#allocation2 + $0x44c] ss:$48 sps:$4 sm:$0xff]   ;;  %v12155_v33 = vld [vmem:[#allocation2 + $0x440] ss:$48 sps:$4 sm:$0xff]  }
 0x2a5   :  { %4148 = vmatprep.subr.bf16.mxu0 %v12085_v34  ;;  %4271 = vmatprep.subr.bf16.mxu1 %v12088_v35  ;;  %v12158_v34 = vld [vmem:[#allocation2 + $0x448] ss:$48 sps:$4 sm:$0xff]   ;;  %v12163_v35 = vld [vmem:[#allocation2 + $0x4a4] ss:$48 sps:$4 sm:$0xff]  }
 0x2a8   :  { %4149 = vmatpush1.bf16.msra.mxu0 %v12083_v36  ;;  %4272 = vmatpush1.bf16.msra.mxu1 %v12086_v37  ;;  %v12166_v36 = vld [vmem:[#allocation2 + $0x4ac] ss:$48 sps:$4 sm:$0xff]   ;;  %v12161_v37 = vld [vmem:[#allocation2 + $0x4a0] ss:$48 sps:$4 sm:$0xff]  }
 0x2a9   :  { %4282 = vmatprep.subr.bf16.mxu0 %v12091_v38  ;;  %4405 = vmatprep.subr.bf16.mxu1 %v12094_v39  ;;  %v12164_v38 = vld [vmem:[#allocation2 + $0x4a8] ss:$48 sps:$4 sm:$0xff]   ;;  %v12169_v39 = vld [vmem:[#allocation2 + $0x504] ss:$48 sps:$4 sm:$0xff]  }
 0x2ab   :  { %4151 = vmatmul.mubr.bf16.vlgmr.msra.gmra.mrb[4].mxu0 %v14047_v20  ;;  %4274 = vmatmul.mubr.bf16.vlgmr.msra.gmra.mrb[4].mxu1 %v14047_v20 }
 0x2ac   :  { %4283 = vmatpush1.bf16.msra.mxu0 %v12089_v40  ;;  %4406 = vmatpush1.bf16.msra.mxu1 %v12092_v41  ;;  %v12172_v40 = vld [vmem:[#allocation2 + $0x50c] ss:$48 sps:$4 sm:$0xff]   ;;  %v12167_v41 = vld [vmem:[#allocation2 + $0x500] ss:$48 sps:$4 sm:$0xff]  }
 0x2ad   :  { %4284 = vmatprep.subr.bf16.mxu0 %v12097_v42  ;;  %4407 = vmatprep.subr.bf16.mxu1 %v12100_v43  ;;  %v12170_v42 = vld [vmem:[#allocation2 + $0x508] ss:$48 sps:$4 sm:$0xff]   ;;  %v12175_v43 = vld [vmem:[#allocation2 + $0x564] ss:$48 sps:$4 sm:$0xff]  }
 0x2ae   :  { %4314 = vmatprep.mubr.bf16.mxu0 %v14012_v48  ;;  %4437 = vmatprep.mubr.bf16.mxu1 %v14012_v48  ;;  %v12116_v48 = vld [vmem:[#allocation2 + $0x1a8] ss:$48 sps:$4 sm:$0xff]  }
 0x2b0   :  { %4285 = vmatpush1.bf16.msra.mxu0 %v12095_v44  ;;  %4408 = vmatpush1.bf16.msra.mxu1 %v12098_v45  ;;  %v12178_v44 = vld [vmem:[#allocation2 + $0x56c] ss:$48 sps:$4 sm:$0xff]   ;;  %v12173_v45 = vld [vmem:[#allocation2 + $0x560] ss:$48 sps:$4 sm:$0xff]  }
 0x2b1   :  { %4286 = vmatprep.subr.bf16.mxu0 %v12103_v46  ;;  %4409 = vmatprep.subr.bf16.mxu1 %v12106_v47  ;;  %v12176_v46 = vld [vmem:[#allocation2 + $0x568] ss:$48 sps:$4 sm:$0xff]   ;;  %v12181_v47 = vld [vmem:[#allocation2 + $0x5c4] ss:$48 sps:$4 sm:$0xff]  }
 0x2b4   :  { %4287 = vmatpush1.bf16.msra.mxu0 %v12101_v49  ;;  %4410 = vmatpush1.bf16.msra.mxu1 %v12104_v50  ;;  %v12184_v49 = vld [vmem:[#allocation2 + $0x5cc] ss:$48 sps:$4 sm:$0xff]   ;;  %v12179_v50 = vld [vmem:[#allocation2 + $0x5c0] ss:$48 sps:$4 sm:$0xff]  }
 0x2b5   :  { %4288 = vmatprep.subr.bf16.mxu0 %v12109_v51  ;;  %4411 = vmatprep.subr.bf16.mxu1 %v12112_v52  ;;  %v12182_v51 = vld [vmem:[#allocation2 + $0x5c8] ss:$48 sps:$4 sm:$0xff]   ;;  %v12187_v52 = vld [vmem:[#allocation2 + $0x624] ss:$48 sps:$4 sm:$0xff]  }
 0x2b8   :  { %4289 = vmatpush1.bf16.msra.mxu0 %v12107_v53  ;;  %4412 = vmatpush1.bf16.msra.mxu1 %v12110_v54  ;;  %v12190_v53 = vld [vmem:[#allocation2 + $0x62c] ss:$48 sps:$4 sm:$0xff]   ;;  %v12185_v54 = vld [vmem:[#allocation2 + $0x620] ss:$48 sps:$4 sm:$0xff]  }
 0x2b9   :  { %4290 = vmatprep.subr.bf16.mxu0 %v12115_v55  ;;  %4413 = vmatprep.subr.bf16.mxu1 %v12118_v56  ;;  %v12188_v55 = vld [vmem:[#allocation2 + $0x628] ss:$48 sps:$4 sm:$0xff]   ;;  %v12193_v56 = vld [vmem:[#allocation2 + $0x684] ss:$48 sps:$4 sm:$0xff]  }
 0x2bc   :  { %4291 = vmatpush1.bf16.msra.mxu0 %v12113_v57  ;;  %4414 = vmatpush1.bf16.msra.mxu1 %v12116_v48  ;;  %v12196_v57 = vld [vmem:[#allocation2 + $0x68c] ss:$48 sps:$4 sm:$0xff]   ;;  %v12191_v48 = vld [vmem:[#allocation2 + $0x680] ss:$48 sps:$4 sm:$0xff]  }
 0x2bd   :  { %4292 = vmatprep.subr.bf16.mxu0 %v12121_v58  ;;  %4415 = vmatprep.subr.bf16.mxu1 %v12124_v59  ;;  %v12194_v58 = vld [vmem:[#allocation2 + $0x688] ss:$48 sps:$4 sm:$0xff]   ;;  %v12199_v59 = vld [vmem:[#allocation2 + $0x6e4] ss:$48 sps:$4 sm:$0xff]  }
 0x2be   :  { %v14065_v0 = vpop.f32.mrb[0].mxu0  ;;  %v14067_v1 = vpop.f32.mrb[0].mxu1 }
 0x2bf   :  { %v14069_v2 = vpop.f32.mrb[1].mxu0  ;;  %v14071_v3 = vpop.f32.mrb[1].mxu1 }
 0x2c0   :  { %v3910_v4 = vpop.f32.mrb[2].mxu0  ;;  %v4033_v6 = vpop.f32.mrb[2].mxu1  ;;  %4293 = vmatpush1.bf16.msra.mxu0 %v12119_v60  ;;  %4416 = vmatpush1.bf16.msra.mxu1 %v12122_v61  ;;  %v12202_v60 = vld [vmem:[#allocation2 + $0x6ec] ss:$48 sps:$4 sm:$0xff]   ;;  %v12197_v61 = vld [vmem:[#allocation2 + $0x6e0] ss:$48 sps:$4 sm:$0xff]  }
 0x2c1   :  { %v3911_v9 = vpop.f32.mrb[3].mxu0  ;;  %v4034_v10 = vpop.f32.mrb[3].mxu1  ;;  %4294 = vmatprep.subr.bf16.mxu0 %v12127_v62  ;;  %4417 = vmatprep.subr.bf16.mxu1 %v12130_v63  ;;  %v12200_v62 = vld [vmem:[#allocation2 + $0x6e8] ss:$48 sps:$4 sm:$0xff]   ;;  %v12205_v63 = vld [vmem:[#allocation2 + $0x744] ss:$48 sps:$4 sm:$0xff]  }
 0x2c2   :  { %v12208_v4 = vld [vmem:[#allocation2 + $0x74c] ss:$48 sps:$4 sm:$0xff]   ;;  %v12203_v6 = vld [vmem:[#allocation2 + $0x740] ss:$48 sps:$4 sm:$0xff]   ;;  %v12212_v10 = vld [vmem:[#allocation2 + $0x7a8] ss:$48 sps:$4 sm:$0xff]  }
 0x2c3   :  { %v12209_v9 = vld [vmem:[#allocation2 + $0x7a0] ss:$48 sps:$4 sm:$0xff]  }
 0x2c4   :  { %4295 = vmatpush1.bf16.msra.mxu0 %v12125_v7  ;;  %4418 = vmatpush1.bf16.msra.mxu1 %v12128_v8  ;;  %v12211_v7 = vld [vmem:[#allocation2 + $0x7a4] ss:$48 sps:$4 sm:$0xff]   ;;  %v12214_v8 = vld [vmem:[#allocation2 + $0x7ac] ss:$48 sps:$4 sm:$0xff]  }
 0x2c5   :  { %4296 = vmatprep.subr.bf16.mxu0 %v12133_v11  ;;  %4419 = vmatprep.subr.bf16.mxu1 %v12136_v13  ;;  %v12220_v11 = vld [vmem:[#allocation2 + $0x80c] ss:$48 sps:$4 sm:$0xff]   ;;  %v12215_v13 = vld [vmem:[#allocation2 + $0x800] ss:$48 sps:$4 sm:$0xff]  }
 0x2c8   :  { %4297 = vmatpush1.bf16.msra.mxu0 %v12131_v14  ;;  %4420 = vmatpush1.bf16.msra.mxu1 %v12134_v15  ;;  %v12218_v14 = vld [vmem:[#allocation2 + $0x808] ss:$48 sps:$4 sm:$0xff]   ;;  %v12223_v15 = vld [vmem:[#allocation2 + $0x864] ss:$48 sps:$4 sm:$0xff]  }
 0x2c9   :  { %4298 = vmatprep.subr.bf16.mxu0 %v12139_v16  ;;  %4421 = vmatprep.subr.bf16.mxu1 %v12142_v18  ;;  %v12226_v16 = vld [vmem:[#allocation2 + $0x86c] ss:$48 sps:$4 sm:$0xff]   ;;  %v12221_v18 = vld [vmem:[#allocation2 + $0x860] ss:$48 sps:$4 sm:$0xff]  }
 0x2cc   :  { %4299 = vmatpush1.bf16.msra.mxu0 %v12137_v19  ;;  %4422 = vmatpush1.bf16.msra.mxu1 %v12140_v21  ;;  %v12224_v19 = vld [vmem:[#allocation2 + $0x868] ss:$48 sps:$4 sm:$0xff]   ;;  %v12229_v21 = vld [vmem:[#allocation2 + $0x8c4] ss:$48 sps:$4 sm:$0xff]  }
 0x2cd   :  { %4300 = vmatprep.subr.bf16.mxu0 %v12145_v22  ;;  %4423 = vmatprep.subr.bf16.mxu1 %v12148_v23  ;;  %v12232_v22 = vld [vmem:[#allocation2 + $0x8cc] ss:$48 sps:$4 sm:$0xff]   ;;  %v12227_v23 = vld [vmem:[#allocation2 + $0x8c0] ss:$48 sps:$4 sm:$0xff]  }
 0x2d0   :  { %4301 = vmatpush1.bf16.msra.mxu0 %v12143_v24  ;;  %4424 = vmatpush1.bf16.msra.mxu1 %v12146_v25  ;;  %v12230_v24 = vld [vmem:[#allocation2 + $0x8c8] ss:$48 sps:$4 sm:$0xff]   ;;  %v12235_v25 = vld [vmem:[#allocation2 + $0x924] ss:$48 sps:$4 sm:$0xff]  }
 0x2d1   :  { %4302 = vmatprep.subr.bf16.mxu0 %v12151_v26  ;;  %4425 = vmatprep.subr.bf16.mxu1 %v12154_v27  ;;  %v12238_v26 = vld [vmem:[#allocation2 + $0x92c] ss:$48 sps:$4 sm:$0xff]   ;;  %v12233_v27 = vld [vmem:[#allocation2 + $0x920] ss:$48 sps:$4 sm:$0xff]  }
 0x2d4   :  { %4303 = vmatpush1.bf16.msra.mxu0 %v12149_v28  ;;  %4426 = vmatpush1.bf16.msra.mxu1 %v12152_v29  ;;  %v12236_v28 = vld [vmem:[#allocation2 + $0x928] ss:$48 sps:$4 sm:$0xff]   ;;  %v12241_v29 = vld [vmem:[#allocation2 + $0x984] ss:$48 sps:$4 sm:$0xff]  }
 0x2d5   :  { %4304 = vmatprep.subr.bf16.mxu0 %v12157_v30  ;;  %4427 = vmatprep.subr.bf16.mxu1 %v12160_v31  ;;  %v12244_v30 = vld [vmem:[#allocation2 + $0x98c] ss:$48 sps:$4 sm:$0xff]   ;;  %v12239_v31 = vld [vmem:[#allocation2 + $0x980] ss:$48 sps:$4 sm:$0xff]  }
 0x2d8   :  { %4305 = vmatpush1.bf16.msra.mxu0 %v12155_v33  ;;  %4428 = vmatpush1.bf16.msra.mxu1 %v12158_v34  ;;  %v12242_v33 = vld [vmem:[#allocation2 + $0x988] ss:$48 sps:$4 sm:$0xff]   ;;  %v12247_v34 = vld [vmem:[#allocation2 + $0x9e4] ss:$48 sps:$4 sm:$0xff]  }
 0x2d9   :  { %4306 = vmatprep.subr.bf16.mxu0 %v12163_v35  ;;  %4429 = vmatprep.subr.bf16.mxu1 %v12166_v36  ;;  %v12250_v35 = vld [vmem:[#allocation2 + $0x9ec] ss:$48 sps:$4 sm:$0xff]   ;;  %v12245_v36 = vld [vmem:[#allocation2 + $0x9e0] ss:$48 sps:$4 sm:$0xff]  }
 0x2dc   :  { %4307 = vmatpush1.bf16.msra.mxu0 %v12161_v37  ;;  %4430 = vmatpush1.bf16.msra.mxu1 %v12164_v38  ;;  %v12248_v37 = vld [vmem:[#allocation2 + $0x9e8] ss:$48 sps:$4 sm:$0xff]   ;;  %v12253_v38 = vld [vmem:[#allocation2 + $0xa44] ss:$48 sps:$4 sm:$0xff]  }
 0x2dd   :  { %4308 = vmatprep.subr.bf16.mxu0 %v12169_v39  ;;  %4431 = vmatprep.subr.bf16.mxu1 %v12172_v40  ;;  %v12256_v39 = vld [vmem:[#allocation2 + $0xa4c] ss:$48 sps:$4 sm:$0xff]   ;;  %v12251_v40 = vld [vmem:[#allocation2 + $0xa40] ss:$48 sps:$4 sm:$0xff]  }
 0x2e0   :  { %4309 = vmatpush1.bf16.msra.mxu0 %v12167_v41  ;;  %4432 = vmatpush1.bf16.msra.mxu1 %v12170_v42  ;;  %v12254_v41 = vld [vmem:[#allocation2 + $0xa48] ss:$48 sps:$4 sm:$0xff]   ;;  %v12259_v42 = vld [vmem:[#allocation2 + $0xaa4] ss:$48 sps:$4 sm:$0xff]  }
 0x2e1   :  { %4310 = vmatprep.subr.bf16.mxu0 %v12175_v43  ;;  %4433 = vmatprep.subr.bf16.mxu1 %v12178_v44  ;;  %v12262_v43 = vld [vmem:[#allocation2 + $0xaac] ss:$48 sps:$4 sm:$0xff]   ;;  %v12257_v44 = vld [vmem:[#allocation2 + $0xaa0] ss:$48 sps:$4 sm:$0xff]  }
 0x2e4   :  { %4311 = vmatpush1.bf16.msra.mxu0 %v12173_v45  ;;  %4434 = vmatpush1.bf16.msra.mxu1 %v12176_v46  ;;  %v12260_v45 = vld [vmem:[#allocation2 + $0xaa8] ss:$48 sps:$4 sm:$0xff]   ;;  %v12265_v46 = vld [vmem:[#allocation2 + $0xb04] ss:$48 sps:$4 sm:$0xff]  }
 0x2e5   :  { %4312 = vmatprep.subr.bf16.mxu0 %v12181_v47  ;;  %4435 = vmatprep.subr.bf16.mxu1 %v12184_v49  ;;  %v12268_v47 = vld [vmem:[#allocation2 + $0xb0c] ss:$48 sps:$4 sm:$0xff]   ;;  %v12263_v49 = vld [vmem:[#allocation2 + $0xb00] ss:$48 sps:$4 sm:$0xff]  }
 0x2e8   :  { %4313 = vmatpush1.bf16.msra.mxu0 %v12179_v50  ;;  %4436 = vmatpush1.bf16.msra.mxu1 %v12182_v51  ;;  %v12266_v50 = vld [vmem:[#allocation2 + $0xb08] ss:$48 sps:$4 sm:$0xff]   ;;  %v12271_v51 = vld [vmem:[#allocation2 + $0xb64] ss:$48 sps:$4 sm:$0xff]  }
 0x2e9   :  { %4323 = vmatprep.subr.bf16.mxu0 %v12187_v52  ;;  %4446 = vmatprep.subr.bf16.mxu1 %v12190_v53  ;;  %v12274_v52 = vld [vmem:[#allocation2 + $0xb6c] ss:$48 sps:$4 sm:$0xff]   ;;  %v12269_v53 = vld [vmem:[#allocation2 + $0xb60] ss:$48 sps:$4 sm:$0xff]  }
 0x2eb   :  { %4315 = vmatmul.mubr.bf16.vlgmr.msra.gmra.mrb[8].mxu0 %v14019_v5  ;;  %4438 = vmatmul.mubr.bf16.vlgmr.msra.gmra.mrb[8].mxu1 %v14019_v5  ;;  %v12206_v5 = vld [vmem:[#allocation2 + $0x748] ss:$48 sps:$4 sm:$0xff]  }
 0x2ec   :  { %4324 = vmatpush1.bf16.msra.mxu0 %v12185_v54  ;;  %4447 = vmatpush1.bf16.msra.mxu1 %v12188_v55  ;;  %v12272_v54 = vld [vmem:[#allocation2 + $0xb68] ss:$48 sps:$4 sm:$0xff]   ;;  %v12277_v55 = vld [vmem:[#allocation2 + $0xbc4] ss:$48 sps:$4 sm:$0xff]  }
 0x2ed   :  { %4325 = vmatprep.subr.bf16.mxu0 %v12193_v56  ;;  %4448 = vmatprep.subr.bf16.mxu1 %v12196_v57  ;;  %v12280_v56 = vld [vmem:[#allocation2 + $0xbcc] ss:$48 sps:$4 sm:$0xff]   ;;  %v12275_v57 = vld [vmem:[#allocation2 + $0xbc0] ss:$48 sps:$4 sm:$0xff]  }
 0x2ee   :  { %4355 = vmatprep.mubr.bf16.mxu0 %v14026_v32  ;;  %4478 = vmatprep.mubr.bf16.mxu1 %v14026_v32  ;;  %v12217_v32 = vld [vmem:[#allocation2 + $0x804] ss:$48 sps:$4 sm:$0xff]  }
 0x2f0   :  { %4326 = vmatpush1.bf16.msra.mxu0 %v12191_v48  ;;  %4449 = vmatpush1.bf16.msra.mxu1 %v12194_v58  ;;  %v12278_v48 = vld [vmem:[#allocation2 + $0xbc8] ss:$48 sps:$4 sm:$0xff]   ;;  %v12283_v58 = vld [vmem:[#allocation2 + $0xc24] ss:$48 sps:$4 sm:$0xff]  }
 0x2f1   :  { %4327 = vmatprep.subr.bf16.mxu0 %v12199_v59  ;;  %4450 = vmatprep.subr.bf16.mxu1 %v12202_v60  ;;  %v12286_v59 = vld [vmem:[#allocation2 + $0xc2c] ss:$48 sps:$4 sm:$0xff]   ;;  %v12281_v60 = vld [vmem:[#allocation2 + $0xc20] ss:$48 sps:$4 sm:$0xff]  }
 0x2f4   :  { %4328 = vmatpush1.bf16.msra.mxu0 %v12197_v61  ;;  %4451 = vmatpush1.bf16.msra.mxu1 %v12200_v62  ;;  %v12284_v61 = vld [vmem:[#allocation2 + $0xc28] ss:$48 sps:$4 sm:$0xff]   ;;  %v12289_v62 = vld [vmem:[#allocation2 + $0xc84] ss:$48 sps:$4 sm:$0xff]  }
 0x2f5   :  { %4329 = vmatprep.subr.bf16.mxu0 %v12205_v63  ;;  %4452 = vmatprep.subr.bf16.mxu1 %v12208_v4  ;;  %v12292_v63 = vld [vmem:[#allocation2 + $0xc8c] ss:$48 sps:$4 sm:$0xff]   ;;  %v12287_v4 = vld [vmem:[#allocation2 + $0xc80] ss:$48 sps:$4 sm:$0xff]  }
 0x2f8   :  { %4330 = vmatpush1.bf16.msra.mxu0 %v12203_v6  ;;  %4453 = vmatpush1.bf16.msra.mxu1 %v12206_v5  ;;  %v12290_v6 = vld [vmem:[#allocation2 + $0xc88] ss:$48 sps:$4 sm:$0xff]   ;;  %v12295_v5 = vld [vmem:[#allocation2 + $0xce4] ss:$48 sps:$4 sm:$0xff]  }
 0x2f9   :  { %4331 = vmatprep.subr.bf16.mxu0 %v12211_v7  ;;  %4454 = vmatprep.subr.bf16.mxu1 %v12214_v8  ;;  %v12298_v7 = vld [vmem:[#allocation2 + $0xcec] ss:$48 sps:$4 sm:$0xff]   ;;  %v12293_v8 = vld [vmem:[#allocation2 + $0xce0] ss:$48 sps:$4 sm:$0xff]  }
 0x2fc   :  { %4332 = vmatpush1.bf16.msra.mxu0 %v12209_v9  ;;  %4455 = vmatpush1.bf16.msra.mxu1 %v12212_v10  ;;  %v12296_v9 = vld [vmem:[#allocation2 + $0xce8] ss:$48 sps:$4 sm:$0xff]   ;;  %v12301_v10 = vld [vmem:[#allocation2 + $0xd44] ss:$48 sps:$4 sm:$0xff]  }
 0x2fd   :  { %4333 = vmatprep.subr.bf16.mxu0 %v12217_v32  ;;  %4456 = vmatprep.subr.bf16.mxu1 %v12220_v11  ;;  %v12304_v32 = vld [vmem:[#allocation2 + $0xd4c] ss:$48 sps:$4 sm:$0xff]   ;;  %v12299_v11 = vld [vmem:[#allocation2 + $0xd40] ss:$48 sps:$4 sm:$0xff]  }
 0x300   :  { %4334 = vmatpush1.bf16.msra.mxu0 %v12215_v13  ;;  %4457 = vmatpush1.bf16.msra.mxu1 %v12218_v14  ;;  %v12307_v13 = vld [vmem:[#allocation2 + $0xda4] ss:$48 sps:$4 sm:$0xff]   ;;  %v12310_v14 = vld [vmem:[#allocation2 + $0xdac] ss:$48 sps:$4 sm:$0xff]  }
 0x301   :  { %4335 = vmatprep.subr.bf16.mxu0 %v12223_v15  ;;  %4458 = vmatprep.subr.bf16.mxu1 %v12226_v16  ;;  %v12305_v15 = vld [vmem:[#allocation2 + $0xda0] ss:$48 sps:$4 sm:$0xff]   ;;  %v12308_v16 = vld [vmem:[#allocation2 + $0xda8] ss:$48 sps:$4 sm:$0xff]  }
 0x304   :  { %4336 = vmatpush1.bf16.msra.mxu0 %v12221_v18  ;;  %4459 = vmatpush1.bf16.msra.mxu1 %v12224_v19  ;;  %v12316_v18 = vld [vmem:[#allocation2 + $0xe0c] ss:$48 sps:$4 sm:$0xff]   ;;  %v12311_v19 = vld [vmem:[#allocation2 + $0xe00] ss:$48 sps:$4 sm:$0xff]  }
 0x305   :  { %4337 = vmatprep.subr.bf16.mxu0 %v12229_v21  ;;  %4460 = vmatprep.subr.bf16.mxu1 %v12232_v22  ;;  %v12314_v21 = vld [vmem:[#allocation2 + $0xe08] ss:$48 sps:$4 sm:$0xff]   ;;  %v12319_v22 = vld [vmem:[#allocation2 + $0xe64] ss:$48 sps:$4 sm:$0xff]  }
 0x308   :  { %4338 = vmatpush1.bf16.msra.mxu0 %v12227_v23  ;;  %4461 = vmatpush1.bf16.msra.mxu1 %v12230_v24  ;;  %v12322_v23 = vld [vmem:[#allocation2 + $0xe6c] ss:$48 sps:$4 sm:$0xff]   ;;  %v12317_v24 = vld [vmem:[#allocation2 + $0xe60] ss:$48 sps:$4 sm:$0xff]  }
 0x309   :  { %4339 = vmatprep.subr.bf16.mxu0 %v12235_v25  ;;  %4462 = vmatprep.subr.bf16.mxu1 %v12238_v26  ;;  %v12320_v25 = vld [vmem:[#allocation2 + $0xe68] ss:$48 sps:$4 sm:$0xff]   ;;  %v12325_v26 = vld [vmem:[#allocation2 + $0xec4] ss:$48 sps:$4 sm:$0xff]  }
 0x30c   :  { %4340 = vmatpush1.bf16.msra.mxu0 %v12233_v27  ;;  %4463 = vmatpush1.bf16.msra.mxu1 %v12236_v28  ;;  %v12328_v27 = vld [vmem:[#allocation2 + $0xecc] ss:$48 sps:$4 sm:$0xff]   ;;  %v12323_v28 = vld [vmem:[#allocation2 + $0xec0] ss:$48 sps:$4 sm:$0xff]  }
 0x30d   :  { %4341 = vmatprep.subr.bf16.mxu0 %v12241_v29  ;;  %4464 = vmatprep.subr.bf16.mxu1 %v12244_v30  ;;  %v12326_v29 = vld [vmem:[#allocation2 + $0xec8] ss:$48 sps:$4 sm:$0xff]   ;;  %v12331_v30 = vld [vmem:[#allocation2 + $0xf24] ss:$48 sps:$4 sm:$0xff]  }
 0x310   :  { %4342 = vmatpush1.bf16.msra.mxu0 %v12239_v31  ;;  %4465 = vmatpush1.bf16.msra.mxu1 %v12242_v33  ;;  %v12334_v31 = vld [vmem:[#allocation2 + $0xf2c] ss:$48 sps:$4 sm:$0xff]   ;;  %v12329_v33 = vld [vmem:[#allocation2 + $0xf20] ss:$48 sps:$4 sm:$0xff]  }
 0x311   :  { %4343 = vmatprep.subr.bf16.mxu0 %v12247_v34  ;;  %4466 = vmatprep.subr.bf16.mxu1 %v12250_v35  ;;  %v12332_v34 = vld [vmem:[#allocation2 + $0xf28] ss:$48 sps:$4 sm:$0xff]   ;;  %v12337_v35 = vld [vmem:[#allocation2 + $0xf84] ss:$48 sps:$4 sm:$0xff]  }
 0x314   :  { %4344 = vmatpush1.bf16.msra.mxu0 %v12245_v36  ;;  %4467 = vmatpush1.bf16.msra.mxu1 %v12248_v37  ;;  %v12340_v36 = vld [vmem:[#allocation2 + $0xf8c] ss:$48 sps:$4 sm:$0xff]   ;;  %v12335_v37 = vld [vmem:[#allocation2 + $0xf80] ss:$48 sps:$4 sm:$0xff]  }
 0x315   :  { %4345 = vmatprep.subr.bf16.mxu0 %v12253_v38  ;;  %4468 = vmatprep.subr.bf16.mxu1 %v12256_v39  ;;  %v12338_v38 = vld [vmem:[#allocation2 + $0xf88] ss:$48 sps:$4 sm:$0xff]   ;;  %v12343_v39 = vld [vmem:[#allocation2 + $0xfe4] ss:$48 sps:$4 sm:$0xff]  }
 0x318   :  { %4346 = vmatpush1.bf16.msra.mxu0 %v12251_v40  ;;  %4469 = vmatpush1.bf16.msra.mxu1 %v12254_v41  ;;  %v12346_v40 = vld [vmem:[#allocation2 + $0xfec] ss:$48 sps:$4 sm:$0xff]   ;;  %v12341_v41 = vld [vmem:[#allocation2 + $0xfe0] ss:$48 sps:$4 sm:$0xff]  }
 0x319   :  { %4347 = vmatprep.subr.bf16.mxu0 %v12259_v42  ;;  %4470 = vmatprep.subr.bf16.mxu1 %v12262_v43  ;;  %v12344_v42 = vld [vmem:[#allocation2 + $0xfe8] ss:$48 sps:$4 sm:$0xff]   ;;  %v850_v43 = vlaneseq }
 0x31c   :  { %4348 = vmatpush1.bf16.msra.mxu0 %v12257_v44  ;;  %4471 = vmatpush1.bf16.msra.mxu1 %v12260_v45  ;;  %v12349_v44 = vld [vmem:[#allocation2 + $0x1044] ss:$48 sps:$4 sm:$0xff]   ;;  %v12352_v45 = vld [vmem:[#allocation2 + $0x104c] ss:$48 sps:$4 sm:$0xff]  }
 0x31d   :  { %4349 = vmatprep.subr.bf16.mxu0 %v12265_v46  ;;  %4472 = vmatprep.subr.bf16.mxu1 %v12268_v47  ;;  %v12347_v46 = vld [vmem:[#allocation2 + $0x1040] ss:$48 sps:$4 sm:$0xff]   ;;  %v12350_v47 = vld [vmem:[#allocation2 + $0x1048] ss:$48 sps:$4 sm:$0xff]  }
 0x320   :  { %4350 = vmatpush1.bf16.msra.mxu0 %v12263_v49  ;;  %4473 = vmatpush1.bf16.msra.mxu1 %v12266_v50  ;;  %v14081_v49 = vshrl.u32 %v850_v43, 7  ;;  %v12355_v50 = vld [vmem:[#allocation2 + $0x10a4] ss:$48 sps:$4 sm:$0xff]  }
 0x321   :  { %4351 = vmatprep.subr.bf16.mxu0 %v12271_v51  ;;  %4474 = vmatprep.subr.bf16.mxu1 %v12274_v52  ;;  %v12358_v51 = vld [vmem:[#allocation2 + $0x10ac] ss:$48 sps:$4 sm:$0xff]   ;;  %v12353_v52 = vld [vmem:[#allocation2 + $0x10a0] ss:$48 sps:$4 sm:$0xff]  }
 0x324   :  { %4352 = vmatpush1.bf16.msra.mxu0 %v12269_v53  ;;  %4475 = vmatpush1.bf16.msra.mxu1 %v12272_v54  ;;  %v12356_v53 = vld [vmem:[#allocation2 + $0x10a8] ss:$48 sps:$4 sm:$0xff]   ;;  %v14083_v54 = vld [vmem:[#allocation4] sm:$0xff] }
 0x325   :  { %4353 = vmatprep.subr.bf16.mxu0 %v12277_v55  ;;  %4476 = vmatprep.subr.bf16.mxu1 %v12280_v56  ;;  %v14086_v55 = vsub.s32 1, %v14081_v49  ;;  %v12361_v56 = vld [vmem:[#allocation2 + $0x1104] ss:$48 sps:$4 sm:$0xff]  }
 0x328   :  { %4354 = vmatpush1.bf16.msra.mxu0 %v12275_v57  ;;  %4477 = vmatpush1.bf16.msra.mxu1 %v12278_v48  ;;  %v12364_v57 = vld [vmem:[#allocation2 + $0x110c] ss:$48 sps:$4 sm:$0xff]   ;;  %v12359_v48 = vld [vmem:[#allocation2 + $0x1100] ss:$48 sps:$4 sm:$0xff]  }
 0x329   :  { %4364 = vmatprep.subr.bf16.mxu0 %v12283_v58  ;;  %4487 = vmatprep.subr.bf16.mxu1 %v12286_v59  ;;  %v12362_v58 = vld [vmem:[#allocation2 + $0x1108] ss:$48 sps:$4 sm:$0xff]   ;;  %v857_v59 = vrot.slane %v14083_v54, %v14086_v55 }
 0x32b   :  { %4356 = vmatmul.mubr.bf16.vlgmr.msra.gmra.mrb[8].mxu0 %v14033_v12  ;;  %4479 = vmatmul.mubr.bf16.vlgmr.msra.gmra.mrb[8].mxu1 %v14033_v12  ;;  %v12302_v12 = vld [vmem:[#allocation2 + $0xd48] ss:$48 sps:$4 sm:$0xff]  }
 0x32c   :  { %4365 = vmatpush1.bf16.msra.mxu0 %v12281_v60  ;;  %4488 = vmatpush1.bf16.msra.mxu1 %v12284_v61  ;;  %v12367_v60 = vld [vmem:[#allocation2 + $0x1164] ss:$48 sps:$4 sm:$0xff]   ;;  %v12370_v61 = vld [vmem:[#allocation2 + $0x116c] ss:$48 sps:$4 sm:$0xff]  }
 0x32d   :  { %4366 = vmatprep.subr.bf16.mxu0 %v12289_v62  ;;  %4489 = vmatprep.subr.bf16.mxu1 %v12292_v63  ;;  %v12365_v62 = vld [vmem:[#allocation2 + $0x1160] ss:$48 sps:$4 sm:$0xff]   ;;  %v12368_v63 = vld [vmem:[#allocation2 + $0x1168] ss:$48 sps:$4 sm:$0xff]  }
 0x32e   :  { %4396 = vmatprep.mubr.bf16.mxu0 %v14038_v17  ;;  %4519 = vmatprep.mubr.bf16.mxu1 %v14038_v17  ;;  %v12313_v17 = vld [vmem:[#allocation2 + $0xe04] ss:$48 sps:$4 sm:$0xff]  }
 0x330   :  { %4367 = vmatpush1.bf16.msra.mxu0 %v12287_v4  ;;  %4490 = vmatpush1.bf16.msra.mxu1 %v12290_v6  ;;  %v11373_v4 = vadd.f32 %v14069_v2, %v857_v59  ;;  %v12373_v6 = vld [vmem:[#allocation2 + $0x11c4] ss:$48 sps:$4 sm:$0xff]  }
 0x331   :  { %4368 = vmatprep.subr.bf16.mxu0 %v12295_v5  ;;  %4491 = vmatprep.subr.bf16.mxu1 %v12298_v7  ;;  %v12376_v5 = vld [vmem:[#allocation2 + $0x11cc] ss:$48 sps:$4 sm:$0xff]   ;;  %v12371_v7 = vld [vmem:[#allocation2 + $0x11c0] ss:$48 sps:$4 sm:$0xff]  }
 0x332   :  { %v12436_v59 = vld [vmem:[#allocation6 + $0x174] ss:$20 sps:$4 sm:$0xff]  }
 0x334   :  { %4369 = vmatpush1.bf16.msra.mxu0 %v12293_v8  ;;  %4492 = vmatpush1.bf16.msra.mxu1 %v12296_v9  ;;  %v12374_v8 = vld [vmem:[#allocation2 + $0x11c8] ss:$48 sps:$4 sm:$0xff]   ;;  %v4529_v9 = vmax.f32 %v11373_v4, 0.0 }
 0x335   :  { %4370 = vmatprep.subr.bf16.mxu0 %v12301_v10  ;;  %4493 = vmatprep.subr.bf16.mxu1 %v12304_v32  ;;  %v12379_v10 = vld [vmem:[#allocation6 + $0x4] ss:$20 sps:$4 sm:$0xff]   ;;  %v12382_v32 = vld [vmem:[#allocation6 + $0xc] ss:$20 sps:$4 sm:$0xff]  }
 0x336   :  { %v14091_v2 = vpack.c.bf16 %v4529_v9, %v4529_v9  ;;  %v12440_v4 = vld [vmem:[#allocation6 + $0x198] ss:$20 sps:$4 sm:$0xff]   ;;  %v14109_v9 = vsub.s32 3, %v14081_v49 }
 0x338   :  { %4371 = vmatpush1.bf16.msra.mxu0 %v12299_v11  ;;  %4494 = vmatpush1.bf16.msra.mxu1 %v12302_v12  ;;  %v12377_v11 = vld [vmem:[#allocation6] ss:$20 sps:$4 sm:$0xff]   ;;  %v12380_v12 = vld [vmem:[#allocation6 + $0x8] ss:$20 sps:$4 sm:$0xff]  }
 0x339   :  { %4372 = vmatprep.subr.bf16.mxu0 %v12307_v13  ;;  %4495 = vmatprep.subr.bf16.mxu1 %v12310_v14  ;;  %v12385_v13 = vld [vmem:[#allocation6 + $0x2c] ss:$20 sps:$4 sm:$0xff]   ;;  %v12388_v14 = vld [vmem:[#allocation6 + $0x34] ss:$20 sps:$4 sm:$0xff]  }
 0x33c   :  { %4373 = vmatpush1.bf16.msra.mxu0 %v12305_v15  ;;  %4496 = vmatpush1.bf16.msra.mxu1 %v12308_v16  ;;  %v12383_v15 = vld [vmem:[#allocation6 + $0x28] ss:$20 sps:$4 sm:$0xff]   ;;  %v12386_v16 = vld [vmem:[#allocation6 + $0x30] ss:$20 sps:$4 sm:$0xff]  }
 0x33d   :  { %4374 = vmatprep.subr.bf16.mxu0 %v12313_v17  ;;  %4497 = vmatprep.subr.bf16.mxu1 %v12316_v18  ;;  %v12391_v17 = vld [vmem:[#allocation6 + $0x54] ss:$20 sps:$4 sm:$0xff]   ;;  %v12394_v18 = vld [vmem:[#allocation6 + $0x5c] ss:$20 sps:$4 sm:$0xff]  }
 0x340   :  { %4375 = vmatpush1.bf16.msra.mxu0 %v12311_v19  ;;  %4498 = vmatpush1.bf16.msra.mxu1 %v12314_v21  ;;  %v12389_v19 = vld [vmem:[#allocation6 + $0x50] ss:$20 sps:$4 sm:$0xff]   ;;  %v12392_v21 = vld [vmem:[#allocation6 + $0x58] ss:$20 sps:$4 sm:$0xff]  }
 0x341   :  { %4376 = vmatprep.subr.bf16.mxu0 %v12319_v22  ;;  %4499 = vmatprep.subr.bf16.mxu1 %v12322_v23  ;;  %v12397_v22 = vld [vmem:[#allocation6 + $0x7c] ss:$20 sps:$4 sm:$0xff]   ;;  %v12400_v23 = vld [vmem:[#allocation6 + $0x84] ss:$20 sps:$4 sm:$0xff]  }
 0x344   :  { %4377 = vmatpush1.bf16.msra.mxu0 %v12317_v24  ;;  %4500 = vmatpush1.bf16.msra.mxu1 %v12320_v25  ;;  %v12398_v24 = vld [vmem:[#allocation6 + $0x80] ss:$20 sps:$4 sm:$0xff]   ;;  %v12403_v25 = vld [vmem:[#allocation6 + $0xa4] ss:$20 sps:$4 sm:$0xff]  }
 0x345   :  { %4378 = vmatprep.subr.bf16.mxu0 %v12325_v26  ;;  %4501 = vmatprep.subr.bf16.mxu1 %v12328_v27  ;;  %v12401_v26 = vld [vmem:[#allocation6 + $0xa0] ss:$20 sps:$4 sm:$0xff]  }
 0x346   :  { %v12406_v27 = vld [vmem:[#allocation6 + $0xac] ss:$20 sps:$4 sm:$0xff]  }
 0x348   :  { %4379 = vmatpush1.bf16.msra.mxu0 %v12323_v28  ;;  %4502 = vmatpush1.bf16.msra.mxu1 %v12326_v29  ;;  %v12404_v28 = vld [vmem:[#allocation6 + $0xa8] ss:$20 sps:$4 sm:$0xff]   ;;  %v12409_v29 = vld [vmem:[#allocation6 + $0xcc] ss:$20 sps:$4 sm:$0xff]  }
 0x349   :  { %4380 = vmatprep.subr.bf16.mxu0 %v12331_v30  ;;  %4503 = vmatprep.subr.bf16.mxu1 %v12334_v31  ;;  %v12412_v30 = vld [vmem:[#allocation6 + $0xd4] ss:$20 sps:$4 sm:$0xff]  }
 0x34a   :  { %v12407_v31 = vld [vmem:[#allocation6 + $0xc8] ss:$20 sps:$4 sm:$0xff]  }
 0x34c   :  { %4381 = vmatpush1.bf16.msra.mxu0 %v12329_v33  ;;  %4504 = vmatpush1.bf16.msra.mxu1 %v12332_v34  ;;  %v12410_v33 = vld [vmem:[#allocation6 + $0xd0] ss:$20 sps:$4 sm:$0xff]   ;;  %v12415_v34 = vld [vmem:[#allocation6 + $0xf4] ss:$20 sps:$4 sm:$0xff]  }
 0x34d   :  { %4382 = vmatprep.subr.bf16.mxu0 %v12337_v35  ;;  %4505 = vmatprep.subr.bf16.mxu1 %v12340_v36  ;;  %v12418_v35 = vld [vmem:[#allocation6 + $0xfc] ss:$20 sps:$4 sm:$0xff]  }
 0x350   :  { %4383 = vmatpush1.bf16.msra.mxu0 %v12335_v37  ;;  %4506 = vmatpush1.bf16.msra.mxu1 %v12338_v38  ;;  %v12413_v38 = vld [vmem:[#allocation6 + $0xf0] ss:$20 sps:$4 sm:$0xff]  }
 0x351   :  { %4384 = vmatprep.subr.bf16.mxu0 %v12343_v39  ;;  %4507 = vmatprep.subr.bf16.mxu1 %v12346_v40 }
 0x354   :  { %4385 = vmatpush1.bf16.msra.mxu0 %v12341_v41  ;;  %4508 = vmatpush1.bf16.msra.mxu1 %v12344_v42 }
 0x355   :  { %4386 = vmatprep.subr.bf16.mxu0 %v12349_v44  ;;  %4509 = vmatprep.subr.bf16.mxu1 %v12352_v45  ;;  %v12416_v45 = vld [vmem:[#allocation6 + $0xf8] ss:$20 sps:$4 sm:$0xff]  }
 0x358   :  { %4387 = vmatpush1.bf16.msra.mxu0 %v12347_v46  ;;  %4510 = vmatpush1.bf16.msra.mxu1 %v12350_v47  ;;  %v12421_v46 = vld [vmem:[#allocation6 + $0x11c] ss:$20 sps:$4 sm:$0xff]   ;;  %v12424_v47 = vld [vmem:[#allocation6 + $0x124] ss:$20 sps:$4 sm:$0xff]  }
 0x359   :  { %4388 = vmatprep.subr.bf16.mxu0 %v12355_v50  ;;  %4511 = vmatprep.subr.bf16.mxu1 %v12358_v51  ;;  %v12419_v50 = vld [vmem:[#allocation6 + $0x118] ss:$20 sps:$4 sm:$0xff]   ;;  %v12422_v51 = vld [vmem:[#allocation6 + $0x120] ss:$20 sps:$4 sm:$0xff]  }
 0x35c   :  { %4389 = vmatpush1.bf16.msra.mxu0 %v12353_v52  ;;  %4512 = vmatpush1.bf16.msra.mxu1 %v12356_v53  ;;  %v12427_v52 = vld [vmem:[#allocation6 + $0x144] ss:$20 sps:$4 sm:$0xff]   ;;  %v12425_v53 = vld [vmem:[#allocation6 + $0x140] ss:$20 sps:$4 sm:$0xff]  }
 0x35d   :  { %4390 = vmatprep.subr.bf16.mxu0 %v12361_v56  ;;  %4513 = vmatprep.subr.bf16.mxu1 %v12364_v57  ;;  %v12430_v56 = vld [vmem:[#allocation6 + $0x14c] ss:$20 sps:$4 sm:$0xff]   ;;  %v12428_v57 = vld [vmem:[#allocation6 + $0x148] ss:$20 sps:$4 sm:$0xff]  }
 0x360   :  { %4391 = vmatpush1.bf16.msra.mxu0 %v12359_v48  ;;  %4514 = vmatpush1.bf16.msra.mxu1 %v12362_v58  ;;  %v12433_v48 = vld [vmem:[#allocation6 + $0x16c] ss:$20 sps:$4 sm:$0xff]   ;;  %v12431_v58 = vld [vmem:[#allocation6 + $0x168] ss:$20 sps:$4 sm:$0xff]  }
 0x361   :  { %4392 = vmatprep.subr.bf16.mxu0 %v12367_v60  ;;  %4515 = vmatprep.subr.bf16.mxu1 %v12370_v61  ;;  %v12434_v60 = vld [vmem:[#allocation6 + $0x170] ss:$20 sps:$4 sm:$0xff]   ;;  %v12439_v61 = vld [vmem:[#allocation6 + $0x194] ss:$20 sps:$4 sm:$0xff]  }
 0x364   :  { %4393 = vmatpush1.bf16.msra.mxu0 %v12365_v62  ;;  %4516 = vmatpush1.bf16.msra.mxu1 %v12368_v63  ;;  %v12437_v62 = vld [vmem:[#allocation6 + $0x190] ss:$20 sps:$4 sm:$0xff]  }
 0x365   :  { %4394 = vmatprep.subr.bf16.mxu0 %v12373_v6  ;;  %4517 = vmatprep.subr.bf16.mxu1 %v12376_v5  ;;  %v12442_v63 = vld [vmem:[#allocation6 + $0x19c] ss:$20 sps:$4 sm:$0xff]   ;;  %v12443_v5 = vld [vmem:[#allocation6 + $0x1b8] ss:$20 sps:$4 sm:$0xff]  }
 0x366   :  { %v12445_v6 = vld [vmem:[#allocation6 + $0x1bc] ss:$20 sps:$4 sm:$0xff]  }
 0x368   :  { %4395 = vmatpush1.bf16.msra.mxu0 %v12371_v7  ;;  %4518 = vmatpush1.bf16.msra.mxu1 %v12374_v8  ;;  %v12448_v7 = vld [vmem:[#allocation6 + $0x1c4] ss:$20 sps:$4 sm:$0xff]   ;;  %v14106_v8 = vsub.s32 0, %v14081_v49 }
 0x369   :  { %7651 = vmatprep.subr.bf16.mxu0 %v12379_v10  ;;  %7897 = vmatprep.subr.bf16.mxu1 %v12382_v32  ;;  %v12446_v10 = vld [vmem:[#allocation6 + $0x1c0] ss:$20 sps:$4 sm:$0xff]   ;;  %v12451_v32 = vld [vmem:[#allocation6 + $0x1e4] ss:$20 sps:$4 sm:$0xff]  }
 0x36b   :  { %4397 = vmatmul.mubr.bf16.vlgmr.msra.gmra.mrb[8].mxu0 %v14047_v20  ;;  %4520 = vmatmul.mubr.bf16.vlgmr.msra.gmra.mrb[8].mxu1 %v14047_v20  ;;  %v12395_v20 = vld [vmem:[#allocation6 + $0x78] ss:$20 sps:$4 sm:$0xff]  }
 0x36c   :  { %7652 = vmatpush1.bf16.msra.mxu0 %v12377_v11  ;;  %7683 = vmatprep.mubr.bf16.mxu0 %v14091_v2  ;;  %v12449_v11 = vld [vmem:[#allocation6 + $0x1e0] ss:$20 sps:$4 sm:$0xff]  }
 0x36d   :  { %7898 = vmatpush1.bf16.msra.mxu1 %v12380_v12  ;;  %7929 = vmatprep.mubr.bf16.mxu1 %v14091_v2  ;;  %v12454_v12 = vld [vmem:[#allocation6 + $0x1ec] ss:$20 sps:$4 sm:$0xff]  }
 0x36e   :  { %7653 = vmatprep.subr.bf16.mxu0 %v12385_v13  ;;  %7899 = vmatprep.subr.bf16.mxu1 %v12388_v14  ;;  %v853_v13 = vrot.slane %v14083_v54, %v14106_v8  ;;  %v865_v14 = vrot.slane %v14083_v54, %v14109_v9 }
 0x370   :  { %7654 = vmatpush1.bf16.msra.mxu0 %v12383_v15  ;;  %v12452_v15 = vld [vmem:[#allocation6 + $0x1e8] ss:$20 sps:$4 sm:$0xff]  }
 0x371   :  { %7900 = vmatpush1.bf16.msra.mxu1 %v12386_v16  ;;  %7655 = vmatprep.subr.bf16.mxu0 %v12391_v17  ;;  %v12457_v16 = vld [vmem:[#allocation6 + $0x20c] ss:$20 sps:$4 sm:$0xff]   ;;  %v12455_v17 = vld [vmem:[#allocation6 + $0x208] ss:$20 sps:$4 sm:$0xff]  }
 0x372   :  { %7901 = vmatprep.subr.bf16.mxu1 %v12394_v18  ;;  %v12460_v18 = vld [vmem:[#allocation6 + $0x214] ss:$20 sps:$4 sm:$0xff]  }
 0x374   :  { %7656 = vmatpush1.bf16.msra.mxu0 %v12389_v19  ;;  %v11372_v19 = vadd.f32 %v14065_v0, %v853_v13  ;;  %v12470_v0 = vld [vmem:[#allocation6 + $0x260] ss:$20 sps:$4 sm:$0xff]  }
 0x375   :  { %7902 = vmatpush1.bf16.msra.mxu1 %v12392_v21  ;;  %7657 = vmatprep.subr.bf16.mxu0 %v12397_v22  ;;  %v11375_v21 = vadd.f32 %v14071_v3, %v865_v14  ;;  %v12458_v22 = vld [vmem:[#allocation6 + $0x210] ss:$20 sps:$4 sm:$0xff]   ;;  %v12521_v13 = vld [vmem:[#allocation6 + $0x3c0] ss:$20 sps:$4 sm:$0xff]  }
 0x376   :  { %7903 = vmatprep.subr.bf16.mxu1 %v12400_v23  ;;  %v12461_v23 = vld [vmem:[#allocation6 + $0x230] ss:$20 sps:$4 sm:$0xff]   ;;  %v4528_v54 = vmax.f32 %v11372_v19, 0.0  ;;  %v12526_v14 = vld [vmem:[#allocation6 + $0x3cc] ss:$20 sps:$4 sm:$0xff]  }
 0x377   :  { %v12475_v3 = vld [vmem:[#allocation6 + $0x284] ss:$20 sps:$4 sm:$0xff]  }
 0x378   :  { %7658 = vmatpush1.bf16.msra.mxu0 %v12395_v20  ;;  %v12463_v20 = vld [vmem:[#allocation6 + $0x234] ss:$20 sps:$4 sm:$0xff]   ;;  %v12530_v19 = vld [vmem:[#allocation6 + $0x3f0] ss:$20 sps:$4 sm:$0xff]  }
 0x379   :  { %7904 = vmatpush1.bf16.msra.mxu1 %v12398_v24  ;;  %7659 = vmatprep.subr.bf16.mxu0 %v12403_v25  ;;  %v12466_v24 = vld [vmem:[#allocation6 + $0x23c] ss:$20 sps:$4 sm:$0xff]   ;;  %v4531_v25 = vmax.f32 %v11375_v21, 0.0  ;;  %v12535_v21 = vld [vmem:[#allocation6 + $0x414] ss:$20 sps:$4 sm:$0xff]  }
 0x37a   :  { %7905 = vmatprep.subr.bf16.mxu1 %v12406_v27  ;;  %v12469_v27 = vld [vmem:[#allocation6 + $0x25c] ss:$20 sps:$4 sm:$0xff]  }
 0x37c   :  { %7660 = vmatpush1.bf16.msra.mxu0 %v12401_v26  ;;  %v12464_v26 = vld [vmem:[#allocation6 + $0x238] ss:$20 sps:$4 sm:$0xff]  }
 0x37d   :  { %7906 = vmatpush1.bf16.msra.mxu1 %v12404_v28  ;;  %7661 = vmatprep.subr.bf16.mxu0 %v12409_v29  ;;  %v12467_v28 = vld [vmem:[#allocation6 + $0x258] ss:$20 sps:$4 sm:$0xff]  }
 0x37e   :  { %v14097_v36 = vpop.f32.mrb[4].mxu0  ;;  %v14099_v37 = vpop.f32.mrb[4].mxu1  ;;  %7907 = vmatprep.subr.bf16.mxu1 %v12412_v30  ;;  %v12472_v29 = vld [vmem:[#allocation6 + $0x264] ss:$20 sps:$4 sm:$0xff]   ;;  %v12478_v30 = vld [vmem:[#allocation6 + $0x28c] ss:$20 sps:$4 sm:$0xff]  }
 0x37f   :  { %v14101_v39 = vpop.f32.mrb[5].mxu0  ;;  %v14103_v40 = vpop.f32.mrb[5].mxu1 }
 0x380   :  { %v4156_v41 = vpop.f32.mrb[6].mxu0  ;;  %v4279_v42 = vpop.f32.mrb[6].mxu1  ;;  %7662 = vmatpush1.bf16.msra.mxu0 %v12407_v31  ;;  %v12473_v31 = vld [vmem:[#allocation6 + $0x280] ss:$20 sps:$4 sm:$0xff]  }
 0x381   :  { %7908 = vmatpush1.bf16.msra.mxu1 %v12410_v33  ;;  %v4157_v43 = vpop.f32.mrb[7].mxu0  ;;  %v4280_v44 = vpop.f32.mrb[7].mxu1  ;;  %7663 = vmatprep.subr.bf16.mxu0 %v12415_v34  ;;  %v12476_v33 = vld [vmem:[#allocation6 + $0x288] ss:$20 sps:$4 sm:$0xff]   ;;  %v12481_v34 = vld [vmem:[#allocation6 + $0x2ac] ss:$20 sps:$4 sm:$0xff]  }
 0x382   :  { %7909 = vmatprep.subr.bf16.mxu1 %v12418_v35  ;;  %v14117_v35 = vpack.c.bf16 %v4528_v54, %v4528_v54  ;;  %v12479_v41 = vld [vmem:[#allocation6 + $0x2a8] ss:$20 sps:$4 sm:$0xff]   ;;  %v12482_v42 = vld [vmem:[#allocation6 + $0x2b0] ss:$20 sps:$4 sm:$0xff]   ;;  %v12539_v54 = vld [vmem:[#allocation6 + $0x438] ss:$20 sps:$4 sm:$0xff]  }
 0x383   :  { %v12484_v43 = vld [vmem:[#allocation6 + $0x2b4] ss:$20 sps:$4 sm:$0xff]  }
 0x384   :  { %7664 = vmatpush1.bf16.msra.mxu0 %v12413_v38  ;;  %v14119_v38 = vpack.c.bf16 %v4531_v25, %v4531_v25  ;;  %v12487_v44 = vld [vmem:[#allocation6 + $0x2d4] ss:$20 sps:$4 sm:$0xff]   ;;  %v12544_v25 = vld [vmem:[#allocation6 + $0x444] ss:$20 sps:$4 sm:$0xff]  }
 0x385   :  { %7910 = vmatpush1.bf16.msra.mxu1 %v12416_v45  ;;  %7665 = vmatprep.subr.bf16.mxu0 %v12421_v46  ;;  %v12490_v45 = vld [vmem:[#allocation6 + $0x2dc] ss:$20 sps:$4 sm:$0xff]  }
 0x386   :  { %7911 = vmatprep.subr.bf16.mxu1 %v12424_v47  ;;  %v12485_v46 = vld [vmem:[#allocation6 + $0x2d0] ss:$20 sps:$4 sm:$0xff]   ;;  %v12488_v47 = vld [vmem:[#allocation6 + $0x2d8] ss:$20 sps:$4 sm:$0xff]  }
 0x388   :  { %7666 = vmatpush1.bf16.msra.mxu0 %v12419_v50  ;;  %v12493_v50 = vld [vmem:[#allocation6 + $0x2fc] ss:$20 sps:$4 sm:$0xff]  }
 0x389   :  { %7912 = vmatpush1.bf16.msra.mxu1 %v12422_v51  ;;  %7667 = vmatprep.subr.bf16.mxu0 %v12427_v52  ;;  %v12491_v51 = vld [vmem:[#allocation6 + $0x2f8] ss:$20 sps:$4 sm:$0xff]  }
 0x38a   :  { %7913 = vmatprep.subr.bf16.mxu1 %v12430_v56  ;;  %v12496_v52 = vld [vmem:[#allocation6 + $0x304] ss:$20 sps:$4 sm:$0xff]  }
 0x38b   :  { %v12499_v56 = vld [vmem:[#allocation6 + $0x324] ss:$20 sps:$4 sm:$0xff]  }
 0x38c   :  { %7668 = vmatpush1.bf16.msra.mxu0 %v12425_v53  ;;  %v12494_v53 = vld [vmem:[#allocation6 + $0x300] ss:$20 sps:$4 sm:$0xff]  }
 0x38d   :  { %7914 = vmatpush1.bf16.msra.mxu1 %v12428_v57  ;;  %7669 = vmatprep.subr.bf16.mxu0 %v12433_v48  ;;  %v12497_v57 = vld [vmem:[#allocation6 + $0x320] ss:$20 sps:$4 sm:$0xff]  }
 0x38e   :  { %7915 = vmatprep.subr.bf16.mxu1 %v12436_v59  ;;  %v12502_v48 = vld [vmem:[#allocation6 + $0x32c] ss:$20 sps:$4 sm:$0xff]  }
 0x38f   :  { %v12505_v59 = vld [vmem:[#allocation6 + $0x34c] ss:$20 sps:$4 sm:$0xff]  }
 0x390   :  { %7670 = vmatpush1.bf16.msra.mxu0 %v12431_v58  ;;  %v12500_v58 = vld [vmem:[#allocation6 + $0x328] ss:$20 sps:$4 sm:$0xff]  }
 0x391   :  { %7916 = vmatpush1.bf16.msra.mxu1 %v12434_v60  ;;  %7671 = vmatprep.subr.bf16.mxu0 %v12439_v61  ;;  %v12503_v60 = vld [vmem:[#allocation6 + $0x348] ss:$20 sps:$4 sm:$0xff]  }
 0x392   :  { %7917 = vmatprep.subr.bf16.mxu1 %v12442_v63  ;;  %v12508_v61 = vld [vmem:[#allocation6 + $0x354] ss:$20 sps:$4 sm:$0xff]  }
 0x393   :  { %v12511_v63 = vld [vmem:[#allocation6 + $0x374] ss:$20 sps:$4 sm:$0xff]  }
 0x394   :  { %7672 = vmatpush1.bf16.msra.mxu0 %v12437_v62  ;;  %v12506_v62 = vld [vmem:[#allocation6 + $0x350] ss:$20 sps:$4 sm:$0xff]  }
 0x395   :  { %7918 = vmatpush1.bf16.msra.mxu1 %v12440_v4  ;;  %7673 = vmatprep.subr.bf16.mxu0 %v12445_v6  ;;  %v12514_v4 = vld [vmem:[#allocation6 + $0x37c] ss:$20 sps:$4 sm:$0xff]  }
 0x396   :  { %7919 = vmatprep.subr.bf16.mxu1 %v12448_v7  ;;  %v12509_v6 = vld [vmem:[#allocation6 + $0x370] ss:$20 sps:$4 sm:$0xff]  }
 0x397   :  { %v12517_v7 = vld [vmem:[#allocation6 + $0x39c] ss:$20 sps:$4 sm:$0xff]  }
 0x398   :  { %7674 = vmatpush1.bf16.msra.mxu0 %v12443_v5  ;;  %v12512_v5 = vld [vmem:[#allocation6 + $0x378] ss:$20 sps:$4 sm:$0xff]  }
 0x399   :  { %7920 = vmatpush1.bf16.msra.mxu1 %v12446_v10  ;;  %7675 = vmatprep.subr.bf16.mxu0 %v12451_v32  ;;  %v12520_v10 = vld [vmem:[#allocation6 + $0x3a4] ss:$20 sps:$4 sm:$0xff]  }
 0x39a   :  { %7921 = vmatprep.subr.bf16.mxu1 %v12454_v12  ;;  %v12515_v32 = vld [vmem:[#allocation6 + $0x398] ss:$20 sps:$4 sm:$0xff]  }
 0x39b   :  { %v12523_v12 = vld [vmem:[#allocation6 + $0x3c4] ss:$20 sps:$4 sm:$0xff]  }
 0x39c   :  { %7676 = vmatpush1.bf16.msra.mxu0 %v12449_v11  ;;  %v12518_v11 = vld [vmem:[#allocation6 + $0x3a0] ss:$20 sps:$4 sm:$0xff]  }
 0x39d   :  { %7922 = vmatpush1.bf16.msra.mxu1 %v12452_v15  ;;  %7677 = vmatprep.subr.bf16.mxu0 %v12457_v16  ;;  %v12524_v15 = vld [vmem:[#allocation6 + $0x3c8] ss:$20 sps:$4 sm:$0xff]   ;;  %v12529_v16 = vld [vmem:[#allocation6 + $0x3ec] ss:$20 sps:$4 sm:$0xff]  }
 0x39e   :  { %7923 = vmatprep.subr.bf16.mxu1 %v12460_v18  ;;  %v12532_v18 = vld [vmem:[#allocation6 + $0x3f4] ss:$20 sps:$4 sm:$0xff]  }
 0x3a0   :  { %7678 = vmatpush1.bf16.msra.mxu0 %v12455_v17  ;;  %v12527_v17 = vld [vmem:[#allocation6 + $0x3e8] ss:$20 sps:$4 sm:$0xff]  }
 0x3a1   :  { %7924 = vmatpush1.bf16.msra.mxu1 %v12458_v22  ;;  %7679 = vmatprep.subr.bf16.mxu0 %v12463_v20  ;;  %v12533_v22 = vld [vmem:[#allocation6 + $0x410] ss:$20 sps:$4 sm:$0xff]  }
 0x3a2   :  { %7925 = vmatprep.subr.bf16.mxu1 %v12466_v24  ;;  %v12538_v20 = vld [vmem:[#allocation6 + $0x41c] ss:$20 sps:$4 sm:$0xff]  }
 0x3a3   :  { %v12541_v24 = vld [vmem:[#allocation6 + $0x43c] ss:$20 sps:$4 sm:$0xff]  }
 0x3a4   :  { %7680 = vmatpush1.bf16.msra.mxu0 %v12461_v23  ;;  %v12536_v23 = vld [vmem:[#allocation6 + $0x418] ss:$20 sps:$4 sm:$0xff]  }
 0x3a5   :  { %7926 = vmatpush1.bf16.msra.mxu1 %v12464_v26  ;;  %7681 = vmatprep.subr.bf16.mxu0 %v12469_v27  ;;  %v12542_v26 = vld [vmem:[#allocation6 + $0x440] ss:$20 sps:$4 sm:$0xff]   ;;  %v12547_v27 = vld [vmem:[#allocation6 + $0x464] ss:$20 sps:$4 sm:$0xff]  }
 0x3a6   :  { %7927 = vmatprep.subr.bf16.mxu1 %v12472_v29  ;;  %v12550_v29 = vld [vmem:[#allocation6 + $0x46c] ss:$20 sps:$4 sm:$0xff]  }
 0x3a8   :  { %7682 = vmatpush1.bf16.msra.mxu0 %v12467_v28  ;;  %v12545_v28 = vld [vmem:[#allocation6 + $0x460] ss:$20 sps:$4 sm:$0xff]  }
 0x3a9   :  { %7928 = vmatpush1.bf16.msra.mxu1 %v12470_v0  ;;  %7692 = vmatprep.subr.bf16.mxu0 %v12475_v3  ;;  %v14126_v0 = vsub.s32 2, %v14081_v49  ;;  %v12548_v3 = vld [vmem:[#allocation6 + $0x468] ss:$20 sps:$4 sm:$0xff]  }
 0x3aa   :  { %7938 = vmatprep.subr.bf16.mxu1 %v12478_v30  ;;  %v12553_v30 = vld [vmem:[#allocation6 + $0x48c] ss:$20 sps:$4 sm:$0xff]  }
 0x3ab   :  { %7684 = vmatmul.mubr.bf16.vlgmr.msra.gmra.mrb[12].mxu0 %v14117_v35 }
 0x3ac   :  { %7930 = vmatmul.mubr.bf16.vlgmr.msra.gmra.mrb[12].mxu1 %v14117_v35  ;;  %7693 = vmatpush1.bf16.msra.mxu0 %v12473_v31  ;;  %v12551_v31 = vld [vmem:[#allocation6 + $0x488] ss:$20 sps:$4 sm:$0xff]  }
 0x3ad   :  { %7724 = vmatprep.mubr.bf16.mxu0 %v14119_v38  ;;  %7939 = vmatpush1.bf16.msra.mxu1 %v12476_v33  ;;  %v12556_v33 = vld [vmem:[#allocation6 + $0x494] ss:$20 sps:$4 sm:$0xff]  }
 0x3ae   :  { %7970 = vmatprep.mubr.bf16.mxu1 %v14119_v38  ;;  %7694 = vmatprep.subr.bf16.mxu0 %v12481_v34  ;;  %v872_v34 = vsub.s32 5, %v14081_v49 }
 0x3af   :  { %7940 = vmatprep.subr.bf16.mxu1 %v12484_v43  ;;  %v12554_v43 = vld [vmem:[#allocation6 + $0x490] ss:$20 sps:$4 sm:$0xff]  }
 0x3b0   :  { %7695 = vmatpush1.bf16.msra.mxu0 %v12479_v41  ;;  %v14129_v41 = vld [vmem:[#allocation4] sm:$0xff] }
 0x3b1   :  { %7941 = vmatpush1.bf16.msra.mxu1 %v12482_v42  ;;  %7696 = vmatprep.subr.bf16.mxu0 %v12487_v44  ;;  %v861_v42 = vrot.slane %v14129_v41, %v14126_v0  ;;  %v12559_v44 = vld [vmem:[#allocation6 + $0x4b4] ss:$20 sps:$4 sm:$0xff]  }
 0x3b2   :  { %7942 = vmatprep.subr.bf16.mxu1 %v12490_v45  ;;  %v12557_v45 = vld [vmem:[#allocation6 + $0x4b0] ss:$20 sps:$4 sm:$0xff]  }
 0x3b4   :  { %7697 = vmatpush1.bf16.msra.mxu0 %v12485_v46  ;;  %v12562_v46 = vld [vmem:[#allocation6 + $0x4bc] ss:$20 sps:$4 sm:$0xff]  }
 0x3b5   :  { %7943 = vmatpush1.bf16.msra.mxu1 %v12488_v47  ;;  %7698 = vmatprep.subr.bf16.mxu0 %v12493_v50  ;;  %v873_v47 = vrot.slane %v14129_v41, %v872_v34  ;;  %v11374_v50 = vadd.f32 %v14067_v1, %v861_v42  ;;  %v12572_v1 = vld [vmem:[#allocation6 + $0x508] ss:$20 sps:$4 sm:$0xff]   ;;  %v12622_v34 = vld [vmem:[#allocation6 + $0x64c] ss:$20 sps:$4 sm:$0xff]  }
 0x3b6   :  { %7944 = vmatprep.subr.bf16.mxu1 %v12496_v52  ;;  %v12565_v52 = vld [vmem:[#allocation6 + $0x4dc] ss:$20 sps:$4 sm:$0xff]  }
 0x3b7   :  { %v12620_v42 = vld [vmem:[#allocation6 + $0x648] ss:$20 sps:$4 sm:$0xff]  }
 0x3b8   :  { %7699 = vmatpush1.bf16.msra.mxu0 %v12491_v51  ;;  %v12560_v51 = vld [vmem:[#allocation6 + $0x4b8] ss:$20 sps:$4 sm:$0xff]  }
 0x3b9   :  { %7945 = vmatpush1.bf16.msra.mxu1 %v12494_v53  ;;  %7700 = vmatprep.subr.bf16.mxu0 %v12499_v56  ;;  %v12563_v53 = vld [vmem:[#allocation6 + $0x4d8] ss:$20 sps:$4 sm:$0xff]  }
 0x3ba   :  { %7946 = vmatprep.subr.bf16.mxu1 %v12502_v48  ;;  %v12568_v56 = vld [vmem:[#allocation6 + $0x4e4] ss:$20 sps:$4 sm:$0xff]   ;;  %v4530_v48 = vmax.f32 %v11374_v50, 0.0 }
 0x3bb   :  { %v12629_v50 = vld [vmem:[#allocation6 + $0x690] ss:$20 sps:$4 sm:$0xff]  }
 0x3bc   :  { %7701 = vmatpush1.bf16.msra.mxu0 %v12497_v57  ;;  %v11377_v57 = vadd.f32 %v14101_v39, %v873_v47  ;;  %v12575_v39 = vld [vmem:[#allocation6 + $0x528] ss:$20 sps:$4 sm:$0xff]  }
 0x3bd   :  { %7947 = vmatpush1.bf16.msra.mxu1 %v12500_v58  ;;  %7702 = vmatprep.subr.bf16.mxu0 %v12505_v59  ;;  %v12566_v58 = vld [vmem:[#allocation6 + $0x4e0] ss:$20 sps:$4 sm:$0xff]   ;;  %v12571_v59 = vld [vmem:[#allocation6 + $0x504] ss:$20 sps:$4 sm:$0xff]  }
 0x3be   :  { %7948 = vmatprep.subr.bf16.mxu1 %v12508_v61  ;;  %v12574_v61 = vld [vmem:[#allocation6 + $0x50c] ss:$20 sps:$4 sm:$0xff]   ;;  %v12631_v47 = vld [vmem:[#allocation6 + $0x694] ss:$20 sps:$4 sm:$0xff]  }
 0x3c0   :  { %7703 = vmatpush1.bf16.msra.mxu0 %v12503_v60  ;;  %v12569_v60 = vld [vmem:[#allocation6 + $0x500] ss:$20 sps:$4 sm:$0xff]  }
 0x3c1   :  { %7949 = vmatpush1.bf16.msra.mxu1 %v12506_v62  ;;  %7704 = vmatprep.subr.bf16.mxu0 %v12511_v63  ;;  %v4533_v62 = vmax.f32 %v11377_v57, 0.0  ;;  %v12577_v63 = vld [vmem:[#allocation6 + $0x52c] ss:$20 sps:$4 sm:$0xff]   ;;  %v12640_v57 = vld [vmem:[#allocation6 + $0x6c4] ss:$20 sps:$4 sm:$0xff]  }
 0x3c2   :  { %7950 = vmatprep.subr.bf16.mxu1 %v12514_v4  ;;  %v14136_v4 = vpack.c.bf16 %v4530_v48, %v4530_v48  ;;  %v12638_v48 = vld [vmem:[#allocation6 + $0x6c0] ss:$20 sps:$4 sm:$0xff]  }
 0x3c4   :  { %7705 = vmatpush1.bf16.msra.mxu0 %v12509_v6  ;;  %v14138_v6 = vpack.c.bf16 %v4533_v62, %v4533_v62  ;;  %v12644_v62 = vld [vmem:[#allocation6 + $0x6e8] ss:$20 sps:$4 sm:$0xff]  }
 0x3c5   :  { %7951 = vmatpush1.bf16.msra.mxu1 %v12512_v5  ;;  %7706 = vmatprep.subr.bf16.mxu0 %v12517_v7  ;;  %v12578_v5 = vld [vmem:[#allocation6 + $0x530] ss:$20 sps:$4 sm:$0xff]   ;;  %v12580_v7 = vld [vmem:[#allocation6 + $0x534] ss:$20 sps:$4 sm:$0xff]  }
 0x3c6   :  { %7952 = vmatprep.subr.bf16.mxu1 %v12520_v10  ;;  %v12583_v10 = vld [vmem:[#allocation6 + $0x554] ss:$20 sps:$4 sm:$0xff]  }
 0x3c8   :  { %7707 = vmatpush1.bf16.msra.mxu0 %v12515_v32  ;;  %v12586_v32 = vld [vmem:[#allocation6 + $0x55c] ss:$20 sps:$4 sm:$0xff]  }
 0x3c9   :  { %7953 = vmatpush1.bf16.msra.mxu1 %v12518_v11  ;;  %7708 = vmatprep.subr.bf16.mxu0 %v12523_v12  ;;  %v12581_v11 = vld [vmem:[#allocation6 + $0x550] ss:$20 sps:$4 sm:$0xff]   ;;  %v12584_v12 = vld [vmem:[#allocation6 + $0x558] ss:$20 sps:$4 sm:$0xff]  }
 0x3ca   :  { %7954 = vmatprep.subr.bf16.mxu1 %v12526_v14  ;;  %v12587_v14 = vld [vmem:[#allocation6 + $0x578] ss:$20 sps:$4 sm:$0xff]  }
 0x3cc   :  { %7709 = vmatpush1.bf16.msra.mxu0 %v12521_v13  ;;  %v12589_v13 = vld [vmem:[#allocation6 + $0x57c] ss:$20 sps:$4 sm:$0xff]  }
 0x3cd   :  { %7955 = vmatpush1.bf16.msra.mxu1 %v12524_v15  ;;  %7710 = vmatprep.subr.bf16.mxu0 %v12529_v16  ;;  %v12592_v15 = vld [vmem:[#allocation6 + $0x584] ss:$20 sps:$4 sm:$0xff]   ;;  %v12590_v16 = vld [vmem:[#allocation6 + $0x580] ss:$20 sps:$4 sm:$0xff]  }
 0x3ce   :  { %7956 = vmatprep.subr.bf16.mxu1 %v12532_v18  ;;  %v12593_v18 = vld [vmem:[#allocation6 + $0x5a0] ss:$20 sps:$4 sm:$0xff]  }
 0x3d0   :  { %7711 = vmatpush1.bf16.msra.mxu0 %v12527_v17  ;;  %v12595_v17 = vld [vmem:[#allocation6 + $0x5a4] ss:$20 sps:$4 sm:$0xff]  }
 0x3d1   :  { %7957 = vmatpush1.bf16.msra.mxu1 %v12530_v19  ;;  %7712 = vmatprep.subr.bf16.mxu0 %v12535_v21  ;;  %v12598_v19 = vld [vmem:[#allocation6 + $0x5ac] ss:$20 sps:$4 sm:$0xff]   ;;  %v12596_v21 = vld [vmem:[#allocation6 + $0x5a8] ss:$20 sps:$4 sm:$0xff]  }
 0x3d2   :  { %7958 = vmatprep.subr.bf16.mxu1 %v12538_v20  ;;  %v12599_v20 = vld [vmem:[#allocation6 + $0x5c8] ss:$20 sps:$4 sm:$0xff]  }
 0x3d4   :  { %7713 = vmatpush1.bf16.msra.mxu0 %v12533_v22  ;;  %v12601_v22 = vld [vmem:[#allocation6 + $0x5cc] ss:$20 sps:$4 sm:$0xff]  }
 0x3d5   :  { %7959 = vmatpush1.bf16.msra.mxu1 %v12536_v23  ;;  %7714 = vmatprep.subr.bf16.mxu0 %v12541_v24  ;;  %v12604_v23 = vld [vmem:[#allocation6 + $0x5d4] ss:$20 sps:$4 sm:$0xff]   ;;  %v12602_v24 = vld [vmem:[#allocation6 + $0x5d0] ss:$20 sps:$4 sm:$0xff]  }
 0x3d6   :  { %7960 = vmatprep.subr.bf16.mxu1 %v12544_v25  ;;  %v12605_v25 = vld [vmem:[#allocation6 + $0x5f0] ss:$20 sps:$4 sm:$0xff]  }
 0x3d8   :  { %7715 = vmatpush1.bf16.msra.mxu0 %v12539_v54  ;;  %v12607_v54 = vld [vmem:[#allocation6 + $0x5f4] ss:$20 sps:$4 sm:$0xff]  }
 0x3d9   :  { %7961 = vmatpush1.bf16.msra.mxu1 %v12542_v26  ;;  %7716 = vmatprep.subr.bf16.mxu0 %v12547_v27  ;;  %v12610_v26 = vld [vmem:[#allocation6 + $0x5fc] ss:$20 sps:$4 sm:$0xff]   ;;  %v12608_v27 = vld [vmem:[#allocation6 + $0x5f8] ss:$20 sps:$4 sm:$0xff]  }
 0x3da   :  { %7962 = vmatprep.subr.bf16.mxu1 %v12550_v29  ;;  %v12611_v29 = vld [vmem:[#allocation6 + $0x618] ss:$20 sps:$4 sm:$0xff]  }
 0x3dc   :  { %7717 = vmatpush1.bf16.msra.mxu0 %v12545_v28  ;;  %v12613_v28 = vld [vmem:[#allocation6 + $0x61c] ss:$20 sps:$4 sm:$0xff]  }
 0x3dd   :  { %7963 = vmatpush1.bf16.msra.mxu1 %v12548_v3  ;;  %7718 = vmatprep.subr.bf16.mxu0 %v12553_v30  ;;  %v12616_v3 = vld [vmem:[#allocation6 + $0x624] ss:$20 sps:$4 sm:$0xff]   ;;  %v12614_v30 = vld [vmem:[#allocation6 + $0x620] ss:$20 sps:$4 sm:$0xff]  }
 0x3de   :  { %7964 = vmatprep.subr.bf16.mxu1 %v12556_v33  ;;  %v12617_v33 = vld [vmem:[#allocation6 + $0x640] ss:$20 sps:$4 sm:$0xff]  }
 0x3e0   :  { %7719 = vmatpush1.bf16.msra.mxu0 %v12551_v31  ;;  %v12619_v31 = vld [vmem:[#allocation6 + $0x644] ss:$20 sps:$4 sm:$0xff]  }
 0x3e1   :  { %7965 = vmatpush1.bf16.msra.mxu1 %v12554_v43  ;;  %7720 = vmatprep.subr.bf16.mxu0 %v12559_v44  ;;  %v12625_v43 = vld [vmem:[#allocation6 + $0x66c] ss:$20 sps:$4 sm:$0xff]   ;;  %v12623_v44 = vld [vmem:[#allocation6 + $0x668] ss:$20 sps:$4 sm:$0xff]  }
 0x3e2   :  { %7966 = vmatprep.subr.bf16.mxu1 %v12562_v46  ;;  %v12626_v46 = vld [vmem:[#allocation6 + $0x670] ss:$20 sps:$4 sm:$0xff]  }
 0x3e4   :  { %7721 = vmatpush1.bf16.msra.mxu0 %v12557_v45  ;;  %v12628_v45 = vld [vmem:[#allocation6 + $0x674] ss:$20 sps:$4 sm:$0xff]  }
 0x3e5   :  { %7967 = vmatpush1.bf16.msra.mxu1 %v12560_v51  ;;  %7722 = vmatprep.subr.bf16.mxu0 %v12565_v52  ;;  %v12634_v51 = vld [vmem:[#allocation6 + $0x69c] ss:$20 sps:$4 sm:$0xff]   ;;  %v12632_v52 = vld [vmem:[#allocation6 + $0x698] ss:$20 sps:$4 sm:$0xff]  }
 0x3e6   :  { %7968 = vmatprep.subr.bf16.mxu1 %v12568_v56  ;;  %v12635_v56 = vld [vmem:[#allocation6 + $0x6b8] ss:$20 sps:$4 sm:$0xff]  }
 0x3e8   :  { %7723 = vmatpush1.bf16.msra.mxu0 %v12563_v53  ;;  %v12637_v53 = vld [vmem:[#allocation6 + $0x6bc] ss:$20 sps:$4 sm:$0xff]  }
 0x3e9   :  { %7969 = vmatpush1.bf16.msra.mxu1 %v12566_v58  ;;  %7733 = vmatprep.subr.bf16.mxu0 %v12571_v59  ;;  %v12643_v58 = vld [vmem:[#allocation6 + $0x6e4] ss:$20 sps:$4 sm:$0xff]   ;;  %v12646_v59 = vld [vmem:[#allocation6 + $0x6ec] ss:$20 sps:$4 sm:$0xff]  }
 0x3ea   :  { %7979 = vmatprep.subr.bf16.mxu1 %v12574_v61  ;;  %v868_v61 = vsub.s32 4, %v14081_v49 }
 0x3eb   :  { %7725 = vmatmul.mubr.bf16.vlgmr.msra.gmra.mrb[12].mxu0 %v14136_v4 }
 0x3ec   :  { %7971 = vmatmul.mubr.bf16.vlgmr.msra.gmra.mrb[12].mxu1 %v14136_v4  ;;  %7734 = vmatpush1.bf16.msra.mxu0 %v12569_v60  ;;  %v12641_v60 = vld [vmem:[#allocation6 + $0x6e0] ss:$20 sps:$4 sm:$0xff]  }
 0x3ed   :  { %7765 = vmatprep.mubr.bf16.mxu0 %v14138_v6  ;;  %7980 = vmatpush1.bf16.msra.mxu1 %v12572_v1  ;;  %v12649_v1 = vld [vmem:[#allocation6 + $0x70c] ss:$20 sps:$4 sm:$0xff]  }
 0x3ee   :  { %8011 = vmatprep.mubr.bf16.mxu1 %v14138_v6  ;;  %7735 = vmatprep.subr.bf16.mxu0 %v12577_v63  ;;  %v12652_v63 = vld [vmem:[#allocation6 + $0x714] ss:$20 sps:$4 sm:$0xff]  }
 0x3ef   :  { %7981 = vmatprep.subr.bf16.mxu1 %v12580_v7  ;;  %v869_v7 = vrot.slane %v14129_v41, %v868_v61 }
 0x3f0   :  { %7736 = vmatpush1.bf16.msra.mxu0 %v12575_v39  ;;  %v880_v39 = vsub.s32 7, %v14081_v49 }
 0x3f1   :  { %7982 = vmatpush1.bf16.msra.mxu1 %v12578_v5  ;;  %7737 = vmatprep.subr.bf16.mxu0 %v12583_v10  ;;  %v12647_v5 = vld [vmem:[#allocation6 + $0x708] ss:$20 sps:$4 sm:$0xff]   ;;  %v12650_v10 = vld [vmem:[#allocation6 + $0x710] ss:$20 sps:$4 sm:$0xff]  }
 0x3f2   :  { %7983 = vmatprep.subr.bf16.mxu1 %v12586_v32  ;;  %v12655_v32 = vld [vmem:[#allocation6 + $0x734] ss:$20 sps:$4 sm:$0xff]  }
 0x3f4   :  { %7738 = vmatpush1.bf16.msra.mxu0 %v12581_v11  ;;  %v12658_v11 = vld [vmem:[#allocation6 + $0x73c] ss:$20 sps:$4 sm:$0xff]  }
 0x3f5   :  { %7984 = vmatpush1.bf16.msra.mxu1 %v12584_v12  ;;  %7739 = vmatprep.subr.bf16.mxu0 %v12589_v13  ;;  %v881_v12 = vrot.slane %v14129_v41, %v880_v39  ;;  %v12653_v13 = vld [vmem:[#allocation6 + $0x730] ss:$20 sps:$4 sm:$0xff]  }
 0x3f6   :  { %7985 = vmatprep.subr.bf16.mxu1 %v12592_v15  ;;  %v12656_v15 = vld [vmem:[#allocation6 + $0x738] ss:$20 sps:$4 sm:$0xff]  }
 0x3f8   :  { %7740 = vmatpush1.bf16.msra.mxu0 %v12587_v14  ;;  %v11376_v14 = vadd.f32 %v14097_v36, %v869_v7  ;;  %v12665_v36 = vld [vmem:[#allocation6 + $0x780] ss:$20 sps:$4 sm:$0xff]  }
 0x3f9   :  { %7986 = vmatpush1.bf16.msra.mxu1 %v12590_v16  ;;  %7741 = vmatprep.subr.bf16.mxu0 %v12595_v17  ;;  %v12661_v16 = vld [vmem:[#allocation6 + $0x75c] ss:$20 sps:$4 sm:$0xff]   ;;  %v12664_v17 = vld [vmem:[#allocation6 + $0x764] ss:$20 sps:$4 sm:$0xff]  }
 0x3fa   :  { %7987 = vmatprep.subr.bf16.mxu1 %v12598_v19  ;;  %v12659_v19 = vld [vmem:[#allocation6 + $0x758] ss:$20 sps:$4 sm:$0xff]  }
 0x3fc   :  { %7742 = vmatpush1.bf16.msra.mxu0 %v12593_v18  ;;  %v11379_v18 = vadd.f32 %v14103_v40, %v881_v12 }
 0x3fd   :  { %7988 = vmatpush1.bf16.msra.mxu1 %v12596_v21  ;;  %7743 = vmatprep.subr.bf16.mxu0 %v12601_v22  ;;  %v4532_v21 = vmax.f32 %v11376_v14, 0.0  ;;  %v12662_v22 = vld [vmem:[#allocation6 + $0x760] ss:$20 sps:$4 sm:$0xff]   ;;  %v12704_v14 = vld [vmem:[#allocation6 + $0x878] ss:$20 sps:$4 sm:$0xff]  }
 0x3fe   :  { %7989 = vmatprep.subr.bf16.mxu1 %v12604_v23  ;;  %v12670_v23 = vld [vmem:[#allocation6 + $0x78c] ss:$20 sps:$4 sm:$0xff]  }
 0x400   :  { %7744 = vmatpush1.bf16.msra.mxu0 %v12599_v20  ;;  %v12667_v20 = vld [vmem:[#allocation6 + $0x784] ss:$20 sps:$4 sm:$0xff]  }
 0x401   :  { %7990 = vmatpush1.bf16.msra.mxu1 %v12602_v24  ;;  %7745 = vmatprep.subr.bf16.mxu0 %v12607_v54  ;;  %v4535_v24 = vmax.f32 %v11379_v18, 0.0  ;;  %v14152_v54 = vpack.c.bf16 %v4532_v21, %v4532_v21  ;;  %v12710_v18 = vld [vmem:[#allocation6 + $0x8a0] ss:$20 sps:$4 sm:$0xff]  }
 0x402   :  { %7991 = vmatprep.subr.bf16.mxu1 %v12610_v26  ;;  %v12673_v26 = vld [vmem:[#allocation6 + $0x7ac] ss:$20 sps:$4 sm:$0xff]  }
 0x403   :  { %v14154_v40 = vpack.c.bf16 %v4535_v24, %v4535_v24  ;;  %v12718_v21 = vld [vmem:[#allocation6 + $0x8cc] ss:$20 sps:$4 sm:$0xff]   ;;  %v12724_v24 = vld [vmem:[#allocation6 + $0x8f4] ss:$20 sps:$4 sm:$0xff]  }
 0x404   :  { %7746 = vmatpush1.bf16.msra.mxu0 %v12605_v25  ;;  %v12668_v25 = vld [vmem:[#allocation6 + $0x788] ss:$20 sps:$4 sm:$0xff]  }
 0x405   :  { %7992 = vmatpush1.bf16.msra.mxu1 %v12608_v27  ;;  %7747 = vmatprep.subr.bf16.mxu0 %v12613_v28  ;;  %v12676_v27 = vld [vmem:[#allocation6 + $0x7b4] ss:$20 sps:$4 sm:$0xff]  }
 0x406   :  { %7993 = vmatprep.subr.bf16.mxu1 %v12616_v3  ;;  %v12671_v28 = vld [vmem:[#allocation6 + $0x7a8] ss:$20 sps:$4 sm:$0xff]  }
 0x407   :  { %v12679_v3 = vld [vmem:[#allocation6 + $0x7d4] ss:$20 sps:$4 sm:$0xff]  }
 0x408   :  { %7748 = vmatpush1.bf16.msra.mxu0 %v12611_v29  ;;  %v12674_v29 = vld [vmem:[#allocation6 + $0x7b0] ss:$20 sps:$4 sm:$0xff]  }
 0x409   :  { %7994 = vmatpush1.bf16.msra.mxu1 %v12614_v30  ;;  %7749 = vmatprep.subr.bf16.mxu0 %v12619_v31  ;;  %v12682_v30 = vld [vmem:[#allocation6 + $0x7dc] ss:$20 sps:$4 sm:$0xff]  }
 0x40a   :  { %7995 = vmatprep.subr.bf16.mxu1 %v12622_v34  ;;  %v12677_v31 = vld [vmem:[#allocation6 + $0x7d0] ss:$20 sps:$4 sm:$0xff]  }
 0x40b   :  { %v12685_v34 = vld [vmem:[#allocation6 + $0x7fc] ss:$20 sps:$4 sm:$0xff]  }
 0x40c   :  { %7750 = vmatpush1.bf16.msra.mxu0 %v12617_v33  ;;  %v12680_v33 = vld [vmem:[#allocation6 + $0x7d8] ss:$20 sps:$4 sm:$0xff]  }
 0x40d   :  { %7996 = vmatpush1.bf16.msra.mxu1 %v12620_v42  ;;  %7751 = vmatprep.subr.bf16.mxu0 %v12625_v43  ;;  %v12688_v42 = vld [vmem:[#allocation6 + $0x804] ss:$20 sps:$4 sm:$0xff]  }
 0x40e   :  { %7997 = vmatprep.subr.bf16.mxu1 %v12628_v45  ;;  %v12683_v43 = vld [vmem:[#allocation6 + $0x7f8] ss:$20 sps:$4 sm:$0xff]  }
 0x40f   :  { %v12691_v45 = vld [vmem:[#allocation6 + $0x824] ss:$20 sps:$4 sm:$0xff]  }
 0x410   :  { %7752 = vmatpush1.bf16.msra.mxu0 %v12623_v44  ;;  %v12686_v44 = vld [vmem:[#allocation6 + $0x800] ss:$20 sps:$4 sm:$0xff]  }
 0x411   :  { %7998 = vmatpush1.bf16.msra.mxu1 %v12626_v46  ;;  %7753 = vmatprep.subr.bf16.mxu0 %v12631_v47  ;;  %v12694_v46 = vld [vmem:[#allocation6 + $0x82c] ss:$20 sps:$4 sm:$0xff]  }
 0x412   :  { %7999 = vmatprep.subr.bf16.mxu1 %v12634_v51  ;;  %v12689_v47 = vld [vmem:[#allocation6 + $0x820] ss:$20 sps:$4 sm:$0xff]   ;;  %v12692_v51 = vld [vmem:[#allocation6 + $0x828] ss:$20 sps:$4 sm:$0xff]  }
 0x414   :  { %7754 = vmatpush1.bf16.msra.mxu0 %v12629_v50  ;;  %v14160_v50 = vld [vmem:[#allocation4 + $0x8] sm:$0xf] }
 0x415   :  { %8000 = vmatpush1.bf16.msra.mxu1 %v12632_v52  ;;  %7755 = vmatprep.subr.bf16.mxu0 %v12637_v53  ;;  %v12697_v52 = vld [vmem:[#allocation6 + $0x84c] ss:$20 sps:$4 sm:$0xff]   ;;  %v12700_v53 = vld [vmem:[#allocation6 + $0x854] ss:$20 sps:$4 sm:$0xff]  }
 0x416   :  { %8001 = vmatprep.subr.bf16.mxu1 %v12640_v57  ;;  %v897_v57 = vrot.slane %v14160_v50, %v14109_v9 }
 0x418   :  { %7756 = vmatpush1.bf16.msra.mxu0 %v12635_v56  ;;  %v893_v56 = vrot.slane %v14160_v50, %v14126_v0 }
 0x419   :  { %8002 = vmatpush1.bf16.msra.mxu1 %v12638_v48  ;;  %7757 = vmatprep.subr.bf16.mxu0 %v12643_v58  ;;  %v12695_v48 = vld [vmem:[#allocation6 + $0x848] ss:$20 sps:$4 sm:$0xff]   ;;  %v12698_v58 = vld [vmem:[#allocation6 + $0x850] ss:$20 sps:$4 sm:$0xff]  }
 0x41a   :  { %8003 = vmatprep.subr.bf16.mxu1 %v12646_v59  ;;  %v12703_v59 = vld [vmem:[#allocation6 + $0x874] ss:$20 sps:$4 sm:$0xff]  }
 0x41c   :  { %7758 = vmatpush1.bf16.msra.mxu0 %v12641_v60 }
 0x41d   :  { %8004 = vmatpush1.bf16.msra.mxu1 %v12644_v62  ;;  %7759 = vmatprep.subr.bf16.mxu0 %v12649_v1  ;;  %v12706_v1 = vld [vmem:[#allocation6 + $0x87c] ss:$20 sps:$4 sm:$0xff]  }
 0x41e   :  { %8005 = vmatprep.subr.bf16.mxu1 %v12652_v63 }
 0x420   :  { %7760 = vmatpush1.bf16.msra.mxu0 %v12647_v5 }
 0x421   :  { %8006 = vmatpush1.bf16.msra.mxu1 %v12650_v10  ;;  %7761 = vmatprep.subr.bf16.mxu0 %v12655_v32 }
 0x422   :  { %8007 = vmatprep.subr.bf16.mxu1 %v12658_v11  ;;  %v12701_v11 = vld [vmem:[#allocation6 + $0x870] ss:$20 sps:$4 sm:$0xff]  }
 0x424   :  { %7762 = vmatpush1.bf16.msra.mxu0 %v12653_v13 }
 0x425   :  { %8008 = vmatpush1.bf16.msra.mxu1 %v12656_v15  ;;  %7763 = vmatprep.subr.bf16.mxu0 %v12661_v16  ;;  %v12709_v15 = vld [vmem:[#allocation6 + $0x89c] ss:$20 sps:$4 sm:$0xff]   ;;  %v12712_v16 = vld [vmem:[#allocation6 + $0x8a4] ss:$20 sps:$4 sm:$0xff]  }
 0x426   :  { %8009 = vmatprep.subr.bf16.mxu1 %v12664_v17  ;;  %v12707_v17 = vld [vmem:[#allocation6 + $0x898] ss:$20 sps:$4 sm:$0xff]  }
 0x428   :  { %7764 = vmatpush1.bf16.msra.mxu0 %v12659_v19  ;;  %v12715_v19 = vld [vmem:[#allocation6 + $0x8c4] ss:$20 sps:$4 sm:$0xff]  }
 0x429   :  { %8010 = vmatpush1.bf16.msra.mxu1 %v12662_v22  ;;  %7774 = vmatprep.subr.bf16.mxu0 %v12667_v20  ;;  %v12713_v22 = vld [vmem:[#allocation6 + $0x8c0] ss:$20 sps:$4 sm:$0xff]   ;;  %v12716_v20 = vld [vmem:[#allocation6 + $0x8c8] ss:$20 sps:$4 sm:$0xff]  }
 0x42a   :  { %8020 = vmatprep.subr.bf16.mxu1 %v12670_v23  ;;  %v12721_v23 = vld [vmem:[#allocation6 + $0x8ec] ss:$20 sps:$4 sm:$0xff]  }
 0x42b   :  { %7766 = vmatmul.mubr.bf16.vlgmr.msra.gmra.mrb[12].mxu0 %v14152_v54 }
 0x42c   :  { %8012 = vmatmul.mubr.bf16.vlgmr.msra.gmra.mrb[12].mxu1 %v14152_v54  ;;  %7775 = vmatpush1.bf16.msra.mxu0 %v12665_v36  ;;  %v12719_v36 = vld [vmem:[#allocation6 + $0x8e8] ss:$20 sps:$4 sm:$0xff]  }
 0x42d   :  { %7806 = vmatprep.mubr.bf16.mxu0 %v14154_v40  ;;  %8021 = vmatpush1.bf16.msra.mxu1 %v12668_v25  ;;  %v12722_v25 = vld [vmem:[#allocation6 + $0x8f0] ss:$20 sps:$4 sm:$0xff]  }
 0x42e   :  { %8052 = vmatprep.mubr.bf16.mxu1 %v14154_v40  ;;  %7776 = vmatprep.subr.bf16.mxu0 %v12673_v26  ;;  %v12727_v26 = vld [vmem:[#allocation6 + $0x914] ss:$20 sps:$4 sm:$0xff]  }
 0x42f   :  { %8022 = vmatprep.subr.bf16.mxu1 %v12676_v27  ;;  %v12730_v27 = vld [vmem:[#allocation6 + $0x91c] ss:$20 sps:$4 sm:$0xff]  }
 0x430   :  { %7777 = vmatpush1.bf16.msra.mxu0 %v12671_v28  ;;  %v12725_v28 = vld [vmem:[#allocation6 + $0x910] ss:$20 sps:$4 sm:$0xff]  }
 0x431   :  { %8023 = vmatpush1.bf16.msra.mxu1 %v12674_v29  ;;  %7778 = vmatprep.subr.bf16.mxu0 %v12679_v3  ;;  %v12728_v29 = vld [vmem:[#allocation6 + $0x918] ss:$20 sps:$4 sm:$0xff]   ;;  %v12733_v3 = vld [vmem:[#allocation6 + $0x93c] ss:$20 sps:$4 sm:$0xff]  }
 0x432   :  { %8024 = vmatprep.subr.bf16.mxu1 %v12682_v30  ;;  %v12736_v30 = vld [vmem:[#allocation6 + $0x944] ss:$20 sps:$4 sm:$0xff]  }
 0x434   :  { %7779 = vmatpush1.bf16.msra.mxu0 %v12677_v31  ;;  %v12731_v31 = vld [vmem:[#allocation6 + $0x938] ss:$20 sps:$4 sm:$0xff]  }
 0x435   :  { %8025 = vmatpush1.bf16.msra.mxu1 %v12680_v33  ;;  %7780 = vmatprep.subr.bf16.mxu0 %v12685_v34  ;;  %v12734_v33 = vld [vmem:[#allocation6 + $0x940] ss:$20 sps:$4 sm:$0xff]   ;;  %v12739_v34 = vld [vmem:[#allocation6 + $0x964] ss:$20 sps:$4 sm:$0xff]  }
 0x436   :  { %8026 = vmatprep.subr.bf16.mxu1 %v12688_v42  ;;  %v12742_v42 = vld [vmem:[#allocation6 + $0x96c] ss:$20 sps:$4 sm:$0xff]  }
 0x438   :  { %7781 = vmatpush1.bf16.msra.mxu0 %v12683_v43  ;;  %v12737_v43 = vld [vmem:[#allocation6 + $0x960] ss:$20 sps:$4 sm:$0xff]  }
 0x439   :  { %8027 = vmatpush1.bf16.msra.mxu1 %v12686_v44  ;;  %7782 = vmatprep.subr.bf16.mxu0 %v12691_v45  ;;  %v876_v44 = vsub.s32 6, %v14081_v49  ;;  %v12740_v45 = vld [vmem:[#allocation6 + $0x968] ss:$20 sps:$4 sm:$0xff]  }
 0x43a   :  { %8028 = vmatprep.subr.bf16.mxu1 %v12694_v46  ;;  %v12745_v46 = vld [vmem:[#allocation6 + $0x98c] ss:$20 sps:$4 sm:$0xff]  }
 0x43b   :  { %v13121_v49 = vld [vmem:[#allocation9 + $0x180] ss:$8 sps:$4 sm:$0xff]  }
 0x43c   :  { %7783 = vmatpush1.bf16.msra.mxu0 %v12689_v47  ;;  %v12748_v47 = vld [vmem:[#allocation6 + $0x994] ss:$20 sps:$4 sm:$0xff]  }
 0x43d   :  { %8029 = vmatpush1.bf16.msra.mxu1 %v12692_v51  ;;  %7784 = vmatprep.subr.bf16.mxu0 %v12697_v52  ;;  %v12743_v51 = vld [vmem:[#allocation6 + $0x988] ss:$20 sps:$4 sm:$0xff]   ;;  %v877_v52 = vrot.slane %v14129_v41, %v876_v44 }
 0x43e   :  { %v14166_v60 = vpop.f32.mrb[8].mxu0  ;;  %v4521_v62 = vpop.f32.mrb[8].mxu1  ;;  %8030 = vmatprep.subr.bf16.mxu1 %v12700_v53  ;;  %v12746_v53 = vld [vmem:[#allocation6 + $0x990] ss:$20 sps:$4 sm:$0xff]  }
 0x43f   :  { %v14168_v63 = vadd.f32 %v4521_v62, %v893_v56  ;;  %v14170_v39 = vpop.f32.mrb[9].mxu0  ;;  %v4523_v5 = vpop.f32.mrb[9].mxu1  ;;  %v12751_v56 = vld [vmem:[#allocation6 + $0x9b4] ss:$20 sps:$4 sm:$0xff]   ;;  %v12752_v62 = vld [vmem:[#allocation6 + $0x9b8] ss:$20 sps:$4 sm:$0xff]  }
 0x440   :  { %v14172_v7 = vadd.f32 %v4523_v5, %v897_v57  ;;  %v4402_v10 = vpop.f32.mrb[10].mxu0  ;;  %v4525_v32 = vpop.f32.mrb[10].mxu1  ;;  %7785 = vmatpush1.bf16.msra.mxu0 %v12695_v48  ;;  %v12754_v57 = vld [vmem:[#allocation6 + $0x9bc] ss:$20 sps:$4 sm:$0xff]   ;;  %v889_v48 = vrot.slane %v14160_v50, %v14086_v55  ;;  %v12760_v5 = vld [vmem:[#allocation6 + $0x9e4] ss:$20 sps:$4 sm:$0xff]  }
 0x441   :  { %8031 = vmatpush1.bf16.msra.mxu1 %v12698_v58  ;;  %v4403_v12 = vpop.f32.mrb[11].mxu0  ;;  %v4526_v13 = vpop.f32.mrb[11].mxu1  ;;  %7786 = vmatprep.subr.bf16.mxu0 %v12703_v59  ;;  %v12749_v58 = vld [vmem:[#allocation6 + $0x9b0] ss:$20 sps:$4 sm:$0xff]   ;;  %v11378_v59 = vadd.f32 %v14099_v37, %v877_v52  ;;  %v12755_v10 = vld [vmem:[#allocation6 + $0x9d8] ss:$20 sps:$4 sm:$0xff]  }
 0x442   :  { %8032 = vmatprep.subr.bf16.mxu1 %v12706_v1  ;;  %v12757_v1 = vld [vmem:[#allocation6 + $0x9dc] ss:$20 sps:$4 sm:$0xff]   ;;  %v11381_v41 = vadd.f32 %v14170_v39, %v889_v48  ;;  %v12763_v12 = vld [vmem:[#allocation6 + $0xa04] ss:$20 sps:$4 sm:$0xff]   ;;  %v12766_v13 = vld [vmem:[#allocation6 + $0xa0c] ss:$20 sps:$4 sm:$0xff]  }
 0x443   :  { %v4534_v32 = vmax.f32 %v11378_v59, 0.0  ;;  %v12761_v37 = vld [vmem:[#allocation6 + $0xa00] ss:$20 sps:$4 sm:$0xff]   ;;  %v12802_v44 = vld [vmem:[#allocation6 + $0xafc] ss:$20 sps:$4 sm:$0xff]  }
 0x444   :  { %7787 = vmatpush1.bf16.msra.mxu0 %v12701_v11  ;;  %v12758_v11 = vld [vmem:[#allocation6 + $0x9e0] ss:$20 sps:$4 sm:$0xff]   ;;  %v12803_v52 = vld [vmem:[#allocation6 + $0xb18] ss:$20 sps:$4 sm:$0xff]  }
 0x445   :  { %8033 = vmatpush1.bf16.msra.mxu1 %v12704_v14  ;;  %7788 = vmatprep.subr.bf16.mxu0 %v12709_v15  ;;  %v4537_v14 = vmax.f32 %v11381_v41, 0.0  ;;  %v14180_v15 = vpack.c.bf16 %v4534_v32, %v4534_v32  ;;  %v12809_v48 = vld [vmem:[#allocation6 + $0xb40] ss:$20 sps:$4 sm:$0xff]   ;;  %v12821_v32 = vld [vmem:[#allocation6 + $0xb90] ss:$20 sps:$4 sm:$0xff]  }
 0x446   :  { %8034 = vmatprep.subr.bf16.mxu1 %v12712_v16  ;;  %v12764_v16 = vld [vmem:[#allocation6 + $0xa08] ss:$20 sps:$4 sm:$0xff]   ;;  %v12817_v59 = vld [vmem:[#allocation6 + $0xb6c] ss:$20 sps:$4 sm:$0xff]  }
 0x447   :  { %v14182_v39 = vpack.c.bf16 %v4537_v14, %v4537_v14  ;;  %v12823_v41 = vld [vmem:[#allocation6 + $0xb94] ss:$20 sps:$4 sm:$0xff]   ;;  %v12827_v14 = vld [vmem:[#allocation6 + $0xbb8] ss:$20 sps:$4 sm:$0xff]  }
 0x448   :  { %7789 = vmatpush1.bf16.msra.mxu0 %v12707_v17  ;;  %v12769_v17 = vld [vmem:[#allocation6 + $0xa2c] ss:$20 sps:$4 sm:$0xff]  }
 0x449   :  { %8035 = vmatpush1.bf16.msra.mxu1 %v12710_v18  ;;  %7790 = vmatprep.subr.bf16.mxu0 %v12715_v19  ;;  %v12772_v18 = vld [vmem:[#allocation6 + $0xa34] ss:$20 sps:$4 sm:$0xff]  }
 0x44a   :  { %8036 = vmatprep.subr.bf16.mxu1 %v12718_v21  ;;  %v12767_v19 = vld [vmem:[#allocation6 + $0xa28] ss:$20 sps:$4 sm:$0xff]   ;;  %v12770_v21 = vld [vmem:[#allocation6 + $0xa30] ss:$20 sps:$4 sm:$0xff]  }
 0x44c   :  { %7791 = vmatpush1.bf16.msra.mxu0 %v12713_v22  ;;  %v12775_v22 = vld [vmem:[#allocation6 + $0xa54] ss:$20 sps:$4 sm:$0xff]  }
 0x44d   :  { %8037 = vmatpush1.bf16.msra.mxu1 %v12716_v20  ;;  %7792 = vmatprep.subr.bf16.mxu0 %v12721_v23  ;;  %v12778_v20 = vld [vmem:[#allocation6 + $0xa5c] ss:$20 sps:$4 sm:$0xff]  }
 0x44e   :  { %8038 = vmatprep.subr.bf16.mxu1 %v12724_v24  ;;  %v12773_v23 = vld [vmem:[#allocation6 + $0xa50] ss:$20 sps:$4 sm:$0xff]   ;;  %v12776_v24 = vld [vmem:[#allocation6 + $0xa58] ss:$20 sps:$4 sm:$0xff]  }
 0x450   :  { %7793 = vmatpush1.bf16.msra.mxu0 %v12719_v36  ;;  %v12781_v36 = vld [vmem:[#allocation6 + $0xa7c] ss:$20 sps:$4 sm:$0xff]  }
 0x451   :  { %8039 = vmatpush1.bf16.msra.mxu1 %v12722_v25  ;;  %7794 = vmatprep.subr.bf16.mxu0 %v12727_v26  ;;  %v12784_v25 = vld [vmem:[#allocation6 + $0xa84] ss:$20 sps:$4 sm:$0xff]  }
 0x452   :  { %8040 = vmatprep.subr.bf16.mxu1 %v12730_v27  ;;  %v12779_v26 = vld [vmem:[#allocation6 + $0xa78] ss:$20 sps:$4 sm:$0xff]   ;;  %v12782_v27 = vld [vmem:[#allocation6 + $0xa80] ss:$20 sps:$4 sm:$0xff]  }
 0x454   :  { %7795 = vmatpush1.bf16.msra.mxu0 %v12725_v28  ;;  %v12787_v28 = vld [vmem:[#allocation6 + $0xaa4] ss:$20 sps:$4 sm:$0xff]  }
 0x455   :  { %8041 = vmatpush1.bf16.msra.mxu1 %v12728_v29  ;;  %7796 = vmatprep.subr.bf16.mxu0 %v12733_v3  ;;  %v12790_v29 = vld [vmem:[#allocation6 + $0xaac] ss:$20 sps:$4 sm:$0xff]  }
 0x456   :  { %8042 = vmatprep.subr.bf16.mxu1 %v12736_v30  ;;  %v12785_v3 = vld [vmem:[#allocation6 + $0xaa0] ss:$20 sps:$4 sm:$0xff]   ;;  %v12788_v30 = vld [vmem:[#allocation6 + $0xaa8] ss:$20 sps:$4 sm:$0xff]  }
 0x458   :  { %7797 = vmatpush1.bf16.msra.mxu0 %v12731_v31  ;;  %v12793_v31 = vld [vmem:[#allocation6 + $0xacc] ss:$20 sps:$4 sm:$0xff]  }
 0x459   :  { %8043 = vmatpush1.bf16.msra.mxu1 %v12734_v33  ;;  %7798 = vmatprep.subr.bf16.mxu0 %v12739_v34  ;;  %v12796_v33 = vld [vmem:[#allocation6 + $0xad4] ss:$20 sps:$4 sm:$0xff]  }
 0x45a   :  { %8044 = vmatprep.subr.bf16.mxu1 %v12742_v42  ;;  %v12791_v34 = vld [vmem:[#allocation6 + $0xac8] ss:$20 sps:$4 sm:$0xff]   ;;  %v12794_v42 = vld [vmem:[#allocation6 + $0xad0] ss:$20 sps:$4 sm:$0xff]  }
 0x45c   :  { %7799 = vmatpush1.bf16.msra.mxu0 %v12737_v43  ;;  %v12799_v43 = vld [vmem:[#allocation6 + $0xaf4] ss:$20 sps:$4 sm:$0xff]  }
 0x45d   :  { %8045 = vmatpush1.bf16.msra.mxu1 %v12740_v45  ;;  %7800 = vmatprep.subr.bf16.mxu0 %v12745_v46  ;;  %v12797_v45 = vld [vmem:[#allocation6 + $0xaf0] ss:$20 sps:$4 sm:$0xff]   ;;  %v12800_v46 = vld [vmem:[#allocation6 + $0xaf8] ss:$20 sps:$4 sm:$0xff]  }
 0x45e   :  { %8046 = vmatprep.subr.bf16.mxu1 %v12748_v47  ;;  %v12805_v47 = vld [vmem:[#allocation6 + $0xb1c] ss:$20 sps:$4 sm:$0xff]  }
 0x460   :  { %7801 = vmatpush1.bf16.msra.mxu0 %v12743_v51  ;;  %v12808_v51 = vld [vmem:[#allocation6 + $0xb24] ss:$20 sps:$4 sm:$0xff]  }
 0x461   :  { %8047 = vmatpush1.bf16.msra.mxu1 %v12746_v53  ;;  %7802 = vmatprep.subr.bf16.mxu0 %v12751_v56  ;;  %v12806_v53 = vld [vmem:[#allocation6 + $0xb20] ss:$20 sps:$4 sm:$0xff]   ;;  %v12811_v56 = vld [vmem:[#allocation6 + $0xb44] ss:$20 sps:$4 sm:$0xff]  }
 0x462   :  { %8048 = vmatprep.subr.bf16.mxu1 %v12754_v57  ;;  %v12814_v57 = vld [vmem:[#allocation6 + $0xb4c] ss:$20 sps:$4 sm:$0xff]  }
 0x464   :  { %7803 = vmatpush1.bf16.msra.mxu0 %v12749_v58  ;;  %v12812_v58 = vld [vmem:[#allocation6 + $0xb48] ss:$20 sps:$4 sm:$0xff]  }
 0x465   :  { %8049 = vmatpush1.bf16.msra.mxu1 %v12752_v62  ;;  %7804 = vmatprep.subr.bf16.mxu0 %v12757_v1  ;;  %v12820_v62 = vld [vmem:[#allocation6 + $0xb74] ss:$20 sps:$4 sm:$0xff]  }
 0x466   :  { %8050 = vmatprep.subr.bf16.mxu1 %v12760_v5  ;;  %v12815_v1 = vld [vmem:[#allocation6 + $0xb68] ss:$20 sps:$4 sm:$0xff]   ;;  %v12818_v5 = vld [vmem:[#allocation6 + $0xb70] ss:$20 sps:$4 sm:$0xff]  }
 0x468   :  { %7805 = vmatpush1.bf16.msra.mxu0 %v12755_v10  ;;  %v12826_v10 = vld [vmem:[#allocation6 + $0xb9c] ss:$20 sps:$4 sm:$0xff]  }
 0x469   :  { %8051 = vmatpush1.bf16.msra.mxu1 %v12758_v11  ;;  %7815 = vmatprep.subr.bf16.mxu0 %v12763_v12  ;;  %v12824_v11 = vld [vmem:[#allocation6 + $0xb98] ss:$20 sps:$4 sm:$0xff]   ;;  %v12829_v12 = vld [vmem:[#allocation6 + $0xbbc] ss:$20 sps:$4 sm:$0xff]  }
 0x46a   :  { %8061 = vmatprep.subr.bf16.mxu1 %v12766_v13  ;;  %v12832_v13 = vld [vmem:[#allocation6 + $0xbc4] ss:$20 sps:$4 sm:$0xff]  }
 0x46b   :  { %7807 = vmatmul.mubr.bf16.vlgmr.msra.gmra.mrb[12].mxu0 %v14180_v15 }
 0x46c   :  { %8053 = vmatmul.mubr.bf16.vlgmr.msra.gmra.mrb[12].mxu1 %v14180_v15  ;;  %7816 = vmatpush1.bf16.msra.mxu0 %v12761_v37  ;;  %v12830_v37 = vld [vmem:[#allocation6 + $0xbc0] ss:$20 sps:$4 sm:$0xff]  }
 0x46d   :  { %7847 = vmatprep.mubr.bf16.mxu0 %v14182_v39  ;;  %8062 = vmatpush1.bf16.msra.mxu1 %v12764_v16  ;;  %v12835_v16 = vld [vmem:[#allocation6 + $0xbe4] ss:$20 sps:$4 sm:$0xff]  }
 0x46e   :  { %8093 = vmatprep.mubr.bf16.mxu1 %v14182_v39  ;;  %7817 = vmatprep.subr.bf16.mxu0 %v12769_v17  ;;  %v12838_v17 = vld [vmem:[#allocation6 + $0xbec] ss:$20 sps:$4 sm:$0xff]  }
 0x46f   :  { %8063 = vmatprep.subr.bf16.mxu1 %v12772_v18  ;;  %v12833_v18 = vld [vmem:[#allocation6 + $0xbe0] ss:$20 sps:$4 sm:$0xff]  }
 0x470   :  { %7818 = vmatpush1.bf16.msra.mxu0 %v12767_v19  ;;  %v12836_v19 = vld [vmem:[#allocation6 + $0xbe8] ss:$20 sps:$4 sm:$0xff]  }
 0x471   :  { %8064 = vmatpush1.bf16.msra.mxu1 %v12770_v21  ;;  %7819 = vmatprep.subr.bf16.mxu0 %v12775_v22  ;;  %v12841_v21 = vld [vmem:[#allocation6 + $0xc0c] ss:$20 sps:$4 sm:$0xff]   ;;  %v12844_v22 = vld [vmem:[#allocation6 + $0xc14] ss:$20 sps:$4 sm:$0xff]  }
 0x472   :  { %8065 = vmatprep.subr.bf16.mxu1 %v12778_v20  ;;  %v12839_v20 = vld [vmem:[#allocation6 + $0xc08] ss:$20 sps:$4 sm:$0xff]  }
 0x474   :  { %7820 = vmatpush1.bf16.msra.mxu0 %v12773_v23  ;;  %v885_v23 = vrot.slane %v14160_v50, %v14106_v8  ;;  %v12854_v50 = vld [vmem:[#allocation6 + $0xc60] ss:$20 sps:$4 sm:$0xff]  }
 0x475   :  { %8066 = vmatpush1.bf16.msra.mxu1 %v12776_v24  ;;  %7821 = vmatprep.subr.bf16.mxu0 %v12781_v36  ;;  %v12842_v24 = vld [vmem:[#allocation6 + $0xc10] ss:$20 sps:$4 sm:$0xff]   ;;  %v12847_v36 = vld [vmem:[#allocation6 + $0xc34] ss:$20 sps:$4 sm:$0xff]  }
 0x476   :  { %8067 = vmatprep.subr.bf16.mxu1 %v12784_v25  ;;  %v12850_v25 = vld [vmem:[#allocation6 + $0xc3c] ss:$20 sps:$4 sm:$0xff]  }
 0x478   :  { %7822 = vmatpush1.bf16.msra.mxu0 %v12779_v26  ;;  %v12845_v26 = vld [vmem:[#allocation6 + $0xc30] ss:$20 sps:$4 sm:$0xff]  }
 0x479   :  { %8068 = vmatpush1.bf16.msra.mxu1 %v12782_v27  ;;  %7823 = vmatprep.subr.bf16.mxu0 %v12787_v28  ;;  %v11380_v27 = vadd.f32 %v14166_v60, %v885_v23  ;;  %v12848_v28 = vld [vmem:[#allocation6 + $0xc38] ss:$20 sps:$4 sm:$0xff]  }
 0x47a   :  { %8069 = vmatprep.subr.bf16.mxu1 %v12790_v29  ;;  %v12853_v29 = vld [vmem:[#allocation6 + $0xc5c] ss:$20 sps:$4 sm:$0xff]   ;;  %v12910_v23 = vld [vmem:[#allocation6 + $0xdcc] ss:$20 sps:$4 sm:$0xff]  }
 0x47c   :  { %7824 = vmatpush1.bf16.msra.mxu0 %v12785_v3  ;;  %v12856_v3 = vld [vmem:[#allocation6 + $0xc64] ss:$20 sps:$4 sm:$0xff]  }
 0x47d   :  { %8070 = vmatpush1.bf16.msra.mxu1 %v12788_v30  ;;  %7825 = vmatprep.subr.bf16.mxu0 %v12793_v31  ;;  %v12851_v30 = vld [vmem:[#allocation6 + $0xc58] ss:$20 sps:$4 sm:$0xff]   ;;  %v4536_v31 = vmax.f32 %v11380_v27, 0.0  ;;  %v12911_v27 = vld [vmem:[#allocation6 + $0xde8] ss:$20 sps:$4 sm:$0xff]  }
 0x47e   :  { %8071 = vmatprep.subr.bf16.mxu1 %v12796_v33  ;;  %v12859_v33 = vld [vmem:[#allocation6 + $0xc84] ss:$20 sps:$4 sm:$0xff]  }
 0x47f   :  { %v14192_v60 = vpack.c.bf16 %v4536_v31, %v4536_v31  ;;  %v12920_v31 = vld [vmem:[#allocation6 + $0xe18] ss:$20 sps:$4 sm:$0xff]  }
 0x480   :  { %7826 = vmatpush1.bf16.msra.mxu0 %v12791_v34  ;;  %v12862_v34 = vld [vmem:[#allocation6 + $0xc8c] ss:$20 sps:$4 sm:$0xff]  }
 0x481   :  { %8072 = vmatpush1.bf16.msra.mxu1 %v12794_v42  ;;  %7827 = vmatprep.subr.bf16.mxu0 %v12799_v43  ;;  %v4539_v42 = vmax.f32 %v14172_v7, 0.0  ;;  %v12857_v43 = vld [vmem:[#allocation6 + $0xc80] ss:$20 sps:$4 sm:$0xff]   ;;  %v12866_v7 = vld [vmem:[#allocation6 + $0xcb0] ss:$20 sps:$4 sm:$0xff]  }
 0x482   :  { %8073 = vmatprep.subr.bf16.mxu1 %v12802_v44  ;;  %v12860_v44 = vld [vmem:[#allocation6 + $0xc88] ss:$20 sps:$4 sm:$0xff]  }
 0x484   :  { %7828 = vmatpush1.bf16.msra.mxu0 %v12797_v45  ;;  %v12865_v45 = vld [vmem:[#allocation6 + $0xcac] ss:$20 sps:$4 sm:$0xff]  }
 0x485   :  { %8074 = vmatpush1.bf16.msra.mxu1 %v12800_v46  ;;  %7829 = vmatprep.subr.bf16.mxu0 %v12805_v47  ;;  %v14194_v46 = vpack.c.bf16 %v4539_v42, %v4539_v42  ;;  %v12868_v47 = vld [vmem:[#allocation6 + $0xcb4] ss:$20 sps:$4 sm:$0xff]  }
 0x486   :  { %8075 = vmatprep.subr.bf16.mxu1 %v12808_v51  ;;  %v12863_v51 = vld [vmem:[#allocation6 + $0xca8] ss:$20 sps:$4 sm:$0xff]   ;;  %v12926_v42 = vld [vmem:[#allocation6 + $0xe40] ss:$20 sps:$4 sm:$0xff]  }
 0x488   :  { %7830 = vmatpush1.bf16.msra.mxu0 %v12803_v52  ;;  %v12871_v52 = vld [vmem:[#allocation6 + $0xcd4] ss:$20 sps:$4 sm:$0xff]  }
 0x489   :  { %8076 = vmatpush1.bf16.msra.mxu1 %v12806_v53  ;;  %7831 = vmatprep.subr.bf16.mxu0 %v12811_v56  ;;  %v12874_v53 = vld [vmem:[#allocation6 + $0xcdc] ss:$20 sps:$4 sm:$0xff]  }
 0x48a   :  { %8077 = vmatprep.subr.bf16.mxu1 %v12814_v57  ;;  %v12869_v56 = vld [vmem:[#allocation6 + $0xcd0] ss:$20 sps:$4 sm:$0xff]   ;;  %v12872_v57 = vld [vmem:[#allocation6 + $0xcd8] ss:$20 sps:$4 sm:$0xff]  }
 0x48c   :  { %7832 = vmatpush1.bf16.msra.mxu0 %v12809_v48  ;;  %v12877_v48 = vld [vmem:[#allocation6 + $0xcfc] ss:$20 sps:$4 sm:$0xff]  }
 0x48d   :  { %8078 = vmatpush1.bf16.msra.mxu1 %v12812_v58  ;;  %7833 = vmatprep.subr.bf16.mxu0 %v12817_v59  ;;  %v12880_v58 = vld [vmem:[#allocation6 + $0xd04] ss:$20 sps:$4 sm:$0xff]  }
 0x48e   :  { %8079 = vmatprep.subr.bf16.mxu1 %v12820_v62  ;;  %v12875_v59 = vld [vmem:[#allocation6 + $0xcf8] ss:$20 sps:$4 sm:$0xff]   ;;  %v12878_v62 = vld [vmem:[#allocation6 + $0xd00] ss:$20 sps:$4 sm:$0xff]  }
 0x490   :  { %7834 = vmatpush1.bf16.msra.mxu0 %v12815_v1  ;;  %v12883_v1 = vld [vmem:[#allocation6 + $0xd24] ss:$20 sps:$4 sm:$0xff]  }
 0x491   :  { %8080 = vmatpush1.bf16.msra.mxu1 %v12818_v5  ;;  %7835 = vmatprep.subr.bf16.mxu0 %v12823_v41  ;;  %v12886_v5 = vld [vmem:[#allocation6 + $0xd2c] ss:$20 sps:$4 sm:$0xff]  }
 0x492   :  { %8081 = vmatprep.subr.bf16.mxu1 %v12826_v10  ;;  %v12881_v41 = vld [vmem:[#allocation6 + $0xd20] ss:$20 sps:$4 sm:$0xff]   ;;  %v12884_v10 = vld [vmem:[#allocation6 + $0xd28] ss:$20 sps:$4 sm:$0xff]  }
 0x494   :  { %7836 = vmatpush1.bf16.msra.mxu0 %v12821_v32  ;;  %v12889_v32 = vld [vmem:[#allocation6 + $0xd4c] ss:$20 sps:$4 sm:$0xff]  }
 0x495   :  { %8082 = vmatpush1.bf16.msra.mxu1 %v12824_v11  ;;  %7837 = vmatprep.subr.bf16.mxu0 %v12829_v12  ;;  %v12892_v11 = vld [vmem:[#allocation6 + $0xd54] ss:$20 sps:$4 sm:$0xff]  }
 0x496   :  { %8083 = vmatprep.subr.bf16.mxu1 %v12832_v13  ;;  %v12887_v12 = vld [vmem:[#allocation6 + $0xd48] ss:$20 sps:$4 sm:$0xff]   ;;  %v12890_v13 = vld [vmem:[#allocation6 + $0xd50] ss:$20 sps:$4 sm:$0xff]  }
 0x498   :  { %7838 = vmatpush1.bf16.msra.mxu0 %v12827_v14  ;;  %v12895_v14 = vld [vmem:[#allocation6 + $0xd74] ss:$20 sps:$4 sm:$0xff]  }
 0x499   :  { %8084 = vmatpush1.bf16.msra.mxu1 %v12830_v37  ;;  %7839 = vmatprep.subr.bf16.mxu0 %v12835_v16  ;;  %v12898_v37 = vld [vmem:[#allocation6 + $0xd7c] ss:$20 sps:$4 sm:$0xff]  }
 0x49a   :  { %8085 = vmatprep.subr.bf16.mxu1 %v12838_v17  ;;  %v12893_v16 = vld [vmem:[#allocation6 + $0xd70] ss:$20 sps:$4 sm:$0xff]   ;;  %v12896_v17 = vld [vmem:[#allocation6 + $0xd78] ss:$20 sps:$4 sm:$0xff]  }
 0x49c   :  { %7840 = vmatpush1.bf16.msra.mxu0 %v12833_v18  ;;  %v12901_v18 = vld [vmem:[#allocation6 + $0xd9c] ss:$20 sps:$4 sm:$0xff]  }
 0x49d   :  { %8086 = vmatpush1.bf16.msra.mxu1 %v12836_v19  ;;  %7841 = vmatprep.subr.bf16.mxu0 %v12841_v21  ;;  %v12904_v19 = vld [vmem:[#allocation6 + $0xda4] ss:$20 sps:$4 sm:$0xff]  }
 0x49e   :  { %8087 = vmatprep.subr.bf16.mxu1 %v12844_v22  ;;  %v12899_v21 = vld [vmem:[#allocation6 + $0xd98] ss:$20 sps:$4 sm:$0xff]   ;;  %v12902_v22 = vld [vmem:[#allocation6 + $0xda0] ss:$20 sps:$4 sm:$0xff]  }
 0x4a0   :  { %7842 = vmatpush1.bf16.msra.mxu0 %v12839_v20  ;;  %v12907_v20 = vld [vmem:[#allocation6 + $0xdc4] ss:$20 sps:$4 sm:$0xff]  }
 0x4a1   :  { %8088 = vmatpush1.bf16.msra.mxu1 %v12842_v24  ;;  %7843 = vmatprep.subr.bf16.mxu0 %v12847_v36  ;;  %v12905_v24 = vld [vmem:[#allocation6 + $0xdc0] ss:$20 sps:$4 sm:$0xff]   ;;  %v12908_v36 = vld [vmem:[#allocation6 + $0xdc8] ss:$20 sps:$4 sm:$0xff]  }
 0x4a2   :  { %8089 = vmatprep.subr.bf16.mxu1 %v12850_v25  ;;  %v12913_v25 = vld [vmem:[#allocation6 + $0xdec] ss:$20 sps:$4 sm:$0xff]  }
 0x4a4   :  { %7844 = vmatpush1.bf16.msra.mxu0 %v12845_v26  ;;  %v12916_v26 = vld [vmem:[#allocation6 + $0xdf4] ss:$20 sps:$4 sm:$0xff]  }
 0x4a5   :  { %8090 = vmatpush1.bf16.msra.mxu1 %v12848_v28  ;;  %7845 = vmatprep.subr.bf16.mxu0 %v12853_v29  ;;  %v12914_v28 = vld [vmem:[#allocation6 + $0xdf0] ss:$20 sps:$4 sm:$0xff]   ;;  %v12919_v29 = vld [vmem:[#allocation6 + $0xe14] ss:$20 sps:$4 sm:$0xff]  }
 0x4a6   :  { %8091 = vmatprep.subr.bf16.mxu1 %v12856_v3  ;;  %v12922_v3 = vld [vmem:[#allocation6 + $0xe1c] ss:$20 sps:$4 sm:$0xff]  }
 0x4a8   :  { %7846 = vmatpush1.bf16.msra.mxu0 %v12851_v30  ;;  %v12917_v30 = vld [vmem:[#allocation6 + $0xe10] ss:$20 sps:$4 sm:$0xff]  }
 0x4a9   :  { %8092 = vmatpush1.bf16.msra.mxu1 %v12854_v50  ;;  %7856 = vmatprep.subr.bf16.mxu0 %v12859_v33  ;;  %v12925_v50 = vld [vmem:[#allocation6 + $0xe3c] ss:$20 sps:$4 sm:$0xff]   ;;  %v12928_v33 = vld [vmem:[#allocation6 + $0xe44] ss:$20 sps:$4 sm:$0xff]  }
 0x4aa   :  { %8102 = vmatprep.subr.bf16.mxu1 %v12862_v34  ;;  %v12923_v34 = vld [vmem:[#allocation6 + $0xe38] ss:$20 sps:$4 sm:$0xff]  }
 0x4ab   :  { %7848 = vmatmul.mubr.bf16.vlgmr.msra.gmra.mrb[12].mxu0 %v14192_v60 }
 0x4ac   :  { %8094 = vmatmul.mubr.bf16.vlgmr.msra.gmra.mrb[12].mxu1 %v14192_v60  ;;  %7857 = vmatpush1.bf16.msra.mxu0 %v12857_v43  ;;  %v12931_v43 = vld [vmem:[#allocation6 + $0xe64] ss:$20 sps:$4 sm:$0xff]  }
 0x4ad   :  { %7888 = vmatprep.mubr.bf16.mxu0 %v14194_v46  ;;  %8103 = vmatpush1.bf16.msra.mxu1 %v12860_v44  ;;  %v12934_v44 = vld [vmem:[#allocation6 + $0xe6c] ss:$20 sps:$4 sm:$0xff]  }
 0x4ae   :  { %8134 = vmatprep.mubr.bf16.mxu1 %v14194_v46  ;;  %7858 = vmatprep.subr.bf16.mxu0 %v12865_v45  ;;  %v12929_v45 = vld [vmem:[#allocation6 + $0xe60] ss:$20 sps:$4 sm:$0xff]  }
 0x4af   :  { %8104 = vmatprep.subr.bf16.mxu1 %v12868_v47  ;;  %v12932_v47 = vld [vmem:[#allocation6 + $0xe68] ss:$20 sps:$4 sm:$0xff]  }
 0x4b0   :  { %7859 = vmatpush1.bf16.msra.mxu0 %v12863_v51  ;;  %v12937_v51 = vld [vmem:[#allocation6 + $0xe8c] ss:$20 sps:$4 sm:$0xff]  }
 0x4b1   :  { %8105 = vmatpush1.bf16.msra.mxu1 %v12866_v7  ;;  %7860 = vmatprep.subr.bf16.mxu0 %v12871_v52  ;;  %v12940_v7 = vld [vmem:[#allocation6 + $0xe94] ss:$20 sps:$4 sm:$0xff]  }
 0x4b2   :  { %8106 = vmatprep.subr.bf16.mxu1 %v12874_v53  ;;  %v12935_v52 = vld [vmem:[#allocation6 + $0xe88] ss:$20 sps:$4 sm:$0xff]   ;;  %v12938_v53 = vld [vmem:[#allocation6 + $0xe90] ss:$20 sps:$4 sm:$0xff]  }
 0x4b4   :  { %7861 = vmatpush1.bf16.msra.mxu0 %v12869_v56  ;;  %v12943_v56 = vld [vmem:[#allocation6 + $0xeb4] ss:$20 sps:$4 sm:$0xff]  }
 0x4b5   :  { %8107 = vmatpush1.bf16.msra.mxu1 %v12872_v57  ;;  %7862 = vmatprep.subr.bf16.mxu0 %v12877_v48  ;;  %v12946_v57 = vld [vmem:[#allocation6 + $0xebc] ss:$20 sps:$4 sm:$0xff]  }
 0x4b6   :  { %8108 = vmatprep.subr.bf16.mxu1 %v12880_v58  ;;  %v12941_v48 = vld [vmem:[#allocation6 + $0xeb0] ss:$20 sps:$4 sm:$0xff]   ;;  %v12944_v58 = vld [vmem:[#allocation6 + $0xeb8] ss:$20 sps:$4 sm:$0xff]  }
 0x4b8   :  { %7863 = vmatpush1.bf16.msra.mxu0 %v12875_v59  ;;  %v12949_v59 = vld [vmem:[#allocation6 + $0xedc] ss:$20 sps:$4 sm:$0xff]  }
 0x4b9   :  { %8109 = vmatpush1.bf16.msra.mxu1 %v12878_v62  ;;  %7864 = vmatprep.subr.bf16.mxu0 %v12883_v1  ;;  %v12952_v62 = vld [vmem:[#allocation6 + $0xee4] ss:$20 sps:$4 sm:$0xff]  }
 0x4ba   :  { %8110 = vmatprep.subr.bf16.mxu1 %v12886_v5  ;;  %v12947_v1 = vld [vmem:[#allocation6 + $0xed8] ss:$20 sps:$4 sm:$0xff]   ;;  %v4538_v5 = vmax.f32 %v14168_v63, 0.0 }
 0x4bb   :  { %v12959_v63 = vld [vmem:[#allocation6 + $0x38] ss:$20 sps:$4 sm:$0xff]  }
 0x4bc   :  { %7865 = vmatpush1.bf16.msra.mxu0 %v12881_v41  ;;  %v12950_v41 = vld [vmem:[#allocation6 + $0xee0] ss:$20 sps:$4 sm:$0xff]  }
 0x4bd   :  { %8111 = vmatpush1.bf16.msra.mxu1 %v12884_v10  ;;  %7866 = vmatprep.subr.bf16.mxu0 %v12889_v32  ;;  %v12953_v10 = vld [vmem:[#allocation6 + $0x150] ss:$20 sps:$4 sm:$0xff]  }
 0x4be   :  { %8112 = vmatprep.subr.bf16.mxu1 %v12892_v11  ;;  %v12954_v32 = vld [vmem:[#allocation6 + $0x3d0] ss:$20 sps:$4 sm:$0xff]  }
 0x4bf   :  { %v12955_v11 = vld [vmem:[#allocation6 + $0x10] ss:$20 sps:$4 sm:$0xff]  }
 0x4c0   :  { %7867 = vmatpush1.bf16.msra.mxu0 %v12887_v12  ;;  %v14201_v12 = vpack.c.bf16 %v4538_v5, %v4538_v5  ;;  %v13002_v5 = vld [vmem:[#allocation6 + $0x970] ss:$20 sps:$4 sm:$0xff]  }
 0x4c1   :  { %8113 = vmatpush1.bf16.msra.mxu1 %v12890_v13  ;;  %7868 = vmatprep.subr.bf16.mxu0 %v12895_v14  ;;  %v12956_v13 = vld [vmem:[#allocation6 + $0x290] ss:$20 sps:$4 sm:$0xff]   ;;  %v12957_v14 = vld [vmem:[#allocation6 + $0x178] ss:$20 sps:$4 sm:$0xff]  }
 0x4c2   :  { %8114 = vmatprep.subr.bf16.mxu1 %v12898_v37  ;;  %v12958_v37 = vld [vmem:[#allocation6 + $0x3f8] ss:$20 sps:$4 sm:$0xff]  }
 0x4c4   :  { %7869 = vmatpush1.bf16.msra.mxu0 %v12893_v16  ;;  %v12960_v16 = vld [vmem:[#allocation6 + $0x2b8] ss:$20 sps:$4 sm:$0xff]  }
 0x4c5   :  { %8115 = vmatpush1.bf16.msra.mxu1 %v12896_v17  ;;  %7870 = vmatprep.subr.bf16.mxu0 %v12901_v18  ;;  %v12961_v17 = vld [vmem:[#allocation6 + $0x1a0] ss:$20 sps:$4 sm:$0xff]  }
 0x4c6   :  { %8116 = vmatprep.subr.bf16.mxu1 %v12904_v19  ;;  %v12962_v18 = vld [vmem:[#allocation6 + $0x420] ss:$20 sps:$4 sm:$0xff]  }
 0x4c7   :  { %v12963_v19 = vld [vmem:[#allocation6 + $0x60] ss:$20 sps:$4 sm:$0xff]  }
 0x4c8   :  { %7871 = vmatpush1.bf16.msra.mxu0 %v12899_v21  ;;  %v12964_v21 = vld [vmem:[#allocation6 + $0x2e0] ss:$20 sps:$4 sm:$0xff]  }
 0x4c9   :  { %8117 = vmatpush1.bf16.msra.mxu1 %v12902_v22  ;;  %7872 = vmatprep.subr.bf16.mxu0 %v12907_v20  ;;  %v12965_v22 = vld [vmem:[#allocation6 + $0x1c8] ss:$20 sps:$4 sm:$0xff]  }
 0x4ca   :  { %8118 = vmatprep.subr.bf16.mxu1 %v12910_v23  ;;  %v12966_v20 = vld [vmem:[#allocation6 + $0x448] ss:$20 sps:$4 sm:$0xff]  }
 0x4cb   :  { %v12967_v23 = vld [vmem:[#allocation6 + $0x88] ss:$20 sps:$4 sm:$0xff]  }
 0x4cc   :  { %7873 = vmatpush1.bf16.msra.mxu0 %v12905_v24  ;;  %v12969_v24 = vld [vmem:[#allocation6 + $0x1f0] ss:$20 sps:$4 sm:$0xff]  }
 0x4cd   :  { %8119 = vmatpush1.bf16.msra.mxu1 %v12908_v36  ;;  %7874 = vmatprep.subr.bf16.mxu0 %v12913_v25  ;;  %v12970_v36 = vld [vmem:[#allocation6 + $0x470] ss:$20 sps:$4 sm:$0xff]  }
 0x4ce   :  { %8120 = vmatprep.subr.bf16.mxu1 %v12916_v26  ;;  %v12972_v25 = vld [vmem:[#allocation6 + $0x330] ss:$20 sps:$4 sm:$0xff]   ;;  %v12973_v26 = vld [vmem:[#allocation6 + $0x218] ss:$20 sps:$4 sm:$0xff]  }
 0x4d0   :  { %7875 = vmatpush1.bf16.msra.mxu0 %v12911_v27  ;;  %v12974_v27 = vld [vmem:[#allocation6 + $0x498] ss:$20 sps:$4 sm:$0xff]  }
 0x4d1   :  { %8121 = vmatpush1.bf16.msra.mxu1 %v12914_v28  ;;  %7876 = vmatprep.subr.bf16.mxu0 %v12919_v29  ;;  %v12975_v28 = vld [vmem:[#allocation6 + $0xd8] ss:$20 sps:$4 sm:$0xff]  }
 0x4d2   :  { %8122 = vmatprep.subr.bf16.mxu1 %v12922_v3  ;;  %v12976_v29 = vld [vmem:[#allocation6 + $0x358] ss:$20 sps:$4 sm:$0xff]   ;;  %v12977_v3 = vld [vmem:[#allocation6 + $0x240] ss:$20 sps:$4 sm:$0xff]  }
 0x4d4   :  { %7877 = vmatpush1.bf16.msra.mxu0 %v12917_v30  ;;  %v12978_v30 = vld [vmem:[#allocation6 + $0x4c0] ss:$20 sps:$4 sm:$0xff]  }
 0x4d5   :  { %8123 = vmatpush1.bf16.msra.mxu1 %v12920_v31  ;;  %7878 = vmatprep.subr.bf16.mxu0 %v12925_v50  ;;  %v12979_v31 = vld [vmem:[#allocation6 + $0x100] ss:$20 sps:$4 sm:$0xff]  }
 0x4d6   :  { %8124 = vmatprep.subr.bf16.mxu1 %v12928_v33  ;;  %v12980_v50 = vld [vmem:[#allocation6 + $0x380] ss:$20 sps:$4 sm:$0xff]   ;;  %v12981_v33 = vld [vmem:[#allocation6 + $0x268] ss:$20 sps:$4 sm:$0xff]  }
 0x4d8   :  { %7879 = vmatpush1.bf16.msra.mxu0 %v12923_v34  ;;  %v12982_v34 = vld [vmem:[#allocation6 + $0x4e8] ss:$20 sps:$4 sm:$0xff]  }
 0x4d9   :  { %8125 = vmatpush1.bf16.msra.mxu1 %v12926_v42  ;;  %7880 = vmatprep.subr.bf16.mxu0 %v12931_v43  ;;  %v12983_v42 = vld [vmem:[#allocation6 + $0x128] ss:$20 sps:$4 sm:$0xff]  }
 0x4da   :  { %8126 = vmatprep.subr.bf16.mxu1 %v12934_v44  ;;  %v12984_v43 = vld [vmem:[#allocation6 + $0x3a8] ss:$20 sps:$4 sm:$0xff]   ;;  %v12985_v44 = vld [vmem:[#allocation6 + $0x650] ss:$20 sps:$4 sm:$0xff]  }
 0x4dc   :  { %7881 = vmatpush1.bf16.msra.mxu0 %v12929_v45  ;;  %v12986_v45 = vld [vmem:[#allocation6 + $0x8d0] ss:$20 sps:$4 sm:$0xff]  }
 0x4dd   :  { %8127 = vmatpush1.bf16.msra.mxu1 %v12932_v47  ;;  %7882 = vmatprep.subr.bf16.mxu0 %v12937_v51  ;;  %v12987_v47 = vld [vmem:[#allocation6 + $0x510] ss:$20 sps:$4 sm:$0xff]  }
 0x4de   :  { %8128 = vmatprep.subr.bf16.mxu1 %v12940_v7  ;;  %v12988_v51 = vld [vmem:[#allocation6 + $0x790] ss:$20 sps:$4 sm:$0xff]   ;;  %v12989_v7 = vld [vmem:[#allocation6 + $0x678] ss:$20 sps:$4 sm:$0xff]  }
 0x4e0   :  { %7883 = vmatpush1.bf16.msra.mxu0 %v12935_v52  ;;  %v12990_v52 = vld [vmem:[#allocation6 + $0x8f8] ss:$20 sps:$4 sm:$0xff]  }
 0x4e1   :  { %8129 = vmatpush1.bf16.msra.mxu1 %v12938_v53  ;;  %7884 = vmatprep.subr.bf16.mxu0 %v12943_v56  ;;  %v12991_v53 = vld [vmem:[#allocation6 + $0x538] ss:$20 sps:$4 sm:$0xff]  }
 0x4e2   :  { %8130 = vmatprep.subr.bf16.mxu1 %v12946_v57  ;;  %v12992_v56 = vld [vmem:[#allocation6 + $0x7b8] ss:$20 sps:$4 sm:$0xff]   ;;  %v12993_v57 = vld [vmem:[#allocation6 + $0x6a0] ss:$20 sps:$4 sm:$0xff]  }
 0x4e4   :  { %7885 = vmatpush1.bf16.msra.mxu0 %v12941_v48  ;;  %v12994_v48 = vld [vmem:[#allocation6 + $0x920] ss:$20 sps:$4 sm:$0xff]  }
 0x4e5   :  { %8131 = vmatpush1.bf16.msra.mxu1 %v12944_v58  ;;  %7886 = vmatprep.subr.bf16.mxu0 %v12949_v59  ;;  %v12995_v58 = vld [vmem:[#allocation6 + $0x560] ss:$20 sps:$4 sm:$0xff]   ;;  %v12997_v59 = vld [vmem:[#allocation6 + $0x6c8] ss:$20 sps:$4 sm:$0xff]  }
 0x4e6   :  { %8132 = vmatprep.subr.bf16.mxu1 %v12952_v62  ;;  %v12999_v62 = vld [vmem:[#allocation6 + $0x588] ss:$20 sps:$4 sm:$0xff]  }
 0x4e8   :  { %7887 = vmatpush1.bf16.msra.mxu0 %v12947_v1  ;;  %v13001_v1 = vld [vmem:[#allocation6 + $0x6f0] ss:$20 sps:$4 sm:$0xff]  }
 0x4e9   :  { %8133 = vmatpush1.bf16.msra.mxu1 %v12950_v41  ;;  %11160 = vmatprep.subr.bf16.mxu0 %v12953_v10  ;;  %v13004_v41 = vld [vmem:[#allocation6 + $0x830] ss:$20 sps:$4 sm:$0xff]   ;;  %v13005_v10 = vld [vmem:[#allocation6 + $0x718] ss:$20 sps:$4 sm:$0xff]  }
 0x4ea   :  { %11182 = vmatprep.subr.bf16.mxu1 %v12954_v32  ;;  %v13006_v32 = vld [vmem:[#allocation6 + $0x998] ss:$20 sps:$4 sm:$0xff]  }
 0x4eb   :  { %7889 = vmatmul.mubr.bf16.vlgmr.msra.gmra.mrb[12].mxu0 %v14201_v12 }
 0x4ec   :  { %8135 = vmatmul.mubr.bf16.vlgmr.msra.gmra.mrb[12].mxu1 %v14201_v12  ;;  %11161 = vmatpush3.bf16.msra.mxu0 %v12955_v11  ;;  %v13007_v11 = vld [vmem:[#allocation6 + $0x5d8] ss:$20 sps:$4 sm:$0xff]  }
 0x4ed   :  { %8175 = vmatprep.mubr.bf16.mxu0 %v14091_v2  ;;  %11183 = vmatpush3.bf16.msra.mxu1 %v12956_v13  ;;  %v12968_v2 = vld [vmem:[#allocation6 + $0x308] ss:$20 sps:$4 sm:$0xff]   ;;  %v13008_v13 = vld [vmem:[#allocation6 + $0x858] ss:$20 sps:$4 sm:$0xff]  }
 0x4ee   :  { %8215 = vmatprep.mubr.bf16.mxu1 %v14119_v38  ;;  %11162 = vmatprep.subr.bf16.mxu0 %v12957_v14  ;;  %v12971_v38 = vld [vmem:[#allocation6 + $0xb0] ss:$20 sps:$4 sm:$0xff]   ;;  %v13009_v14 = vld [vmem:[#allocation6 + $0x740] ss:$20 sps:$4 sm:$0xff]  }
 0x4ef   :  { %11184 = vmatprep.subr.bf16.mxu1 %v12958_v37  ;;  %v13010_v37 = vld [vmem:[#allocation6 + $0x9c0] ss:$20 sps:$4 sm:$0xff]  }
 0x4f0   :  { %11163 = vmatpush3.bf16.msra.mxu0 %v12959_v63  ;;  %v13011_v63 = vld [vmem:[#allocation6 + $0x600] ss:$20 sps:$4 sm:$0xff]  }
 0x4f1   :  { %11185 = vmatpush3.bf16.msra.mxu1 %v12960_v16  ;;  %11164 = vmatprep.subr.bf16.mxu0 %v12961_v17  ;;  %v13012_v16 = vld [vmem:[#allocation6 + $0x880] ss:$20 sps:$4 sm:$0xff]   ;;  %v13013_v17 = vld [vmem:[#allocation6 + $0x768] ss:$20 sps:$4 sm:$0xff]  }
 0x4f2   :  { %11186 = vmatprep.subr.bf16.mxu1 %v12962_v18  ;;  %v13014_v18 = vld [vmem:[#allocation6 + $0x9e8] ss:$20 sps:$4 sm:$0xff]  }
 0x4f4   :  { %11165 = vmatpush3.bf16.msra.mxu0 %v12963_v19  ;;  %v13015_v19 = vld [vmem:[#allocation6 + $0x628] ss:$20 sps:$4 sm:$0xff]  }
 0x4f5   :  { %11187 = vmatpush3.bf16.msra.mxu1 %v12964_v21  ;;  %11166 = vmatprep.subr.bf16.mxu0 %v12965_v22  ;;  %v13016_v21 = vld [vmem:[#allocation6 + $0x8a8] ss:$20 sps:$4 sm:$0xff]   ;;  %v13017_v22 = vld [vmem:[#allocation6 + $0xb50] ss:$20 sps:$4 sm:$0xff]  }
 0x4f6   :  { %11188 = vmatprep.subr.bf16.mxu1 %v12966_v20  ;;  %v13018_v20 = vld [vmem:[#allocation6 + $0xdd0] ss:$20 sps:$4 sm:$0xff]  }
 0x4f8   :  { %11167 = vmatpush3.bf16.msra.mxu0 %v12967_v23  ;;  %v13019_v23 = vld [vmem:[#allocation6 + $0xa10] ss:$20 sps:$4 sm:$0xff]  }
 0x4f9   :  { %11189 = vmatpush3.bf16.msra.mxu1 %v12968_v2  ;;  %11168 = vmatprep.subr.bf16.mxu0 %v12969_v24  ;;  %v13020_v2 = vld [vmem:[#allocation6 + $0xc90] ss:$20 sps:$4 sm:$0xff]   ;;  %v13021_v24 = vld [vmem:[#allocation6 + $0xb78] ss:$20 sps:$4 sm:$0xff]  }
 0x4fa   :  { %11190 = vmatprep.subr.bf16.mxu1 %v12970_v36  ;;  %v13022_v36 = vld [vmem:[#allocation6 + $0xdf8] ss:$20 sps:$4 sm:$0xff]  }
 0x4fc   :  { %11169 = vmatpush3.bf16.msra.mxu0 %v12971_v38  ;;  %v13023_v38 = vld [vmem:[#allocation6 + $0xa38] ss:$20 sps:$4 sm:$0xff]  }
 0x4fd   :  { %11191 = vmatpush3.bf16.msra.mxu1 %v12972_v25  ;;  %11170 = vmatprep.subr.bf16.mxu0 %v12973_v26  ;;  %v13024_v25 = vld [vmem:[#allocation6 + $0xcb8] ss:$20 sps:$4 sm:$0xff]   ;;  %v13025_v26 = vld [vmem:[#allocation6 + $0xba0] ss:$20 sps:$4 sm:$0xff]  }
 0x4fe   :  { %11192 = vmatprep.subr.bf16.mxu1 %v12974_v27  ;;  %v13026_v27 = vld [vmem:[#allocation6 + $0xe20] ss:$20 sps:$4 sm:$0xff]  }
 0x500   :  { %11171 = vmatpush3.bf16.msra.mxu0 %v12975_v28  ;;  %v13027_v28 = vld [vmem:[#allocation6 + $0xa60] ss:$20 sps:$4 sm:$0xff]  }
 0x501   :  { %11193 = vmatpush3.bf16.msra.mxu1 %v12976_v29  ;;  %11172 = vmatprep.subr.bf16.mxu0 %v12977_v3  ;;  %v13029_v29 = vld [vmem:[#allocation6 + $0xbc8] ss:$20 sps:$4 sm:$0xff]  }
 0x502   :  { %11194 = vmatprep.subr.bf16.mxu1 %v12978_v30  ;;  %v13031_v3 = vld [vmem:[#allocation6 + $0xa88] ss:$20 sps:$4 sm:$0xff]   ;;  %v13033_v30 = vld [vmem:[#allocation6 + $0xbf0] ss:$20 sps:$4 sm:$0xff]  }
 0x504   :  { %11173 = vmatpush3.bf16.msra.mxu0 %v12979_v31  ;;  %v13034_v31 = vld [vmem:[#allocation6 + $0xe70] ss:$20 sps:$4 sm:$0xff]  }
 0x505   :  { %11195 = vmatpush3.bf16.msra.mxu1 %v12980_v50  ;;  %11174 = vmatprep.subr.bf16.mxu0 %v12981_v33  ;;  %v13036_v50 = vld [vmem:[#allocation6 + $0xd30] ss:$20 sps:$4 sm:$0xff]   ;;  %v13037_v33 = vld [vmem:[#allocation6 + $0xc18] ss:$20 sps:$4 sm:$0xff]  }
 0x506   :  { %11196 = vmatprep.subr.bf16.mxu1 %v12982_v34  ;;  %v13038_v34 = vld [vmem:[#allocation6 + $0xe98] ss:$20 sps:$4 sm:$0xff]  }
 0x508   :  { %11175 = vmatpush3.bf16.msra.mxu0 %v12983_v42  ;;  %v13039_v42 = vld [vmem:[#allocation6 + $0xad8] ss:$20 sps:$4 sm:$0xff]  }
 0x509   :  { %11197 = vmatpush3.bf16.msra.mxu1 %v12984_v43  ;;  %11204 = vmatprep.subr.bf16.mxu0 %v12985_v44  ;;  %v13040_v43 = vld [vmem:[#allocation6 + $0xd58] ss:$20 sps:$4 sm:$0xff]   ;;  %v13041_v44 = vld [vmem:[#allocation6 + $0xc40] ss:$20 sps:$4 sm:$0xff]  }
 0x50a   :  { %11226 = vmatprep.subr.bf16.mxu1 %v12986_v45  ;;  %v13042_v45 = vld [vmem:[#allocation6 + $0xec0] ss:$20 sps:$4 sm:$0xff]  }
 0x50b   :  { %8176 = vmatmul.mubr.bf16.vlgmr.msra.gmra.mrb[16].mxu0 %v14117_v35  ;;  %v12996_v35 = vld [vmem:[#allocation6 + $0x7e0] ss:$20 sps:$4 sm:$0xff]  }
 0x50c   :  { %8216 = vmatmul.mubr.bf16.vlgmr.msra.gmra.mrb[16].mxu1 %v14136_v4  ;;  %11205 = vmatpush3.bf16.msra.mxu0 %v12987_v47  ;;  %v12998_v4 = vld [vmem:[#allocation6 + $0x948] ss:$20 sps:$4 sm:$0xff]   ;;  %v13043_v47 = vld [vmem:[#allocation6 + $0xb00] ss:$20 sps:$4 sm:$0xff]  }
 0x50d   :  { %8255 = vmatprep.mubr.bf16.mxu0 %v14138_v6  ;;  %11227 = vmatpush3.bf16.msra.mxu1 %v12988_v51  ;;  %v13000_v6 = vld [vmem:[#allocation6 + $0x808] ss:$20 sps:$4 sm:$0xff]   ;;  %v13044_v51 = vld [vmem:[#allocation6 + $0xd80] ss:$20 sps:$4 sm:$0xff]  }
 0x50e   :  { %8295 = vmatprep.mubr.bf16.mxu1 %v14154_v40  ;;  %11206 = vmatprep.subr.bf16.mxu0 %v12989_v7  ;;  %v13003_v40 = vld [vmem:[#allocation6 + $0x5b0] ss:$20 sps:$4 sm:$0xff]   ;;  %v13045_v7 = vld [vmem:[#allocation6 + $0xc68] ss:$20 sps:$4 sm:$0xff]  }
 0x50f   :  { %11228 = vmatprep.subr.bf16.mxu1 %v12990_v52  ;;  %v13046_v52 = vld [vmem:[#allocation6 + $0xee8] ss:$20 sps:$4 sm:$0xff]  }
 0x510   :  { %11207 = vmatpush3.bf16.msra.mxu0 %v12991_v53  ;;  %v13047_v53 = vld [vmem:[#allocation6 + $0xb28] ss:$20 sps:$4 sm:$0xff]  }
 0x511   :  { %11229 = vmatpush3.bf16.msra.mxu1 %v12992_v56  ;;  %11208 = vmatprep.subr.bf16.mxu0 %v12993_v57  ;;  %v13048_v56 = vld [vmem:[#allocation6 + $0xda8] ss:$20 sps:$4 sm:$0xff]  }
 0x512   :  { %11230 = vmatprep.subr.bf16.mxu1 %v12994_v48  ;;  %v13051_v57 = vld [vmem:[#allocation9 + $0x4] ss:$8 sps:$4 sm:$0xff]   ;;  %v13049_v48 = vld [vmem:[#allocation9] ss:$8 sps:$4 sm:$0xff]  }
 0x514   :  { %11209 = vmatpush3.bf16.msra.mxu0 %v12995_v58  ;;  %v13054_v58 = vld [vmem:[#allocation9 + $0x14] ss:$8 sps:$4 sm:$0xff]  }
 0x515   :  { %11231 = vmatpush3.bf16.msra.mxu1 %v12996_v35  ;;  %11210 = vmatprep.subr.bf16.mxu0 %v12997_v59  ;;  %v13052_v35 = vld [vmem:[#allocation9 + $0x10] ss:$8 sps:$4 sm:$0xff]   ;;  %v13057_v59 = vld [vmem:[#allocation9 + $0x24] ss:$8 sps:$4 sm:$0xff]  }
 0x516   :  { %11232 = vmatprep.subr.bf16.mxu1 %v12998_v4  ;;  %v13055_v4 = vld [vmem:[#allocation9 + $0x20] ss:$8 sps:$4 sm:$0xff]  }
 0x518   :  { %11211 = vmatpush3.bf16.msra.mxu0 %v12999_v62  ;;  %v13060_v62 = vld [vmem:[#allocation9 + $0x34] ss:$8 sps:$4 sm:$0xff]  }
 0x519   :  { %11233 = vmatpush3.bf16.msra.mxu1 %v13000_v6  ;;  %11212 = vmatprep.subr.bf16.mxu0 %v13001_v1  ;;  %v13058_v6 = vld [vmem:[#allocation9 + $0x30] ss:$8 sps:$4 sm:$0xff]   ;;  %v13063_v1 = vld [vmem:[#allocation9 + $0x44] ss:$8 sps:$4 sm:$0xff]  }
 0x51a   :  { %11234 = vmatprep.subr.bf16.mxu1 %v13002_v5  ;;  %v13061_v5 = vld [vmem:[#allocation9 + $0x40] ss:$8 sps:$4 sm:$0xff]  }
 0x51c   :  { %11213 = vmatpush3.bf16.msra.mxu0 %v13003_v40  ;;  %v13066_v40 = vld [vmem:[#allocation9 + $0x54] ss:$8 sps:$4 sm:$0xff]  }
 0x51d   :  { %11235 = vmatpush3.bf16.msra.mxu1 %v13004_v41  ;;  %11214 = vmatprep.subr.bf16.mxu0 %v13005_v10  ;;  %v13067_v41 = vld [vmem:[#allocation9 + $0x60] ss:$8 sps:$4 sm:$0xff]   ;;  %v13072_v10 = vld [vmem:[#allocation9 + $0x74] ss:$8 sps:$4 sm:$0xff]  }
 0x51e   :  { %11236 = vmatprep.subr.bf16.mxu1 %v13006_v32  ;;  %v13070_v32 = vld [vmem:[#allocation9 + $0x70] ss:$8 sps:$4 sm:$0xff]  }
 0x520   :  { %11215 = vmatpush3.bf16.msra.mxu0 %v13007_v11  ;;  %v13075_v11 = vld [vmem:[#allocation9 + $0x84] ss:$8 sps:$4 sm:$0xff]  }
 0x521   :  { %11237 = vmatpush3.bf16.msra.mxu1 %v13008_v13  ;;  %11216 = vmatprep.subr.bf16.mxu0 %v13009_v14  ;;  %v13073_v13 = vld [vmem:[#allocation9 + $0x80] ss:$8 sps:$4 sm:$0xff]   ;;  %v13078_v14 = vld [vmem:[#allocation9 + $0x94] ss:$8 sps:$4 sm:$0xff]  }
 0x522   :  { %11238 = vmatprep.subr.bf16.mxu1 %v13010_v37  ;;  %v13076_v37 = vld [vmem:[#allocation9 + $0x90] ss:$8 sps:$4 sm:$0xff]  }
 0x524   :  { %11217 = vmatpush3.bf16.msra.mxu0 %v13011_v63  ;;  %v13081_v63 = vld [vmem:[#allocation9 + $0xa4] ss:$8 sps:$4 sm:$0xff]  }
 0x525   :  { %11239 = vmatpush3.bf16.msra.mxu1 %v13012_v16  ;;  %11218 = vmatprep.subr.bf16.mxu0 %v13013_v17  ;;  %v13079_v16 = vld [vmem:[#allocation9 + $0xa0] ss:$8 sps:$4 sm:$0xff]   ;;  %v13084_v17 = vld [vmem:[#allocation9 + $0xb4] ss:$8 sps:$4 sm:$0xff]  }
 0x526   :  { %11240 = vmatprep.subr.bf16.mxu1 %v13014_v18  ;;  %v13082_v18 = vld [vmem:[#allocation9 + $0xb0] ss:$8 sps:$4 sm:$0xff]  }
 0x528   :  { %11219 = vmatpush3.bf16.msra.mxu0 %v13015_v19  ;;  %v13087_v19 = vld [vmem:[#allocation9 + $0xc4] ss:$8 sps:$4 sm:$0xff]  }
 0x529   :  { %11241 = vmatpush3.bf16.msra.mxu1 %v13016_v21  ;;  %11248 = vmatprep.subr.bf16.mxu0 %v13017_v22  ;;  %v13085_v21 = vld [vmem:[#allocation9 + $0xc0] ss:$8 sps:$4 sm:$0xff]   ;;  %v13090_v22 = vld [vmem:[#allocation9 + $0xd4] ss:$8 sps:$4 sm:$0xff]  }
 0x52a   :  { %11270 = vmatprep.subr.bf16.mxu1 %v13018_v20  ;;  %v13088_v20 = vld [vmem:[#allocation9 + $0xd0] ss:$8 sps:$4 sm:$0xff]  }
 0x52b   :  { %8256 = vmatmul.mubr.bf16.vlgmr.msra.gmra.mrb[20].mxu0 %v14152_v54  ;;  %v13028_v54 = vld [vmem:[#allocation6 + $0xce0] ss:$20 sps:$4 sm:$0xff]  }
 0x52c   :  { %8296 = vmatmul.mubr.bf16.vlgmr.msra.gmra.mrb[20].mxu1 %v14180_v15  ;;  %11249 = vmatpush3.bf16.msra.mxu0 %v13019_v23  ;;  %v13030_v15 = vld [vmem:[#allocation6 + $0xe48] ss:$20 sps:$4 sm:$0xff]  }
 0x52d   :  { %8335 = vmatprep.mubr.bf16.mxu0 %v14182_v39  ;;  %11271 = vmatpush3.bf16.msra.mxu1 %v13020_v2  ;;  %v13032_v39 = vld [vmem:[#allocation6 + $0xd08] ss:$20 sps:$4 sm:$0xff]  }
 0x52e   :  { %8375 = vmatprep.mubr.bf16.mxu1 %v14194_v46  ;;  %11250 = vmatprep.subr.bf16.mxu0 %v13021_v24  ;;  %v13035_v46 = vld [vmem:[#allocation6 + $0xab0] ss:$20 sps:$4 sm:$0xff]  }
 0x52f   :  { %11272 = vmatprep.subr.bf16.mxu1 %v13022_v36  ;;  %v13093_v23 = vld [vmem:[#allocation9 + $0xe4] ss:$8 sps:$4 sm:$0xff]   ;;  %v13091_v2 = vld [vmem:[#allocation9 + $0xe0] ss:$8 sps:$4 sm:$0xff]   ;;  %v13096_v24 = vld [vmem:[#allocation9 + $0xf4] ss:$8 sps:$4 sm:$0xff]  }
 0x530   :  { %11251 = vmatpush3.bf16.msra.mxu0 %v13023_v38  ;;  %v13094_v36 = vld [vmem:[#allocation9 + $0xf0] ss:$8 sps:$4 sm:$0xff]   ;;  %v13099_v38 = vld [vmem:[#allocation9 + $0x104] ss:$8 sps:$4 sm:$0xff]  }
 0x531   :  { %11273 = vmatpush3.bf16.msra.mxu1 %v13024_v25  ;;  %11252 = vmatprep.subr.bf16.mxu0 %v13025_v26  ;;  %v13169_v25 = vld [vmem:[#allocation12] ss:$8 sps:$4 sm:$0xff]   ;;  %v13171_v26 = vld [vmem:[#allocation12 + $0x4] ss:$8 sps:$4 sm:$0xff]  }
 0x532   :  { %11274 = vmatprep.subr.bf16.mxu1 %v13026_v27  ;;  %v13174_v27 = vld [vmem:[#allocation12 + $0x14] ss:$8 sps:$4 sm:$0xff]  }
 0x534   :  { %11253 = vmatpush3.bf16.msra.mxu0 %v13027_v28  ;;  %v13172_v28 = vld [vmem:[#allocation12 + $0x10] ss:$8 sps:$4 sm:$0xff]  }
 0x535   :  { %11275 = vmatpush3.bf16.msra.mxu1 %v13028_v54  ;;  %11254 = vmatprep.subr.bf16.mxu0 %v13029_v29  ;;  %v13177_v54 = vld [vmem:[#allocation12 + $0x24] ss:$8 sps:$4 sm:$0xff]   ;;  %v13175_v29 = vld [vmem:[#allocation12 + $0x20] ss:$8 sps:$4 sm:$0xff]  }
 0x536   :  { %11276 = vmatprep.subr.bf16.mxu1 %v13030_v15  ;;  %v13180_v15 = vld [vmem:[#allocation12 + $0x34] ss:$8 sps:$4 sm:$0xff]  }
 0x538   :  { %11255 = vmatpush3.bf16.msra.mxu0 %v13031_v3  ;;  %v13178_v3 = vld [vmem:[#allocation12 + $0x30] ss:$8 sps:$4 sm:$0xff]  }
 0x539   :  { %11277 = vmatpush3.bf16.msra.mxu1 %v13032_v39  ;;  %11256 = vmatprep.subr.bf16.mxu0 %v13033_v30  ;;  %v13183_v39 = vld [vmem:[#allocation12 + $0x44] ss:$8 sps:$4 sm:$0xff]   ;;  %v14217_v30 = vld [vmem:[#allocation7] sm:$0x1f] }
 0x53a   :  { %11278 = vmatprep.subr.bf16.mxu1 %v13034_v31  ;;  %v13181_v31 = vld [vmem:[#allocation12 + $0x40] ss:$8 sps:$4 sm:$0xff]  }
 0x53c   :  { %11257 = vmatpush3.bf16.msra.mxu0 %v13035_v46  ;;  %v13186_v46 = vld [vmem:[#allocation12 + $0x54] ss:$8 sps:$4 sm:$0xff]  }
 0x53d   :  { %11279 = vmatpush3.bf16.msra.mxu1 %v13036_v50  ;;  %11258 = vmatprep.subr.bf16.mxu0 %v13037_v33  ;;  %v5133_v50 = vrot.slane %v14217_v30, %v14106_v8  ;;  %v5137_v33 = vrot.slane %v14217_v30, %v14086_v55 }
 0x53e   :  { %11280 = vmatprep.subr.bf16.mxu1 %v13038_v34  ;;  %v5145_v34 = vrot.slane %v14217_v30, %v14109_v9 }
 0x540   :  { %11259 = vmatpush3.bf16.msra.mxu0 %v13039_v42  ;;  %v13184_v42 = vld [vmem:[#allocation12 + $0x50] ss:$8 sps:$4 sm:$0xff]  }
 0x541   :  { %11281 = vmatpush3.bf16.msra.mxu1 %v13040_v43  ;;  %11260 = vmatprep.subr.bf16.mxu0 %v13041_v44  ;;  %v13189_v44 = vld [vmem:[#allocation12 + $0x64] ss:$8 sps:$4 sm:$0xff]  }
 0x542   :  { %11282 = vmatprep.subr.bf16.mxu1 %v13042_v45 }
 0x544   :  { %11261 = vmatpush3.bf16.msra.mxu0 %v13043_v47 }
 0x545   :  { %11283 = vmatpush3.bf16.msra.mxu1 %v13044_v51  ;;  %11262 = vmatprep.subr.bf16.mxu0 %v13045_v7 }
 0x546   :  { %11284 = vmatprep.subr.bf16.mxu1 %v13046_v52 }
 0x548   :  { %11263 = vmatpush3.bf16.msra.mxu0 %v13047_v53 }
 0x549   :  { %11285 = vmatpush3.bf16.msra.mxu1 %v13048_v56  ;;  %8885 = vmatprep.subr.bf16.mxu0 %v13051_v57 }
 0x54a   :  { %9216 = vmatprep.subr.bf16.mxu1 %v13171_v26  ;;  %v13115_v26 = vld [vmem:[#allocation9 + $0x160] ss:$8 sps:$4 sm:$0xff]  }
 0x54b   :  { %8336 = vmatmul.mubr.bf16.vlgmr.msra.gmra.mrb[24].mxu0 %v14192_v60  ;;  %v13064_v60 = vld [vmem:[#allocation9 + $0x50] ss:$8 sps:$4 sm:$0xff]  }
 0x54c   :  { %8376 = vmatmul.mubr.bf16.vlgmr.msra.gmra.mrb[24].mxu1 %v14201_v12  ;;  %8886 = vmatpush1.bf16.msra.mxu0 %v13049_v48  ;;  %v13069_v12 = vld [vmem:[#allocation9 + $0x64] ss:$8 sps:$4 sm:$0xff]  }
 0x54d   :  { %8887 = vmatprep.subr.bf16.mxu0 %v13054_v58  ;;  %9217 = vmatpush1.bf16.msra.mxu1 %v13169_v25  ;;  %v13210_v25 = vld [vmem:[#allocation12 + $0xd4] ss:$8 sps:$4 sm:$0xff]  }
 0x54e   :  { %9218 = vmatprep.subr.bf16.mxu1 %v13174_v27  ;;  %v13120_v27 = vld [vmem:[#allocation9 + $0x174] ss:$8 sps:$4 sm:$0xff]  }
 0x550   :  { %8888 = vmatpush1.bf16.msra.mxu0 %v13052_v35  ;;  %v13187_v35 = vld [vmem:[#allocation12 + $0x60] ss:$8 sps:$4 sm:$0xff]  }
 0x551   :  { %8889 = vmatprep.subr.bf16.mxu0 %v13057_v59  ;;  %9219 = vmatpush1.bf16.msra.mxu1 %v13172_v28  ;;  %v13208_v28 = vld [vmem:[#allocation12 + $0xd0] ss:$8 sps:$4 sm:$0xff]  }
 0x552   :  { %9220 = vmatprep.subr.bf16.mxu1 %v13177_v54 }
 0x554   :  { %8890 = vmatpush1.bf16.msra.mxu0 %v13055_v4  ;;  %v13192_v4 = vld [vmem:[#allocation12 + $0x74] ss:$8 sps:$4 sm:$0xff]  }
 0x555   :  { %8891 = vmatprep.subr.bf16.mxu0 %v13060_v62  ;;  %9221 = vmatpush1.bf16.msra.mxu1 %v13175_v29  ;;  %v5149_v29 = vrot.slane %v14217_v30, %v868_v61  ;;  %v13126_v61 = vld [vmem:[#allocation9 + $0x194] ss:$8 sps:$4 sm:$0xff]  }
 0x556   :  { %9222 = vmatprep.subr.bf16.mxu1 %v13180_v15 }
 0x558   :  { %8892 = vmatpush1.bf16.msra.mxu0 %v13058_v6 }
 0x559   :  { %8893 = vmatprep.subr.bf16.mxu0 %v13063_v1  ;;  %9223 = vmatpush1.bf16.msra.mxu1 %v13178_v3  ;;  %v13097_v1 = vld [vmem:[#allocation9 + $0x100] ss:$8 sps:$4 sm:$0xff]  }
 0x55a   :  { %9224 = vmatprep.subr.bf16.mxu1 %v13183_v39 }
 0x55c   :  { %8894 = vmatpush1.bf16.msra.mxu0 %v13061_v5 }
 0x55d   :  { %8895 = vmatprep.subr.bf16.mxu0 %v13066_v40  ;;  %9225 = vmatpush1.bf16.msra.mxu1 %v13181_v31  ;;  %v13102_v40 = vld [vmem:[#allocation9 + $0x114] ss:$8 sps:$4 sm:$0xff]  }
 0x55e   :  { %9226 = vmatprep.subr.bf16.mxu1 %v13186_v46 }
 0x560   :  { %8896 = vmatpush1.bf16.msra.mxu0 %v13064_v60  ;;  %v13190_v60 = vld [vmem:[#allocation12 + $0x70] ss:$8 sps:$4 sm:$0xff]  }
 0x561   :  { %8897 = vmatprep.subr.bf16.mxu0 %v13069_v12  ;;  %9227 = vmatpush1.bf16.msra.mxu1 %v13184_v42 }
 0x562   :  { %9228 = vmatprep.subr.bf16.mxu1 %v13189_v44 }
 0x564   :  { %8898 = vmatpush1.bf16.msra.mxu0 %v13067_v41  ;;  %v13195_v41 = vld [vmem:[#allocation12 + $0x84] ss:$8 sps:$4 sm:$0xff]  }
 0x565   :  { %8899 = vmatprep.subr.bf16.mxu0 %v13072_v10  ;;  %9229 = vmatpush1.bf16.msra.mxu1 %v13187_v35  ;;  %v13100_v10 = vld [vmem:[#allocation9 + $0x110] ss:$8 sps:$4 sm:$0xff]   ;;  %v13138_v35 = vld [vmem:[#allocation9 + $0x1d4] ss:$8 sps:$4 sm:$0xff]  }
 0x566   :  { %9230 = vmatprep.subr.bf16.mxu1 %v13192_v4  ;;  %v13141_v4 = vld [vmem:[#allocation9 + $0x1e4] ss:$8 sps:$4 sm:$0xff]  }
 0x568   :  { %8900 = vmatpush1.bf16.msra.mxu0 %v13070_v32  ;;  %v13105_v32 = vld [vmem:[#allocation9 + $0x124] ss:$8 sps:$4 sm:$0xff]  }
 0x569   :  { %8901 = vmatprep.subr.bf16.mxu0 %v13075_v11  ;;  %9231 = vmatpush1.bf16.msra.mxu1 %v13190_v60  ;;  %v13193_v11 = vld [vmem:[#allocation12 + $0x80] ss:$8 sps:$4 sm:$0xff]  }
 0x56a   :  { %9232 = vmatprep.subr.bf16.mxu1 %v13195_v41 }
 0x56c   :  { %8902 = vmatpush1.bf16.msra.mxu0 %v13073_v13  ;;  %v13198_v13 = vld [vmem:[#allocation12 + $0x94] ss:$8 sps:$4 sm:$0xff]  }
 0x56d   :  { %8903 = vmatprep.subr.bf16.mxu0 %v13078_v14  ;;  %v13103_v14 = vld [vmem:[#allocation9 + $0x120] ss:$8 sps:$4 sm:$0xff]   ;;  %9233 = vmatpush1.bf16.msra.mxu1 %v13193_v11 }
 0x56e   :  { %9234 = vmatprep.subr.bf16.mxu1 %v13198_v13 }
 0x570   :  { %8904 = vmatpush1.bf16.msra.mxu0 %v13076_v37  ;;  %v13108_v37 = vld [vmem:[#allocation9 + $0x134] ss:$8 sps:$4 sm:$0xff]  }
 0x571   :  { %8905 = vmatprep.subr.bf16.mxu0 %v13081_v63  ;;  %v13196_v63 = vld [vmem:[#allocation12 + $0x90] ss:$8 sps:$4 sm:$0xff]  }
 0x572   :  { %9235 = vmatpush1.bf16.msra.mxu1 %v13196_v63 }
 0x574   :  { %8906 = vmatpush1.bf16.msra.mxu0 %v13079_v16  ;;  %v13201_v16 = vld [vmem:[#allocation12 + $0xa4] ss:$8 sps:$4 sm:$0xff]  }
 0x575   :  { %8907 = vmatprep.subr.bf16.mxu0 %v13084_v17  ;;  %v13106_v17 = vld [vmem:[#allocation9 + $0x130] ss:$8 sps:$4 sm:$0xff]   ;;  %9236 = vmatprep.subr.bf16.mxu1 %v13201_v16 }
 0x578   :  { %8908 = vmatpush1.bf16.msra.mxu0 %v13082_v18  ;;  %v13111_v18 = vld [vmem:[#allocation9 + $0x144] ss:$8 sps:$4 sm:$0xff]  }
 0x579   :  { %8909 = vmatprep.subr.bf16.mxu0 %v13087_v19  ;;  %v13199_v19 = vld [vmem:[#allocation12 + $0xa0] ss:$8 sps:$4 sm:$0xff]  }
 0x57a   :  { %9237 = vmatpush1.bf16.msra.mxu1 %v13199_v19  ;;  %v13148_v19 = vld [vmem:[#allocation9 + $0x210] ss:$8 sps:$4 sm:$0xff]  }
 0x57c   :  { %8910 = vmatpush1.bf16.msra.mxu0 %v13085_v21  ;;  %v13204_v21 = vld [vmem:[#allocation12 + $0xb4] ss:$8 sps:$4 sm:$0xff]  }
 0x57d   :  { %8911 = vmatprep.subr.bf16.mxu0 %v13090_v22  ;;  %v13109_v22 = vld [vmem:[#allocation9 + $0x140] ss:$8 sps:$4 sm:$0xff]   ;;  %9238 = vmatprep.subr.bf16.mxu1 %v13204_v21  ;;  %v13692_v21 = vmov 0  }
 0x580   :  { %8912 = vmatpush1.bf16.msra.mxu0 %v13088_v20  ;;  %v13114_v20 = vld [vmem:[#allocation9 + $0x154] ss:$8 sps:$4 sm:$0xff]  }
 0x581   :  { %8913 = vmatprep.subr.bf16.mxu0 %v13093_v23  ;;  %v13202_v23 = vld [vmem:[#allocation12 + $0xb0] ss:$8 sps:$4 sm:$0xff]  }
 0x582   :  { %9239 = vmatpush1.bf16.msra.mxu1 %v13202_v23  ;;  %v13156_v23 = vld [vmem:[#allocation9 + $0x234] ss:$8 sps:$4 sm:$0xff]  }
 0x584   :  { %8914 = vmatpush1.bf16.msra.mxu0 %v13091_v2  ;;  %v13207_v2 = vld [vmem:[#allocation12 + $0xc4] ss:$8 sps:$4 sm:$0xff]  }
 0x585   :  { %8915 = vmatprep.subr.bf16.mxu0 %v13096_v24  ;;  %v13112_v24 = vld [vmem:[#allocation9 + $0x150] ss:$8 sps:$4 sm:$0xff]   ;;  %9240 = vmatprep.subr.bf16.mxu1 %v13207_v2 }
 0x586   :  { %v13154_v2 = vld [vmem:[#allocation9 + $0x230] ss:$8 sps:$4 sm:$0xff]  }
 0x588   :  { %8916 = vmatpush1.bf16.msra.mxu0 %v13094_v36  ;;  %v13117_v36 = vld [vmem:[#allocation9 + $0x164] ss:$8 sps:$4 sm:$0xff]  }
 0x589   :  { %8926 = vmatprep.subr.bf16.mxu0 %v13099_v38  ;;  %v13205_v38 = vld [vmem:[#allocation12 + $0xc0] ss:$8 sps:$4 sm:$0xff]  }
 0x58a   :  { %9241 = vmatpush1.bf16.msra.mxu1 %v13205_v38  ;;  %v13162_v38 = vld [vmem:[#allocation9 + $0x254] ss:$8 sps:$4 sm:$0xff]  }
 0x58b   :  { %9242 = vmatprep.subr.bf16.mxu1 %v13210_v25  ;;  %v13160_v25 = vld [vmem:[#allocation9 + $0x250] ss:$8 sps:$4 sm:$0xff]  }
 0x58e   :  { %9243 = vmatpush1.bf16.msra.mxu1 %v13208_v28  ;;  %v13168_v28 = vld [vmem:[#allocation9 + $0x274] ss:$8 sps:$4 sm:$0xff]  }
 0x5be   :  { %v7890_v43 = vpop.f32.mrb[12].mxu0 }
 0x5bf   :  { %v11384_v45 = vadd.f32 %v7890_v43, %v5133_v50  ;;  %v14225_v47 = vpop.f32.mrb[12].mxu1  ;;  %v7892_v51 = vpop.f32.mrb[13].mxu0  ;;  %v13118_v50 = vld [vmem:[#allocation9 + $0x170] ss:$8 sps:$4 sm:$0xff]   ;;  %v13123_v43 = vld [vmem:[#allocation9 + $0x184] ss:$8 sps:$4 sm:$0xff]  }
 0x5c0   :  { %v11385_v7 = vadd.f32 %v7892_v51, %v5137_v33  ;;  %v8138_v52 = vpop.f32.mrb[13].mxu1  ;;  %v7894_v53 = vpop.f32.mrb[14].mxu0 }
 0x5c1   :  { %v8383_v56 = vmax.f32 %v11384_v45, 0.0  ;;  %v11387_v57 = vadd.f32 %v8138_v52, %v5145_v34  ;;  %v8140_v48 = vpop.f32.mrb[14].mxu1  ;;  %v7895_v58 = vpop.f32.mrb[15].mxu0  ;;  %v13129_v52 = vld [vmem:[#allocation9 + $0x1a4] ss:$8 sps:$4 sm:$0xff]  }
 0x5c2   :  { %v8384_v59 = vmax.f32 %v11385_v7, 0.0  ;;  %v8141_v9 = vpop.f32.mrb[15].mxu1  ;;  %v13124_v7 = vld [vmem:[#allocation9 + $0x190] ss:$8 sps:$4 sm:$0xff]   ;;  %v13127_v53 = vld [vmem:[#allocation9 + $0x1a0] ss:$8 sps:$4 sm:$0xff]  }
 0x5c3   :  { %v8386_v62 = vmax.f32 %v11387_v57, 0.0  ;;  %v8388_v5 = vpack.c.bf16 %v8383_v56, %v8383_v56  ;;  %v13132_v56 = vld [vmem:[#allocation9 + $0x1b4] ss:$8 sps:$4 sm:$0xff]   ;;  %v13130_v57 = vld [vmem:[#allocation9 + $0x1b0] ss:$8 sps:$4 sm:$0xff]   ;;  %v5141_v9 = vrot.slane %v14217_v30, %v14126_v0 }
 0x5c4   :  { %v8389_v6 = vpack.c.bf16 %v8384_v59, %v8384_v59  ;;  %v13135_v48 = vld [vmem:[#allocation9 + $0x1c4] ss:$8 sps:$4 sm:$0xff]   ;;  %v13133_v58 = vld [vmem:[#allocation9 + $0x1c0] ss:$8 sps:$4 sm:$0xff]   ;;  %v13136_v59 = vld [vmem:[#allocation9 + $0x1d0] ss:$8 sps:$4 sm:$0xff]  }
 0x5c5   :  { %v8391_v12 = vpack.c.bf16 %v8386_v62, %v8386_v62  ;;  %v13139_v62 = vld [vmem:[#allocation9 + $0x1e0] ss:$8 sps:$4 sm:$0xff]   ;;  %v13147_v30 = vld [vmem:[#allocation9 + $0x204] ss:$8 sps:$4 sm:$0xff]  }
 0x5c6   :  { %8917 = vmatprep.mubr.bf16.mxu0 %v8389_v6  ;;  %v11386_v6 = vadd.f32 %v14225_v47, %v5141_v9  ;;  %v13145_v47 = vld [vmem:[#allocation9 + $0x200] ss:$8 sps:$4 sm:$0xff]  }
 0x5c7   :  { %8918 = vmatmul.mubr.bf16.vlgmr.msra.gmra.mrb[28].mxu0 %v8388_v5 }
 0x5c8   :  { %8927 = vmatpush1.bf16.msra.mxu0 %v13097_v1  ;;  %8958 = vmatprep.mubr.bf16.mxu0 %v8391_v12  ;;  %v13144_v1 = vld [vmem:[#allocation9 + $0x1f4] ss:$8 sps:$4 sm:$0xff]   ;;  %v8385_v11 = vmax.f32 %v11386_v6, 0.0 }
 0x5c9   :  { %8928 = vmatprep.subr.bf16.mxu0 %v13102_v40 }
 0x5cc   :  { %8929 = vmatpush1.bf16.msra.mxu0 %v13100_v10 }
 0x5cd   :  { %8930 = vmatprep.subr.bf16.mxu0 %v13105_v32  ;;  %v13142_v32 = vld [vmem:[#allocation9 + $0x1f0] ss:$8 sps:$4 sm:$0xff]  }
 0x5d0   :  { %8931 = vmatpush1.bf16.msra.mxu0 %v13103_v14 }
 0x5d1   :  { %8932 = vmatprep.subr.bf16.mxu0 %v13108_v37 }
 0x5d4   :  { %8933 = vmatpush1.bf16.msra.mxu0 %v13106_v17  ;;  %v8390_v17 = vpack.c.bf16 %v8385_v11, %v8385_v11  ;;  %v13228_v11 = vld [vmem:[#allocation15 + $0x34] ss:$8 sps:$4 sm:$0xff]  }
 0x5d5   :  { %8934 = vmatprep.subr.bf16.mxu0 %v13111_v18  ;;  %v13150_v18 = vld [vmem:[#allocation9 + $0x214] ss:$8 sps:$4 sm:$0xff]  }
 0x5d8   :  { %8935 = vmatpush1.bf16.msra.mxu0 %v13109_v22  ;;  %v13153_v22 = vld [vmem:[#allocation9 + $0x224] ss:$8 sps:$4 sm:$0xff]  }
 0x5d9   :  { %8936 = vmatprep.subr.bf16.mxu0 %v13114_v20  ;;  %v13151_v20 = vld [vmem:[#allocation9 + $0x220] ss:$8 sps:$4 sm:$0xff]  }
 0x5dc   :  { %8937 = vmatpush1.bf16.msra.mxu0 %v13112_v24  ;;  %v13159_v24 = vld [vmem:[#allocation9 + $0x244] ss:$8 sps:$4 sm:$0xff]  }
 0x5dd   :  { %8938 = vmatprep.subr.bf16.mxu0 %v13117_v36  ;;  %v13157_v36 = vld [vmem:[#allocation9 + $0x240] ss:$8 sps:$4 sm:$0xff]  }
 0x5de   :  { %v11176_v54 = vpop.f32.mrb[16].mxu0 }
 0x5df   :  { %v11198_v15 = vpop.f32.mrb[16].mxu1  ;;  %v11177_v3 = vpop.f32.mrb[17].mxu0 }
 0x5e0   :  { %v11178_v39 = vadd.f32 %v11177_v3, %v11176_v54  ;;  %v11199_v31 = vpop.f32.mrb[17].mxu1  ;;  %8939 = vmatpush1.bf16.msra.mxu0 %v13115_v26  ;;  %v11179_v46 = vpop.f32.mrb[18].mxu0  ;;  %v13165_v26 = vld [vmem:[#allocation9 + $0x264] ss:$8 sps:$4 sm:$0xff]  }
 0x5e1   :  { %v11200_v33 = vadd.f32 %v11199_v31, %v11198_v15  ;;  %v11201_v34 = vpop.f32.mrb[18].mxu1  ;;  %v11180_v42 = vpop.f32.mrb[19].mxu0  ;;  %8940 = vmatprep.subr.bf16.mxu0 %v13120_v27  ;;  %v13163_v27 = vld [vmem:[#allocation9 + $0x260] ss:$8 sps:$4 sm:$0xff]   ;;  %v13166_v46 = vld [vmem:[#allocation9 + $0x270] ss:$8 sps:$4 sm:$0xff]  }
 0x5e2   :  { %v8178_v44 = vadd.f32 %v11178_v39, %v5149_v29  ;;  %v11202_v45 = vpop.f32.mrb[19].mxu1 }
 0x5e4   :  { %v8218_v51 = vadd.f32 %v11200_v33, %v8178_v44  ;;  %8941 = vmatpush1.bf16.msra.mxu0 %v13118_v50 }
 0x5e5   :  { %8942 = vmatprep.subr.bf16.mxu0 %v13123_v43 }
 0x5e8   :  { %8943 = vmatpush1.bf16.msra.mxu0 %v13121_v49  ;;  %v13213_v49 = vld [vmem:[#allocation12 + $0xe4] ss:$8 sps:$4 sm:$0xff]  }
 0x5e9   :  { %8944 = vmatprep.subr.bf16.mxu0 %v13126_v61  ;;  %v13211_v61 = vld [vmem:[#allocation12 + $0xe0] ss:$8 sps:$4 sm:$0xff]   ;;  %9244 = vmatprep.subr.bf16.mxu1 %v13213_v49 }
 0x5ea   :  { %9245 = vmatpush1.bf16.msra.mxu1 %v13211_v61  ;;  %v13266_v49 = vld [vmem:[#allocation18] sm:$0xff]  }
 0x5ec   :  { %8945 = vmatpush1.bf16.msra.mxu0 %v13124_v7  ;;  %v13216_v7 = vld [vmem:[#allocation12 + $0xf4] ss:$8 sps:$4 sm:$0xff]  }
 0x5ed   :  { %8946 = vmatprep.subr.bf16.mxu0 %v13129_v52  ;;  %v13214_v52 = vld [vmem:[#allocation12 + $0xf0] ss:$8 sps:$4 sm:$0xff]   ;;  %9246 = vmatprep.subr.bf16.mxu1 %v13216_v7 }
 0x5ee   :  { %9247 = vmatpush1.bf16.msra.mxu1 %v13214_v52  ;;  %v13267_v7 = vld [vmem:[#allocation18 + $0x48] sm:$0xff]  }
 0x5ef   :  { %v13268_v52 = vld [vmem:[#allocation18 + $0x8] sm:$0xff]  }
 0x5f0   :  { %8947 = vmatpush1.bf16.msra.mxu0 %v13127_v53  ;;  %v13219_v53 = vld [vmem:[#allocation15 + $0x4] ss:$8 sps:$4 sm:$0xff]  }
 0x5f1   :  { %8948 = vmatprep.subr.bf16.mxu0 %v13132_v56  ;;  %9465 = vmatprep.subr.bf16.mxu1 %v13219_v53  ;;  %v8473_v56 = vld [vmem:[#allocation10] sm:$0x3]  ;;  %v13269_v53 = vld [vmem:[#allocation18 + $0x50] sm:$0xff]  }
 0x5f4   :  { %8949 = vmatpush1.bf16.msra.mxu0 %v13130_v57  ;;  %v8478_v57 = vrot.slane %v8473_v56, %v14106_v8 }
 0x5f5   :  { %8950 = vmatprep.subr.bf16.mxu0 %v13135_v48  ;;  %v8482_v48 = vrot.slane %v8473_v56, %v14086_v55  ;;  %v13270_v56 = vld [vmem:[#allocation18 + $0x10] sm:$0xff]  }
 0x5f8   :  { %8951 = vmatpush1.bf16.msra.mxu0 %v13133_v58 }
 0x5f9   :  { %8952 = vmatprep.subr.bf16.mxu0 %v13138_v35 }
 0x5fc   :  { %8953 = vmatpush1.bf16.msra.mxu0 %v13136_v59 }
 0x5fd   :  { %8954 = vmatprep.subr.bf16.mxu0 %v13141_v4 }
 0x5fe   :  { %v11220_v5 = vpop.f32.mrb[20].mxu0 }
 0x5ff   :  { %v11242_v40 = vpop.f32.mrb[20].mxu1  ;;  %v11221_v60 = vpop.f32.mrb[21].mxu0 }
 0x600   :  { %v11222_v12 = vadd.f32 %v11221_v60, %v11220_v5  ;;  %v11243_v41 = vpop.f32.mrb[21].mxu1  ;;  %8955 = vmatpush1.bf16.msra.mxu0 %v13139_v62  ;;  %v11223_v10 = vpop.f32.mrb[22].mxu0 }
 0x601   :  { %v11244_v13 = vadd.f32 %v11243_v41, %v11242_v40  ;;  %v11245_v14 = vpop.f32.mrb[22].mxu1  ;;  %v11224_v0 = vpop.f32.mrb[23].mxu0  ;;  %8956 = vmatprep.subr.bf16.mxu0 %v13144_v1  ;;  %v13217_v40 = vld [vmem:[#allocation15] ss:$8 sps:$4 sm:$0xff]   ;;  %v13220_v41 = vld [vmem:[#allocation15 + $0x10] ss:$8 sps:$4 sm:$0xff]  }
 0x602   :  { %v8258_v37 = vadd.f32 %v11222_v12, %v8218_v51  ;;  %v11246_v63 = vpop.f32.mrb[23].mxu1  ;;  %v13222_v12 = vld [vmem:[#allocation15 + $0x14] ss:$8 sps:$4 sm:$0xff]   ;;  %v13225_v10 = vld [vmem:[#allocation15 + $0x24] ss:$8 sps:$4 sm:$0xff]  }
 0x603   :  { %v13231_v14 = vld [vmem:[#allocation15 + $0x44] ss:$8 sps:$4 sm:$0xff]   ;;  %v13229_v0 = vld [vmem:[#allocation15 + $0x40] ss:$8 sps:$4 sm:$0xff]  }
 0x604   :  { %v8298_v16 = vadd.f32 %v11244_v13, %v8258_v37  ;;  %8957 = vmatpush1.bf16.msra.mxu0 %v13142_v32  ;;  %v13223_v32 = vld [vmem:[#allocation15 + $0x20] ss:$8 sps:$4 sm:$0xff]   ;;  %v13226_v13 = vld [vmem:[#allocation15 + $0x30] ss:$8 sps:$4 sm:$0xff]   ;;  %v13237_v63 = vld [vmem:[#allocation15 + $0x64] ss:$8 sps:$4 sm:$0xff]  }
 0x605   :  { %8967 = vmatprep.subr.bf16.mxu0 %v13147_v30  ;;  %v13234_v30 = vld [vmem:[#allocation15 + $0x54] ss:$8 sps:$4 sm:$0xff]   ;;  %v13232_v37 = vld [vmem:[#allocation15 + $0x50] ss:$8 sps:$4 sm:$0xff]  }
 0x607   :  { %8959 = vmatmul.mubr.bf16.vlgmr.msra.gmra.mrb[28].mxu0 %v8390_v17  ;;  %v13238_v17 = vld [vmem:[#allocation15 + $0x70] ss:$8 sps:$4 sm:$0xff]  }
 0x608   :  { %8968 = vmatpush1.bf16.msra.mxu0 %v13145_v47  ;;  %8999 = vmatprep.mubr.bf16.mxu0 %v13692_v21  ;;  %v13240_v47 = vld [vmem:[#allocation15 + $0x74] ss:$8 sps:$4 sm:$0xff]  }
 0x609   :  { %8969 = vmatprep.subr.bf16.mxu0 %v13150_v18  ;;  %v13243_v18 = vld [vmem:[#allocation15 + $0x84] ss:$8 sps:$4 sm:$0xff]   ;;  %v13246_v21 = vld [vmem:[#allocation15 + $0x94] ss:$8 sps:$4 sm:$0xff]  }
 0x60c   :  { %8970 = vmatpush1.bf16.msra.mxu0 %v13148_v19  ;;  %v13241_v19 = vld [vmem:[#allocation15 + $0x80] ss:$8 sps:$4 sm:$0xff]  }
 0x60d   :  { %8971 = vmatprep.subr.bf16.mxu0 %v13153_v22  ;;  %v13244_v22 = vld [vmem:[#allocation15 + $0x90] ss:$8 sps:$4 sm:$0xff]  }
 0x610   :  { %8972 = vmatpush1.bf16.msra.mxu0 %v13151_v20  ;;  %v13249_v20 = vld [vmem:[#allocation15 + $0xa4] ss:$8 sps:$4 sm:$0xff]  }
 0x611   :  { %8973 = vmatprep.subr.bf16.mxu0 %v13156_v23  ;;  %v13247_v23 = vld [vmem:[#allocation15 + $0xa0] ss:$8 sps:$4 sm:$0xff]  }
 0x614   :  { %8974 = vmatpush1.bf16.msra.mxu0 %v13154_v2  ;;  %v13252_v2 = vld [vmem:[#allocation15 + $0xb4] ss:$8 sps:$4 sm:$0xff]  }
 0x615   :  { %8975 = vmatprep.subr.bf16.mxu0 %v13159_v24  ;;  %v13250_v24 = vld [vmem:[#allocation15 + $0xb0] ss:$8 sps:$4 sm:$0xff]  }
 0x618   :  { %8976 = vmatpush1.bf16.msra.mxu0 %v13157_v36  ;;  %v13255_v36 = vld [vmem:[#allocation15 + $0xc4] ss:$8 sps:$4 sm:$0xff]  }
 0x619   :  { %8977 = vmatprep.subr.bf16.mxu0 %v13162_v38  ;;  %v13253_v38 = vld [vmem:[#allocation15 + $0xc0] ss:$8 sps:$4 sm:$0xff]  }
 0x61c   :  { %8978 = vmatpush1.bf16.msra.mxu0 %v13160_v25  ;;  %v13258_v25 = vld [vmem:[#allocation15 + $0xd4] ss:$8 sps:$4 sm:$0xff]  }
 0x61d   :  { %8979 = vmatprep.subr.bf16.mxu0 %v13165_v26  ;;  %v13256_v26 = vld [vmem:[#allocation15 + $0xd0] ss:$8 sps:$4 sm:$0xff]  }
 0x61e   :  { %v11264_v54 = vpop.f32.mrb[24].mxu0 }
 0x61f   :  { %v11286_v29 = vpop.f32.mrb[24].mxu1  ;;  %v11265_v15 = vpop.f32.mrb[25].mxu0 }
 0x620   :  { %v11266_v3 = vadd.f32 %v11265_v15, %v11264_v54  ;;  %v11287_v39 = vpop.f32.mrb[25].mxu1  ;;  %v11267_v31 = vpop.f32.mrb[26].mxu0  ;;  %8980 = vmatpush1.bf16.msra.mxu0 %v13163_v27  ;;  %v13261_v27 = vld [vmem:[#allocation15 + $0xe4] ss:$8 sps:$4 sm:$0xff]   ;;  %v13264_v54 = vld [vmem:[#allocation15 + $0xf4] ss:$8 sps:$4 sm:$0xff]  }
 0x621   :  { %v11288_v50 = vadd.f32 %v11287_v39, %v11286_v29  ;;  %v11289_v33 = vpop.f32.mrb[26].mxu1  ;;  %v11268_v34 = vpop.f32.mrb[27].mxu0  ;;  %8981 = vmatprep.subr.bf16.mxu0 %v13168_v28  ;;  %v13259_v28 = vld [vmem:[#allocation15 + $0xe0] ss:$8 sps:$4 sm:$0xff]   ;;  %v13262_v29 = vld [vmem:[#allocation15 + $0xf0] ss:$8 sps:$4 sm:$0xff]  }
 0x622   :  { %v8338_v42 = vadd.f32 %v11266_v3, %v8298_v16  ;;  %v11290_v43 = vpop.f32.mrb[27].mxu1  ;;  %v13235_v16 = vld [vmem:[#allocation15 + $0x60] ss:$8 sps:$4 sm:$0xff]   ;;  %v9044_v3 = vld [vmem:[#allocation13] sm:$0x3] }
 0x623   :  { %v13265_v15 = vld [vmem:[#allocation18 + $0x40] sm:$0xff]   ;;  %v9049_v39 = vrot.slane %v9044_v3, %v14106_v8  ;;  %v9053_v31 = vrot.slane %v9044_v3, %v14086_v55 }
 0x624   :  { %v8378_v44 = vadd.f32 %v11288_v50, %v8338_v42  ;;  %8982 = vmatpush1.bf16.msra.mxu0 %v13166_v46 }
 0x626   :  { %v8387_v45 = vmax.f32 %v8378_v44, 0.0 }
 0x628   :  { %v8392_v51 = vpack.c.bf16 %v8387_v45, %v8387_v45 }
 0x62a   :  { %9000 = vmatmul.mubr.bf16.vlgmr.msra.gmra.mrb[28].mxu0 %v8392_v51 }
 0x6fd   :  { %v9001_v58 = vpop.f32.mrb[28].mxu0 }
 0x6fe   :  { %v11388_v35 = vadd.f32 %v9001_v58, %v8478_v57  ;;  %v9003_v59 = vpop.f32.mrb[29].mxu0  ;;  %v13271_v57 = vld [vmem:[#allocation18 + $0x58] sm:$0xff]   ;;  %v13273_v58 = vld [vmem:[#allocation18 + $0x60] sm:$0xff]  }
 0x6ff   :  { %v11389_v9 = vadd.f32 %v9003_v59, %v8482_v48  ;;  %v9005_v4 = vpop.f32.mrb[30].mxu0  ;;  %v13272_v48 = vld [vmem:[#allocation18 + $0x18] sm:$0xff]   ;;  %v13275_v59 = vld [vmem:[#allocation18 + $0x68] sm:$0xff]  }
 0x700   :  { %v9008_v62 = vmax.f32 %v11388_v35, 0.0  ;;  %v9006_v6 = vpop.f32.mrb[31].mxu0  ;;  %v13274_v35 = vld [vmem:[#allocation18 + $0x20] sm:$0xff]   ;;  %v13277_v4 = vld [vmem:[#allocation18 + $0x70] sm:$0xff]  }
 0x701   :  { %v9009_v1 = vmax.f32 %v11389_v9, 0.0  ;;  %v13276_v9 = vld [vmem:[#allocation18 + $0x28] sm:$0xff]   ;;  %v13279_v6 = vld [vmem:[#allocation18 + $0x78] sm:$0xff]  }
 0x702   :  { %v9010_v60 = vpack.c.bf16 %v9008_v62, %v9008_v62  ;;  %v13278_v62 = vld [vmem:[#allocation18 + $0x30] sm:$0xff]  }
 0x703   :  { %v9011_v5 = vpack.c.bf16 %v9009_v1, %v9009_v1  ;;  %v13280_v1 = vld [vmem:[#allocation18 + $0x38] sm:$0xff]  }
 0x705   :  { %9248 = vmatprep.mubr.bf16.mxu1 %v9011_v5  ;;  %v13281_v5 = vld [vmem:[#allocation21] sm:$0xff]  }
 0x706   :  { %9249 = vmatmul.mubr.bf16.vlgmr.msra.gmra.mrb[28].mxu1 %v9010_v60  ;;  %v13282_v60 = vld [vmem:[#allocation21 + $0x8] sm:$0xff]  }
 0x707   :  { %9466 = vmatpush1.bf16.msra.mxu1 %v13217_v40  ;;  %v13693_v40 = vmov 0.0  }
 0x708   :  { %9467 = vmatprep.subr.bf16.mxu1 %v13222_v12  ;;  %11332 = vmatprep.subr.bf16.mxu0 %v13693_v40  ;;  %v13283_v12 = vld [vmem:[#allocation21 + $0x10] sm:$0xff]  }
 0x709   :  { %11333 = vmatpush3.bf16.msra.mxu0 %v13281_v5  ;;  %11348 = vmatprep.mubr.msk.bf16.mxu0 %vm13694_vm0, %v13693_v40 }
 0x70a   :  { %11334 = vmatprep.subr.bf16.mxu0 %v13693_v40 }
 0x70b   :  { %9468 = vmatpush1.bf16.msra.mxu1 %v13220_v41  ;;  %v13284_v41 = vld [vmem:[#allocation21 + $0x18] sm:$0xff]  }
 0x70c   :  { %9469 = vmatprep.subr.bf16.mxu1 %v13225_v10  ;;  %v13285_v10 = vld [vmem:[#allocation21 + $0x20] sm:$0xff]  }
 0x70d   :  { %11335 = vmatpush3.bf16.msra.mxu0 %v13282_v60 }
 0x70e   :  { %11336 = vmatprep.subr.bf16.mxu0 %v13693_v40 }
 0x70f   :  { %9470 = vmatpush1.bf16.msra.mxu1 %v13223_v32  ;;  %v13286_v32 = vld [vmem:[#allocation21 + $0x28] sm:$0xff]  }
 0x710   :  { %9471 = vmatprep.subr.bf16.mxu1 %v13228_v11  ;;  %v9293_v11 = vld [vmem:[#allocation16] sm:$0x3] }
 0x711   :  { %11337 = vmatpush3.bf16.msra.mxu0 %v13283_v12 }
 0x712   :  { %11338 = vmatprep.subr.bf16.mxu0 %v13693_v40 }
 0x713   :  { %9472 = vmatpush1.bf16.msra.mxu1 %v13226_v13  ;;  %v9298_v13 = vrot.slane %v9293_v11, %v14106_v8  ;;  %v13290_v8 = vld [vmem:[#allocation24 + $0x8] sm:$0xff]  }
 0x714   :  { %9473 = vmatprep.subr.bf16.mxu1 %v13231_v14  ;;  %v9302_v14 = vrot.slane %v9293_v11, %v14086_v55  ;;  %v13289_v55 = vld [vmem:[#allocation24] sm:$0xff]  }
 0x715   :  { %11339 = vmatpush3.bf16.msra.mxu0 %v13284_v41 }
 0x716   :  { %11340 = vmatprep.subr.bf16.mxu0 %v13693_v40 }
 0x717   :  { %9474 = vmatpush1.bf16.msra.mxu1 %v13229_v0 }
 0x718   :  { %9475 = vmatprep.subr.bf16.mxu1 %v13234_v30 }
 0x719   :  { %11341 = vmatpush3.bf16.msra.mxu0 %v13285_v10 }
 0x71a   :  { %11342 = vmatprep.subr.bf16.mxu0 %v13693_v40 }
 0x71b   :  { %9476 = vmatpush1.bf16.msra.mxu1 %v13232_v37 }
 0x71c   :  { %9477 = vmatprep.subr.bf16.mxu1 %v13237_v63 }
 0x71d   :  { %11343 = vmatpush3.bf16.msra.mxu0 %v13286_v32 }
 0x71e   :  { %11344 = vmatprep.subr.bf16.mxu0 %v13693_v40 }
 0x71f   :  { %9478 = vmatpush1.bf16.msra.mxu1 %v13235_v16 }
 0x720   :  { %9479 = vmatprep.subr.bf16.mxu1 %v13240_v47 }
 0x723   :  { %9480 = vmatpush1.bf16.msra.mxu1 %v13238_v17 }
 0x724   :  { %9481 = vmatprep.subr.bf16.mxu1 %v13243_v18 }
 0x727   :  { %9482 = vmatpush1.bf16.msra.mxu1 %v13241_v19 }
 0x728   :  { %9483 = vmatprep.subr.bf16.mxu1 %v13246_v21 }
 0x72b   :  { %9484 = vmatpush1.bf16.msra.mxu1 %v13244_v22  ;;  %v13287_v22 = vld [vmem:[#allocation21 + $0x30] sm:$0xff]  }
 0x72c   :  { %9485 = vmatprep.subr.bf16.mxu1 %v13249_v20  ;;  %11345 = vmatpush3.bf16.msra.mxu0 %v13287_v22  ;;  %v13288_v20 = vld [vmem:[#allocation21 + $0x38] sm:$0xff]  }
 0x72d   :  { %11346 = vmatprep.subr.bf16.mxu0 %v13693_v40 }
 0x72f   :  { %9486 = vmatpush1.bf16.msra.mxu1 %v13247_v23  ;;  %v13291_v23 = vld [vmem:[#allocation24 + $0x10] sm:$0xff]  }
 0x730   :  { %9487 = vmatprep.subr.bf16.mxu1 %v13252_v2  ;;  %11347 = vmatpush3.bf16.msra.mxu0 %v13288_v20  ;;  %v13292_v2 = vld [vmem:[#allocation24 + $0x18] sm:$0xff]  }
 0x733   :  { %9488 = vmatpush1.bf16.msra.mxu1 %v13250_v24  ;;  %v13293_v24 = vld [vmem:[#allocation24 + $0x20] sm:$0xff]  }
 0x734   :  { %9489 = vmatprep.subr.bf16.mxu1 %v13255_v36  ;;  %v13294_v36 = vld [vmem:[#allocation24 + $0x28] sm:$0xff]  }
 0x737   :  { %9490 = vmatpush1.bf16.msra.mxu1 %v13253_v38 }
 0x738   :  { %9491 = vmatprep.subr.bf16.mxu1 %v13258_v25  ;;  %v11125_v25 = vld [vmem:[#allocation19] ss:$0 sm:$0xff] }
 0x73b   :  { %9492 = vmatpush1.bf16.msra.mxu1 %v13256_v26 }
 0x73c   :  { %9493 = vmatprep.subr.bf16.mxu1 %v13261_v27 }
 0x73f   :  { %9494 = vmatpush1.bf16.msra.mxu1 %v13259_v28 }
 0x740   :  { %9495 = vmatprep.subr.bf16.mxu1 %v13264_v54 }
 0x743   :  { %9496 = vmatpush1.bf16.msra.mxu1 %v13262_v29 }
 0x744   :  { %11292 = vmatprep.subr.bf16.mxu1 %v13265_v15 }
 0x7d9   :  { %v9250_v46 = vpop.f32.mrb[28].mxu1 }
 0x7da   :  { %v9251_v50 = vadd.f32 %v9250_v46, %v9049_v39  ;;  %v9252_v33 = vpop.f32.mrb[29].mxu1  ;;  %v13295_v39 = vld [vmem:[#allocation24 + $0x30] sm:$0xff]   ;;  %v11142_v46 = vld [vmem:[#allocation22] ss:$0 sm:$0xff] }
 0x7db   :  { %v9253_v34 = vadd.f32 %v9252_v33, %v9053_v31  ;;  %v9254_v42 = vpop.f32.mrb[30].mxu1  ;;  %v13296_v31 = vld [vmem:[#allocation24 + $0x38] sm:$0xff]  }
 0x7dc   :  { %v9257_v43 = vmax.f32 %v9251_v50, 0.0  ;;  %v9255_v44 = vpop.f32.mrb[31].mxu1 }
 0x7dd   :  { %v9258_v45 = vmax.f32 %v9253_v34, 0.0 }
 0x7de   :  { %v9259_v61 = vpack.c.bf16 %v9257_v43, %v9257_v43 }
 0x7df   :  { %v9260_v51 = vpack.c.bf16 %v9258_v45, %v9258_v45 }
 0x7e1   :  { %9497 = vmatprep.mubr.bf16.mxu1 %v9260_v51  ;;  %v11151_v51 = vld [vmem:[#allocation25] ss:$0 sm:$0xff] }
 0x7e2   :  { %9498 = vmatmul.mubr.bf16.vlgmr.msra.gmra.mrb[32].mxu1 %v9259_v61 }
 0x7e3   :  { %11293 = vmatpush3.bf16.msra.mxu1 %v13266_v49 }
 0x7e4   :  { %11294 = vmatprep.subr.bf16.mxu1 %v13267_v7 }
 0x7e7   :  { %11295 = vmatpush3.bf16.msra.mxu1 %v13268_v52 }
 0x7e8   :  { %11296 = vmatprep.subr.bf16.mxu1 %v13269_v53 }
 0x7eb   :  { %11297 = vmatpush3.bf16.msra.mxu1 %v13270_v56 }
 0x7ec   :  { %11298 = vmatprep.subr.bf16.mxu1 %v13271_v57 }
 0x7ef   :  { %11299 = vmatpush3.bf16.msra.mxu1 %v13272_v48 }
 0x7f0   :  { %11300 = vmatprep.subr.bf16.mxu1 %v13273_v58 }
 0x7f3   :  { %11301 = vmatpush3.bf16.msra.mxu1 %v13274_v35 }
 0x7f4   :  { %11302 = vmatprep.subr.bf16.mxu1 %v13275_v59 }
 0x7f7   :  { %11303 = vmatpush3.bf16.msra.mxu1 %v13276_v9 }
 0x7f8   :  { %11304 = vmatprep.subr.bf16.mxu1 %v13277_v4 }
 0x7fb   :  { %11305 = vmatpush3.bf16.msra.mxu1 %v13278_v62 }
 0x7fc   :  { %11306 = vmatprep.subr.bf16.mxu1 %v13279_v6 }
 0x7ff   :  { %11307 = vmatpush3.bf16.msra.mxu1 %v13280_v1 }
 0x800   :  { %11352 = vmatprep.subr.bf16.mxu1 %v13693_v40 }
 0x8b5   :  { %v9499_v0 = vpop.f32.mrb[32].mxu1 }
 0x8b6   :  { %v9500_v30 = vadd.f32 %v9499_v0, %v9298_v13  ;;  %v9501_v37 = vpop.f32.mrb[33].mxu1 }
 0x8b7   :  { %v9502_v63 = vadd.f32 %v9501_v37, %v9302_v14  ;;  %v9503_v16 = vpop.f32.mrb[34].mxu1 }
 0x8b8   :  { %v9506_v47 = vmax.f32 %v9500_v30, 0.0  ;;  %v9504_v17 = vpop.f32.mrb[35].mxu1 }
 0x8b9   :  { %v9507_v18 = vmax.f32 %v9502_v63, 0.0 }
 0x8ba   :  { %v9508_v21 = vpack.c.bf16 %v9506_v47, %v9506_v47 }
 0x8bb   :  { %v9509_v19 = vpack.c.bf16 %v9507_v18, %v9507_v18 }
 0x8bd   :  { %9677 = vmatprep.mubr.bf16.mxu1 %v9509_v19 }
 0x8be   :  { %9678 = vmatmul.mubr.bf16.vlgmr.msra.gmra.mrb[36].mxu1 %v9508_v21 }
 0x8bf   :  { %11368 = vmatprep.mubr.msk.bf16.mxu1 %vm13694_vm0, %v13693_v40  ;;  %11353 = vmatpush3.bf16.msra.mxu1 %v13289_v55 }
 0x8c0   :  { %11354 = vmatprep.subr.bf16.mxu1 %v13693_v40 }
 0x8c3   :  { %11355 = vmatpush3.bf16.msra.mxu1 %v13290_v8 }
 0x8c4   :  { %11356 = vmatprep.subr.bf16.mxu1 %v13693_v40 }
 0x8c7   :  { %11357 = vmatpush3.bf16.msra.mxu1 %v13291_v23 }
 0x8c8   :  { %11358 = vmatprep.subr.bf16.mxu1 %v13693_v40 }
 0x8cb   :  { %11359 = vmatpush3.bf16.msra.mxu1 %v13292_v2 }
 0x8cc   :  { %11360 = vmatprep.subr.bf16.mxu1 %v13693_v40 }
 0x8cf   :  { %11361 = vmatpush3.bf16.msra.mxu1 %v13293_v24 }
 0x8d0   :  { %11362 = vmatprep.subr.bf16.mxu1 %v13693_v40 }
 0x8d3   :  { %11363 = vmatpush3.bf16.msra.mxu1 %v13294_v36 }
 0x8d4   :  { %11364 = vmatprep.subr.bf16.mxu1 %v13693_v40 }
 0x8d7   :  { %11365 = vmatpush3.bf16.msra.mxu1 %v13295_v39 }
 0x8d8   :  { %11366 = vmatprep.subr.bf16.mxu1 %v13693_v40 }
 0x8db   :  { %11367 = vmatpush3.bf16.msra.mxu1 %v13296_v31 }
 0x991   :  { %v11308_v38 = vpop.f32.mrb[36].mxu1 }
 0x992   :  { %v11309_v26 = vpop.f32.mrb[37].mxu1 }
 0x993   :  { %v11310_v27 = vadd.f32 %v11309_v26, %v11308_v38  ;;  %v11311_v28 = vpop.f32.mrb[38].mxu1 }
 0x994   :  { %v11312_v54 = vpop.f32.mrb[39].mxu1 }
 0x995   :  { %v9680_v29 = vadd.f32 %v11310_v27, %v11125_v25 }
 0x997   :  { %v9685_v15 = vmax.f32 %v9680_v29, 0.0 }
 0x999   :  { %v9686_v3 = vpack.c.bf16 %v9685_v15, %v9685_v15 }
 0x99b   :  { %11349 = vmatmul.mubr.bf16.vlgmr.msra.gmra.mrb[32].mxu0 %v9686_v3 }
 0xa6e   :  { %v9792_v50 = vpop.f32.mrb[32].mxu0 }
 0xa6f   :  { %v9793_v33 = vadd.f32 %v11142_v46, %v9792_v50  ;;  %v11350_v34 = vpop.f32.mrb[33].mxu0 }
 0xa70   :  { %v9795_v42 = vpop.f32.mrb[34].mxu0 }
 0xa71   :  { %v9798_v43 = vmax.f32 %v9793_v33, 0.0  ;;  %v11351_v44 = vpop.f32.mrb[35].mxu0 }
 0xa73   :  { %v9799_v45 = vpack.c.bf16 %v9798_v43, %v9798_v43 }
 0xa75   :  { %11369 = vmatmul.mubr.bf16.vlgmr.msra.gmra.mrb[40].mxu1 %v9799_v45 }
 0xb48   :  { %v9905_v49 = vpop.f32.mrb[40].mxu1 }
 0xb49   :  { %v9906_v61 = vadd.f32 %v11151_v51, %v9905_v49  ;;  %v11370_v7 = vpop.f32.mrb[41].mxu1 }
 0xb4a   :  { %v9908_v52 = vpop.f32.mrb[42].mxu1 }
 0xb4b   :  { %9911 = vst [vmem:[%s14277_s17] sm:$0xff] %v9906_v61  ;;  %v11371_v53 = vpop.f32.mrb[43].mxu1 }
 0xb4c   :  { %9916 = vsyncpa [#allocation3], 1 }
 0xb4d   :  { %9917 = vsyncpa [#allocation5], 1 }
 0xb4e   :  { %9918 = vsyncpa [#allocation8], 1 }
 0xb4f   :  { %9919 = vsyncpa [#allocation11], 1 }
 0xb50   :  { %9920 = vsyncpa [#allocation14], 1 }
 0xb51   :  { %9921 = vsyncpa [#allocation17], 1 }
 0xb52   :  { %9922 = vsyncpa [#allocation20], 1 }
 0xb53   :  { %9923 = vsyncpa [#allocation23], 1 }
 0xb54   :  { %9924 = vsyncpa [#allocation26], 1 }

</bundles_post_ra>
